<compile_context>
chip_gen: v5e
topology: v5e:2x2
jax: 0.10.0
libtpu: 0.0.40
codegen_flags: <defaults>
</compile_context>

<pallas_src>
import functools
import math

import jax
import jax.numpy as jnp
from jax import lax
from jax.experimental import pallas as pl
from jax.experimental.pallas import tpu as pltpu  # noqa: F401  (TPU backend)

# ----------------------------- configuration -----------------------------
B = 2
SEQ_LENGTH = 8          # N  (tokens of the original series)
FEATURES = 16           # D  (feature channels of the original series)
D_MODEL_TIME = 32
D_MODEL_FEATURE = 32
NUM_HEADS = 4
HIDDEN_DIM = 64

IN_CHANNELS = 1
OUT_CHANNELS_LIST = [4, 8]
KERNEL_SIZES = [3, 3]
STRIDES = [1, 1]
PADDINGS = [1, 1]
POOLING_METHODS = ["max", "avg"]
OUTPUT_DIM = 1


# ---------------------- in-kernel transformer helpers ----------------------
def _ln(x, g, b, eps=1e-5):
    x = x.astype(jnp.float32)
    mean = jnp.mean(x, axis=-1, keepdims=True)
    var = jnp.mean(jnp.square(x - mean), axis=-1, keepdims=True)
    return (x - mean) * lax.rsqrt(var + eps) * g + b


def _mha(x, wqkv, bqkv, wo, bo, batch, tokens, embed, heads):
    """Multi-head self-attention on a (batch*tokens, embed) slab (values only)."""
    dh = embed // heads
    scale = 1.0 / math.sqrt(dh)
    # single fused QKV matmul: (B*T, E) @ (E, 3E)
    qkv = jnp.dot(x, wqkv, preferred_element_type=jnp.float32) + bqkv
    per_batch = []
    for bi in range(batch):
        rows = qkv[bi * tokens:(bi + 1) * tokens, :]
        acc = bo                                     # (1, E) -> broadcasts
        for h in range(heads):
            q = rows[:, h * dh:(h + 1) * dh]
            k = rows[:, embed + h * dh:embed + (h + 1) * dh]
            v = rows[:, 2 * embed + h * dh:2 * embed + (h + 1) * dh]
            # q @ k^T without materializing the transpose (NT matmul)
            s = lax.dot_general(q, k, (((1,), (1,)), ((), ())),
                                preferred_element_type=jnp.float32) * scale
            s = s - jnp.max(s, axis=-1, keepdims=True)
            p = jnp.exp(s)
            p = p * pl.reciprocal(jnp.sum(p, axis=-1, keepdims=True), approx=True)
            o_h = jnp.dot(p, v, preferred_element_type=jnp.float32)     # (T, dh)
            # concat(heads) @ Wo  ==  sum_h  o_h @ Wo[h*dh:(h+1)*dh, :]
            acc = acc + jnp.dot(o_h, wo[h * dh:(h + 1) * dh, :],
                                preferred_element_type=jnp.float32)
        per_batch.append(acc)
    return jnp.concatenate(per_batch, axis=0)        # (B*T, E)


def _ffn(x, w1, b1, w2, b2):
    h = jnp.maximum(jnp.dot(x, w1, preferred_element_type=jnp.float32) + b1, 0.0)
    return jnp.dot(h, w2, preferred_element_type=jnp.float32) + b2


# ----------------------- fused transformer kernel -----------------------
def _transformer_kernel(*refs):
    (xt_ref,
     len_w_ref, len_b_ref,
     ln1g_ref, ln1b_ref, qkv1w_ref, qkv1b_ref, o1w_ref, o1b_ref,
     ln2g_ref, ln2b_ref, f1w1_ref, f1b1_ref, f1w2_ref, f1b2_ref,
     feat_w_ref, feat_b_ref,
     ln3g_ref, ln3b_ref, qkv2w_ref, qkv2b_ref, o2w_ref, o2b_ref,
     ln4g_ref, ln4b_ref, f2w1_ref, f2b1_ref, f2w2_ref, f2b2_ref,
     out_ref) = refs

    # length -> embedding:  (B*FEATURES, SEQ) @ (SEQ, D_TIME)
    x1 = jnp.dot(xt_ref[...], len_w_ref[...],
                 preferred_element_type=jnp.float32) + len_b_ref[...]

    # --- block 1: tokens = FEATURES, embed = D_MODEL_TIME ---
    y = _mha(_ln(x1, ln1g_ref[...], ln1b_ref[...]),
             qkv1w_ref[...], qkv1b_ref[...], o1w_ref[...], o1b_ref[...],
             B, FEATURES, D_MODEL_TIME, NUM_HEADS)
    x1 = y + x1
    x1 = _ffn(_ln(x1, ln2g_ref[...], ln2b_ref[...]),
              f1w1_ref[...], f1b1_ref[...], f1w2_ref[...], f1b2_ref[...]) + x1

    # features -> embedding (per-batch in-kernel transpose of the (F, D_TIME) slab)
    feat_w = feat_w_ref[...]
    feat_b = feat_b_ref[...]
    x2 = jnp.concatenate(
        [jnp.dot(x1[bi * FEATURES:(bi + 1) * FEATURES, :].T, feat_w,
                 preferred_element_type=jnp.float32) + feat_b
         for bi in range(B)], axis=0)                # (B*D_TIME, D_FEAT)

    # --- block 2: tokens = D_MODEL_TIME, embed = D_MODEL_FEATURE ---
    z = _mha(_ln(x2, ln3g_ref[...], ln3b_ref[...]),
             qkv2w_ref[...], qkv2b_ref[...], o2w_ref[...], o2b_ref[...],
             B, D_MODEL_TIME, D_MODEL_FEATURE, NUM_HEADS)
    x2 = z + x2
    out = _ffn(_ln(x2, ln4g_ref[...], ln4b_ref[...]),
               f2w1_ref[...], f2b1_ref[...], f2w2_ref[...], f2b2_ref[...]) + x2
    out_ref[...] = out.astype(out_ref.dtype)


def transformer_forward(params, x):
    """x: (B, SEQ, FEATURES) -> (B, D_MODEL_TIME, D_MODEL_FEATURE)."""
    xt = jnp.transpose(x, (0, 2, 1)).reshape(B * FEATURES, SEQ_LENGTH)
    a_f, a_t = params["attn_feature"], params["attn_time"]
    f_t, f_f = params["ffn_time"], params["ffn_feature"]
    row = lambda v: v.reshape(1, -1)
    args = (
        xt,
        params["len2emb_w"], row(params["len2emb_b"]),
        row(params["ln_attn_time_g"]), row(params["ln_attn_time_b"]),
        a_f["wqkv"], row(a_f["bqkv"]), a_f["wo"], row(a_f["bo"]),
        row(params["ln_ffn_time_g"]), row(params["ln_ffn_time_b"]),
        f_t["w1"], row(f_t["b1"]), f_t["w2"], row(f_t["b2"]),
        params["feat2emb_w"], row(params["feat2emb_b"]),
        row(params["ln_attn_feat_g"]), row(params["ln_attn_feat_b"]),
        a_t["wqkv"], row(a_t["bqkv"]), a_t["wo"], row(a_t["bo"]),
        row(params["ln_ffn_feat_g"]), row(params["ln_ffn_feat_b"]),
        f_f["w1"], row(f_f["b1"]), f_f["w2"], row(f_f["b2"]),
    )
    out = pl.pallas_call(
        _transformer_kernel,
        out_shape=jax.ShapeDtypeStruct((B * D_MODEL_TIME, D_MODEL_FEATURE),
                                       jnp.float32),
    )(*args)
    return out.reshape(B, D_MODEL_TIME, D_MODEL_FEATURE)


# ----------------------------- CNN kernels -----------------------------
def _conv_relu_kernel(w_ref, p_ref, b_ref, o_ref):
    # (Cout, Cin*k*k) @ (Cin*k*k, B*Ho*Wo) -> lane-dense (Cout, B*Ho*Wo) output
    y = jnp.dot(w_ref[...], p_ref[...], preferred_element_type=jnp.float32)
    o_ref[...] = jnp.maximum(y + b_ref[...], 0.0).astype(o_ref.dtype)


def _conv_gap_fc_kernel(w_ref, p_ref, b_ref, fcw_ref, fcb_ref, o_ref, *, batch, hw):
    # conv + bias + ReLU (lane-dense)
    y = jnp.maximum(
        jnp.dot(w_ref[...], p_ref[...], preferred_element_type=jnp.float32)
        + b_ref[...], 0.0)                                   # (Cout, batch*hw)
    # 2x2 avg-pool followed by adaptive global-avg  ==  one global mean
    g = jnp.concatenate(
        [jnp.mean(y[:, bi * hw:(bi + 1) * hw], axis=-1, keepdims=True)
         for bi in range(batch)], axis=-1)                   # (Cout, batch)
    out = jnp.dot(g.T, fcw_ref[...], preferred_element_type=jnp.float32) + fcb_ref[...]
    o_ref[...] = out.astype(o_ref.dtype)


def _fc_kernel(x_ref, w_ref, b_ref, o_ref):
    o_ref[...] = (jnp.dot(x_ref[...], w_ref[...],
                          preferred_element_type=jnp.float32)
                  + b_ref[...]).astype(o_ref.dtype)


def _im2col_t(x, kh, kw, stride, pad):
    """x: (B, C, H, W) -> patches (C*kh*kw, B*Ho*Wo); row order matches w.reshape(Cout, -1)."""
    b_, c, h, w = x.shape
    xp = jnp.pad(x, ((0, 0), (0, 0), (pad, pad), (pad, pad)))
    ho = (h + 2 * pad - kh) // stride + 1
    wo = (w + 2 * pad - kw) // stride + 1
    rows = []
    for ci in range(c):
        for i in range(kh):
            for j in range(kw):
                rows.append(
                    xp[:, ci, i:i + stride * ho:stride, j:j + stride * wo:stride]
                    .reshape(b_ * ho * wo))
    return jnp.stack(rows, axis=0), ho, wo


def _pool2x2(x, method):
    b_, c, h, w = x.shape
    xr = x.reshape(b_, c, h // 2, 2, w // 2, 2)
    if method == "max":
        return jnp.max(xr, axis=(3, 5))
    return jnp.mean(xr, axis=(3, 5))


def cnn_forward(x, p):
    """x: (B, 1, d_model_time, d_model_feature) NCHW -> (B, OUTPUT_DIM)."""
    convs = p["convs"]
    b_ = x.shape[0]
    for li, conv in enumerate(convs):
        w, bias = conv["w"], conv["b"]
        cout, cin, kh, kw = w.shape
        patches, ho, wo = _im2col_t(x, kh, kw, conv["stride"], conv["pad"])
        w2d = w.reshape(cout, cin * kh * kw)
        if li == len(convs) - 1 and conv["pool"] == "avg":
            # last conv fused with pooling (folded into global mean) + FC head
            return pl.pallas_call(
                functools.partial(_conv_gap_fc_kernel, batch=b_, hw=ho * wo),
                out_shape=jax.ShapeDtypeStruct((b_, OUTPUT_DIM), jnp.float32),
            )(w2d, patches, bias.reshape(cout, 1),
              p["fc_w"], p["fc_b"].reshape(1, OUTPUT_DIM))
        y = pl.pallas_call(
            _conv_relu_kernel,
            out_shape=jax.ShapeDtypeStruct((cout, b_ * ho * wo), jnp.float32),
        )(w2d, patches, bias.reshape(cout, 1))
        x = _pool2x2(y.reshape(cout, b_, ho, wo).transpose(1, 0, 2, 3), conv["pool"])
    # generic tail (not reached with the configured "avg" final pooling)
    g = jnp.mean(x, axis=(2, 3))
    return pl.pallas_call(
        _fc_kernel,
        out_shape=jax.ShapeDtypeStruct((b_, OUTPUT_DIM), jnp.float32),
    )(g, p["fc_w"], p["fc_b"].reshape(1, OUTPUT_DIM))


# ----------------------------- full forward -----------------------------
def forward(params, x):
    """x: (B, seq_length, features) -> (B, output_dim)."""
    t_out = transformer_forward(params, x)               # (B, d_time, d_feat)
    return cnn_forward(t_out[:, None, :, :], params["cnn"])


# ----------------------------- parameter init -----------------------------
def init_params(key):
    keys = iter(jax.random.split(key, 64))
    dense = lambda shape: 0.02 * jax.random.normal(next(keys), shape, dtype=jnp.float32)
    zeros = lambda shape: jnp.zeros(shape, jnp.float32)
    ones = lambda shape: jnp.ones(shape, jnp.float32)

    def mha_params(e):
        wq, wk, wv = dense((e, e)), dense((e, e)), dense((e, e))
        return dict(wqkv=jnp.concatenate([wq, wk, wv], axis=1),   # fused QKV weight
                    bqkv=zeros((3 * e,)),
                    wo=dense((e, e)), bo=zeros((e,)))

    def ffn_params(d, h):
        return dict(w1=dense((d, h)), b1=zeros((h,)),
                    w2=dense((h, d)), b2=zeros((d,)))

    convs = []
    cin = IN_CHANNELS
    for cout, ks, st, pd, pm in zip(OUT_CHANNELS_LIST, KERNEL_SIZES, STRIDES,
                                    PADDINGS, POOLING_METHODS):
        convs.append(dict(w=dense((cout, cin, ks, ks)), b=zeros((cout,)),
                          stride=st, pad=pd, pool=pm))
        cin = cout

    return dict(
        len2emb_w=dense((SEQ_LENGTH, D_MODEL_TIME)), len2emb_b=zeros((D_MODEL_TIME,)),
        feat2emb_w=dense((FEATURES, D_MODEL_FEATURE)), feat2emb_b=zeros((D_MODEL_FEATURE,)),
        ln_attn_time_g=ones((D_MODEL_TIME,)), ln_attn_time_b=zeros((D_MODEL_TIME,)),
        ln_attn_feat_g=ones((D_MODEL_FEATURE,)), ln_attn_feat_b=zeros((D_MODEL_FEATURE,)),
        ln_ffn_time_g=ones((D_MODEL_TIME,)), ln_ffn_time_b=zeros((D_MODEL_TIME,)),
        ln_ffn_feat_g=ones((D_MODEL_FEATURE,)), ln_ffn_feat_b=zeros((D_MODEL_FEATURE,)),
        attn_feature=mha_params(D_MODEL_TIME),
        attn_time=mha_params(D_MODEL_FEATURE),
        ffn_time=ffn_params(D_MODEL_TIME, HIDDEN_DIM),
        ffn_feature=ffn_params(D_MODEL_FEATURE, HIDDEN_DIM),
        cnn=dict(convs=convs,
                 fc_w=dense((OUT_CHANNELS_LIST[-1], OUTPUT_DIM)),
                 fc_b=zeros((OUTPUT_DIM,))),
    )


# ----------------------------- main -----------------------------
if __name__ == "__main__":
    key = jax.random.PRNGKey(0)
    pkey, xkey = jax.random.split(key)
    params = init_params(pkey)
    x = jax.random.normal(xkey, (B, SEQ_LENGTH, FEATURES), dtype=jnp.float32)

    out = jax.jit(lambda inp: forward(params, inp))(x)
    out = jax.block_until_ready(out)
    assert out.shape == (B, OUTPUT_DIM), out.shape
    assert bool(jnp.all(jnp.isfinite(out)))
    print("KERNEL_OK")
</pallas_src>

<mosaic_0001>
module attributes {stable_mosaic.version = 11 : i64} {
  func.func @_conv_relu_kernel(%arg0: memref<4x9xf32, #tpu.memory_space<vmem>>, %arg1: memref<9x2048xf32, #tpu.memory_space<vmem>>, %arg2: memref<4x1xf32, #tpu.memory_space<vmem>>, %arg3: memref<4x2048xf32, #tpu.memory_space<vmem>>) attributes {dimension_semantics = [], scalar_prefetch = 0 : i64, scratch_operands = 0 : i64, tpu.core_type = #tpu.core_type<tc>} {
    %c0 = arith.constant 0 : index
    %c0_0 = arith.constant 0 : index
    %0 = vector.load %arg0[%c0, %c0_0] : memref<4x9xf32, #tpu.memory_space<vmem>>, vector<4x9xf32>
    %c0_1 = arith.constant 0 : index
    %c0_2 = arith.constant 0 : index
    %1 = vector.load %arg1[%c0_1, %c0_2] : memref<9x2048xf32, #tpu.memory_space<vmem>>, vector<9x2048xf32>
    %cst = arith.constant dense<0.000000e+00> : vector<4x2048xf32>
    %2 = tpu.matmul %0, %1, %cst {dimension_numbers = #tpu.dot_dimension_numbers<[1], [0], [0], [1], [0, 0, 1, 1], [], []>} : vector<4x9xf32>, vector<9x2048xf32>, vector<4x2048xf32> -> vector<4x2048xf32>
    %c0_3 = arith.constant 0 : index
    %c0_4 = arith.constant 0 : index
    %3 = vector.load %arg2[%c0_3, %c0_4] : memref<4x1xf32, #tpu.memory_space<vmem>>, vector<4x1xf32>
    %4 = vector.broadcast %3 : vector<4x1xf32> to vector<4x2048xf32>
    %5 = arith.addf %2, %4 : vector<4x2048xf32>
    %cst_5 = arith.constant 0.000000e+00 : f32
    %6 = vector.broadcast %cst_5 : f32 to vector<4x2048xf32>
    %7 = arith.maximumf %5, %6 : vector<4x2048xf32>
    %c0_6 = arith.constant 0 : index
    %c0_7 = arith.constant 0 : index
    %8 = vector.load %arg3[%c0_6, %c0_7] : memref<4x2048xf32, #tpu.memory_space<vmem>>, vector<4x2048xf32>
    tpu.vector_store %arg3[%c0_6, %c0_7], %7 {strides = array<i32>} : memref<4x2048xf32, #tpu.memory_space<vmem>>, vector<4x2048xf32>,
    return
  }
}

module attributes {stable_mosaic.version = 11 : i64} {
  func.func @_transformer_kernel(%arg0: memref<32x8xf32, #tpu.memory_space<vmem>>, %arg1: memref<8x32xf32, #tpu.memory_space<vmem>>, %arg2: memref<1x32xf32, #tpu.memory_space<vmem>>, %arg3: memref<1x32xf32, #tpu.memory_space<vmem>>, %arg4: memref<1x32xf32, #tpu.memory_space<vmem>>, %arg5: memref<32x96xf32, #tpu.memory_space<vmem>>, %arg6: memref<1x96xf32, #tpu.memory_space<vmem>>, %arg7: memref<32x32xf32, #tpu.memory_space<vmem>>, %arg8: memref<1x32xf32, #tpu.memory_space<vmem>>, %arg9: memref<1x32xf32, #tpu.memory_space<vmem>>, %arg10: memref<1x32xf32, #tpu.memory_space<vmem>>, %arg11: memref<32x64xf32, #tpu.memory_space<vmem>>, %arg12: memref<1x64xf32, #tpu.memory_space<vmem>>, %arg13: memref<64x32xf32, #tpu.memory_space<vmem>>, %arg14: memref<1x32xf32, #tpu.memory_space<vmem>>, %arg15: memref<16x32xf32, #tpu.memory_space<vmem>>, %arg16: memref<1x32xf32, #tpu.memory_space<vmem>>, %arg17: memref<1x32xf32, #tpu.memory_space<vmem>>, %arg18: memref<1x32xf32, #tpu.memory_space<vmem>>, %arg19: memref<32x96xf32, #tpu.memory_space<vmem>>, %arg20: memref<1x96xf32, #tpu.memory_space<vmem>>, %arg21: memref<32x32xf32, #tpu.memory_space<vmem>>, %arg22: memref<1x32xf32, #tpu.memory_space<vmem>>, %arg23: memref<1x32xf32, #tpu.memory_space<vmem>>, %arg24: memref<1x32xf32, #tpu.memory_space<vmem>>, %arg25: memref<32x64xf32, #tpu.memory_space<vmem>>, %arg26: memref<1x64xf32, #tpu.memory_space<vmem>>, %arg27: memref<64x32xf32, #tpu.memory_space<vmem>>, %arg28: memref<1x32xf32, #tpu.memory_space<vmem>>, %arg29: memref<64x32xf32, #tpu.memory_space<vmem>>) attributes {dimension_semantics = [], scalar_prefetch = 0 : i64, scratch_operands = 0 : i64, tpu.core_type = #tpu.core_type<tc>} {
    %c0 = arith.constant 0 : index
    %c0_0 = arith.constant 0 : index
    %0 = vector.load %arg0[%c0, %c0_0] : memref<32x8xf32, #tpu.memory_space<vmem>>, vector<32x8xf32>
    %c0_1 = arith.constant 0 : index
    %c0_2 = arith.constant 0 : index
    %1 = vector.load %arg1[%c0_1, %c0_2] : memref<8x32xf32, #tpu.memory_space<vmem>>, vector<8x32xf32>
    %cst = arith.constant dense<0.000000e+00> : vector<32x32xf32>
    %2 = tpu.matmul %0, %1, %cst {dimension_numbers = #tpu.dot_dimension_numbers<[1], [0], [0], [1], [0, 0, 1, 1], [], []>} : vector<32x8xf32>, vector<8x32xf32>, vector<32x32xf32> -> vector<32x32xf32>
    %c0_3 = arith.constant 0 : index
    %c0_4 = arith.constant 0 : index
    %3 = vector.load %arg2[%c0_3, %c0_4] : memref<1x32xf32, #tpu.memory_space<vmem>>, vector<1x32xf32>
    %4 = vector.broadcast %3 : vector<1x32xf32> to vector<32x32xf32>
    %5 = arith.addf %2, %4 : vector<32x32xf32>
    %c0_5 = arith.constant 0 : index
    %c0_6 = arith.constant 0 : index
    %6 = vector.load %arg3[%c0_5, %c0_6] : memref<1x32xf32, #tpu.memory_space<vmem>>, vector<1x32xf32>
    %c0_7 = arith.constant 0 : index
    %c0_8 = arith.constant 0 : index
    %7 = vector.load %arg4[%c0_7, %c0_8] : memref<1x32xf32, #tpu.memory_space<vmem>>, vector<1x32xf32>
    %cst_9 = arith.constant dense<0.000000e+00> : vector<32xf32>
    %8 = vector.multi_reduction <add>, %5, %cst_9 [1] : vector<32x32xf32> to vector<32xf32>
    %9 = vector.shape_cast %8 : vector<32xf32> to vector<32x1xf32>
    %cst_10 = arith.constant 3.200000e+01 : f32
    %10 = vector.broadcast %cst_10 : f32 to vector<32x1xf32>
    %11 = arith.divf %9, %10 : vector<32x1xf32>
    %12 = vector.broadcast %11 : vector<32x1xf32> to vector<32x32xf32>
    %13 = arith.subf %5, %12 : vector<32x32xf32>
    %14 = arith.mulf %13, %13 : vector<32x32xf32>
    %cst_11 = arith.constant dense<0.000000e+00> : vector<32xf32>
    %15 = vector.multi_reduction <add>, %14, %cst_11 [1] : vector<32x32xf32> to vector<32xf32>
    %16 = vector.shape_cast %15 : vector<32xf32> to vector<32x1xf32>
    %cst_12 = arith.constant 3.200000e+01 : f32
    %17 = vector.broadcast %cst_12 : f32 to vector<32x1xf32>
    %18 = arith.divf %16, %17 : vector<32x1xf32>
    %19 = vector.broadcast %11 : vector<32x1xf32> to vector<32x32xf32>
    %20 = arith.subf %5, %19 : vector<32x32xf32>
    %cst_13 = arith.constant 9.99999974E-6 : f32
    %21 = vector.broadcast %cst_13 : f32 to vector<32x1xf32>
    %22 = arith.addf %18, %21 : vector<32x1xf32>
    %23 = math.rsqrt %22 : vector<32x1xf32>
    %24 = vector.broadcast %23 : vector<32x1xf32> to vector<32x32xf32>
    %25 = arith.mulf %20, %24 : vector<32x32xf32>
    %26 = vector.broadcast %6 : vector<1x32xf32> to vector<32x32xf32>
    %27 = arith.mulf %25, %26 : vector<32x32xf32>
    %28 = vector.broadcast %7 : vector<1x32xf32> to vector<32x32xf32>
    %29 = arith.addf %27, %28 : vector<32x32xf32>
    %c0_14 = arith.constant 0 : index
    %c0_15 = arith.constant 0 : index
    %30 = vector.load %arg5[%c0_14, %c0_15] : memref<32x96xf32, #tpu.memory_space<vmem>>, vector<32x96xf32>
    %c0_16 = arith.constant 0 : index
    %c0_17 = arith.constant 0 : index
    %31 = vector.load %arg6[%c0_16, %c0_17] : memref<1x96xf32, #tpu.memory_space<vmem>>, vector<1x96xf32>
    %c0_18 = arith.constant 0 : index
    %c0_19 = arith.constant 0 : index
    %32 = vector.load %arg7[%c0_18, %c0_19] : memref<32x32xf32, #tpu.memory_space<vmem>>, vector<32x32xf32>
    %c0_20 = arith.constant 0 : index
    %c0_21 = arith.constant 0 : index
    %33 = vector.load %arg8[%c0_20, %c0_21] : memref<1x32xf32, #tpu.memory_space<vmem>>, vector<1x32xf32>
    %cst_22 = arith.constant dense<0.000000e+00> : vector<32x96xf32>
    %34 = tpu.matmul %29, %30, %cst_22 {dimension_numbers = #tpu.dot_dimension_numbers<[1], [0], [0], [1], [0, 0, 1, 1], [], []>} : vector<32x32xf32>, vector<32x96xf32>, vector<32x96xf32> -> vector<32x96xf32>
    %35 = vector.broadcast %31 : vector<1x96xf32> to vector<32x96xf32>
    %36 = arith.addf %34, %35 : vector<32x96xf32>
    %37 = vector.extract_strided_slice %36 {offsets = [0, 0], sizes = [16, 96], strides = [1, 1]} : vector<32x96xf32> to vector<16x96xf32>
    %38 = vector.extract_strided_slice %37 {offsets = [0, 0], sizes = [16, 8], strides = [1, 1]} : vector<16x96xf32> to vector<16x8xf32>
    %39 = vector.extract_strided_slice %37 {offsets = [0, 32], sizes = [16, 8], strides = [1, 1]} : vector<16x96xf32> to vector<16x8xf32>
    %40 = vector.extract_strided_slice %37 {offsets = [0, 64], sizes = [16, 8], strides = [1, 1]} : vector<16x96xf32> to vector<16x8xf32>
    %cst_23 = arith.constant dense<0.000000e+00> : vector<16x16xf32>
    %41 = tpu.matmul %38, %39, %cst_23 {dimension_numbers = #tpu.dot_dimension_numbers<[1], [1], [0], [0], [0, 0, 1, 0], [], []>} : vector<16x8xf32>, vector<16x8xf32>, vector<16x16xf32> -> vector<16x16xf32>
    %cst_24 = arith.constant 0.353553385 : f32
    %42 = vector.broadcast %cst_24 : f32 to vector<16x16xf32>
    %43 = arith.mulf %41, %42 : vector<16x16xf32>
    %cst_25 = arith.constant dense<0xFF800000> : vector<16xf32>
    %44 = vector.multi_reduction <maximumf>, %43, %cst_25 [1] : vector<16x16xf32> to vector<16xf32>
    %45 = vector.shape_cast %44 : vector<16xf32> to vector<16x1xf32>
    %46 = vector.broadcast %45 : vector<16x1xf32> to vector<16x16xf32>
    %47 = arith.subf %43, %46 : vector<16x16xf32>
    %48 = math.exp %47 : vector<16x16xf32>
    %cst_26 = arith.constant dense<0.000000e+00> : vector<16xf32>
    %49 = vector.multi_reduction <add>, %48, %cst_26 [1] : vector<16x16xf32> to vector<16xf32>
    %50 = vector.shape_cast %49 : vector<16xf32> to vector<16x1xf32>
    %51 = tpu.reciprocal %50 {approx = true} : vector<16x1xf32> -> vector<16x1xf32>
    %52 = vector.broadcast %51 : vector<16x1xf32> to vector<16x16xf32>
    %53 = arith.mulf %48, %52 : vector<16x16xf32>
    %cst_27 = arith.constant dense<0.000000e+00> : vector<16x8xf32>
    %54 = tpu.matmul %53, %40, %cst_27 {dimension_numbers = #tpu.dot_dimension_numbers<[1], [0], [0], [1], [0, 0, 1, 1], [], []>} : vector<16x16xf32>, vector<16x8xf32>, vector<16x8xf32> -> vector<16x8xf32>
    %55 = vector.extract_strided_slice %32 {offsets = [0, 0], sizes = [8, 32], strides = [1, 1]} : vector<32x32xf32> to vector<8x32xf32>
    %cst_28 = arith.constant dense<0.000000e+00> : vector<16x32xf32>
    %56 = tpu.matmul %54, %55, %cst_28 {dimension_numbers = #tpu.dot_dimension_numbers<[1], [0], [0], [1], [0, 0, 1, 1], [], []>} : vector<16x8xf32>, vector<8x32xf32>, vector<16x32xf32> -> vector<16x32xf32>
    %57 = vector.broadcast %33 : vector<1x32xf32> to vector<16x32xf32>
    %58 = arith.addf %57, %56 : vector<16x32xf32>
    %59 = vector.extract_strided_slice %37 {offsets = [0, 8], sizes = [16, 8], strides = [1, 1]} : vector<16x96xf32> to vector<16x8xf32>
    %60 = vector.extract_strided_slice %37 {offsets = [0, 40], sizes = [16, 8], strides = [1, 1]} : vector<16x96xf32> to vector<16x8xf32>
    %61 = vector.extract_strided_slice %37 {offsets = [0, 72], sizes = [16, 8], strides = [1, 1]} : vector<16x96xf32> to vector<16x8xf32>
    %cst_29 = arith.constant dense<0.000000e+00> : vector<16x16xf32>
    %62 = tpu.matmul %59, %60, %cst_29 {dimension_numbers = #tpu.dot_dimension_numbers<[1], [1], [0], [0], [0, 0, 1, 0], [], []>} : vector<16x8xf32>, vector<16x8xf32>, vector<16x16xf32> -> vector<16x16xf32>
    %cst_30 = arith.constant 0.353553385 : f32
    %63 = vector.broadcast %cst_30 : f32 to vector<16x16xf32>
    %64 = arith.mulf %62, %63 : vector<16x16xf32>
    %cst_31 = arith.constant dense<0xFF800000> : vector<16xf32>
    %65 = vector.multi_reduction <maximumf>, %64, %cst_31 [1] : vector<16x16xf32> to vector<16xf32>
    %66 = vector.shape_cast %65 : vector<16xf32> to vector<16x1xf32>
    %67 = vector.broadcast %66 : vector<16x1xf32> to vector<16x16xf32>
    %68 = arith.subf %64, %67 : vector<16x16xf32>
    %69 = math.exp %68 : vector<16x16xf32>
    %cst_32 = arith.constant dense<0.000000e+00> : vector<16xf32>
    %70 = vector.multi_reduction <add>, %69, %cst_32 [1] : vector<16x16xf32> to vector<16xf32>
    %71 = vector.shape_cast %70 : vector<16xf32> to vector<16x1xf32>
    %72 = tpu.reciprocal %71 {approx = true} : vector<16x1xf32> -> vector<16x1xf32>
    %73 = vector.broadcast %72 : vector<16x1xf32> to vector<16x16xf32>
    %74 = arith.mulf %69, %73 : vector<16x16xf32>
    %cst_33 = arith.constant dense<0.000000e+00> : vector<16x8xf32>
    %75 = tpu.matmul %74, %61, %cst_33 {dimension_numbers = #tpu.dot_dimension_numbers<[1], [0], [0], [1], [0, 0, 1, 1], [], []>} : vector<16x16xf32>, vector<16x8xf32>, vector<16x8xf32> -> vector<16x8xf32>
    %76 = vector.extract_strided_slice %32 {offsets = [8, 0], sizes = [8, 32], strides = [1, 1]} : vector<32x32xf32> to vector<8x32xf32>
    %cst_34 = arith.constant dense<0.000000e+00> : vector<16x32xf32>
    %77 = tpu.matmul %75, %76, %cst_34 {dimension_numbers = #tpu.dot_dimension_numbers<[1], [0], [0], [1], [0, 0, 1, 1], [], []>} : vector<16x8xf32>, vector<8x32xf32>, vector<16x32xf32> -> vector<16x32xf32>
    %78 = arith.addf %58, %77 : vector<16x32xf32>
    %79 = vector.extract_strided_slice %37 {offsets = [0, 16], sizes = [16, 8], strides = [1, 1]} : vector<16x96xf32> to vector<16x8xf32>
    %80 = vector.extract_strided_slice %37 {offsets = [0, 48], sizes = [16, 8], strides = [1, 1]} : vector<16x96xf32> to vector<16x8xf32>
    %81 = vector.extract_strided_slice %37 {offsets = [0, 80], sizes = [16, 8], strides = [1, 1]} : vector<16x96xf32> to vector<16x8xf32>
    %cst_35 = arith.constant dense<0.000000e+00> : vector<16x16xf32>
    %82 = tpu.matmul %79, %80, %cst_35 {dimension_numbers = #tpu.dot_dimension_numbers<[1], [1], [0], [0], [0, 0, 1, 0], [], []>} : vector<16x8xf32>, vector<16x8xf32>, vector<16x16xf32> -> vector<16x16xf32>
    %cst_36 = arith.constant 0.353553385 : f32
    %83 = vector.broadcast %cst_36 : f32 to vector<16x16xf32>
    %84 = arith.mulf %82, %83 : vector<16x16xf32>
    %cst_37 = arith.constant dense<0xFF800000> : vector<16xf32>
    %85 = vector.multi_reduction <maximumf>, %84, %cst_37 [1] : vector<16x16xf32> to vector<16xf32>
    %86 = vector.shape_cast %85 : vector<16xf32> to vector<16x1xf32>
    %87 = vector.broadcast %86 : vector<16x1xf32> to vector<16x16xf32>
    %88 = arith.subf %84, %87 : vector<16x16xf32>
    %89 = math.exp %88 : vector<16x16xf32>
    %cst_38 = arith.constant dense<0.000000e+00> : vector<16xf32>
    %90 = vector.multi_reduction <add>, %89, %cst_38 [1] : vector<16x16xf32> to vector<16xf32>
    %91 = vector.shape_cast %90 : vector<16xf32> to vector<16x1xf32>
    %92 = tpu.reciprocal %91 {approx = true} : vector<16x1xf32> -> vector<16x1xf32>
    %93 = vector.broadcast %92 : vector<16x1xf32> to vector<16x16xf32>
    %94 = arith.mulf %89, %93 : vector<16x16xf32>
    %cst_39 = arith.constant dense<0.000000e+00> : vector<16x8xf32>
    %95 = tpu.matmul %94, %81, %cst_39 {dimension_numbers = #tpu.dot_dimension_numbers<[1], [0], [0], [1], [0, 0, 1, 1], [], []>} : vector<16x16xf32>, vector<16x8xf32>, vector<16x8xf32> -> vector<16x8xf32>
    %96 = vector.extract_strided_slice %32 {offsets = [16, 0], sizes = [8, 32], strides = [1, 1]} : vector<32x32xf32> to vector<8x32xf32>
    %cst_40 = arith.constant dense<0.000000e+00> : vector<16x32xf32>
    %97 = tpu.matmul %95, %96, %cst_40 {dimension_numbers = #tpu.dot_dimension_numbers<[1], [0], [0], [1], [0, 0, 1, 1], [], []>} : vector<16x8xf32>, vector<8x32xf32>, vector<16x32xf32> -> vector<16x32xf32>
    %98 = arith.addf %78, %97 : vector<16x32xf32>
    %99 = vector.extract_strided_slice %37 {offsets = [0, 24], sizes = [16, 8], strides = [1, 1]} : vector<16x96xf32> to vector<16x8xf32>
    %100 = vector.extract_strided_slice %37 {offsets = [0, 56], sizes = [16, 8], strides = [1, 1]} : vector<16x96xf32> to vector<16x8xf32>
    %101 = vector.extract_strided_slice %37 {offsets = [0, 88], sizes = [16, 8], strides = [1, 1]} : vector<16x96xf32> to vector<16x8xf32>
    %cst_41 = arith.constant dense<0.000000e+00> : vector<16x16xf32>
    %102 = tpu.matmul %99, %100, %cst_41 {dimension_numbers = #tpu.dot_dimension_numbers<[1], [1], [0], [0], [0, 0, 1, 0], [], []>} : vector<16x8xf32>, vector<16x8xf32>, vector<16x16xf32> -> vector<16x16xf32>
    %cst_42 = arith.constant 0.353553385 : f32
    %103 = vector.broadcast %cst_42 : f32 to vector<16x16xf32>
    %104 = arith.mulf %102, %103 : vector<16x16xf32>
    %cst_43 = arith.constant dense<0xFF800000> : vector<16xf32>
    %105 = vector.multi_reduction <maximumf>, %104, %cst_43 [1] : vector<16x16xf32> to vector<16xf32>
    %106 = vector.shape_cast %105 : vector<16xf32> to vector<16x1xf32>
    %107 = vector.broadcast %106 : vector<16x1xf32> to vector<16x16xf32>
    %108 = arith.subf %104, %107 : vector<16x16xf32>
    %109 = math.exp %108 : vector<16x16xf32>
    %cst_44 = arith.constant dense<0.000000e+00> : vector<16xf32>
    %110 = vector.multi_reduction <add>, %109, %cst_44 [1] : vector<16x16xf32> to vector<16xf32>
    %111 = vector.shape_cast %110 : vector<16xf32> to vector<16x1xf32>
    %112 = tpu.reciprocal %111 {approx = true} : vector<16x1xf32> -> vector<16x1xf32>
    %113 = vector.broadcast %112 : vector<16x1xf32> to vector<16x16xf32>
    %114 = arith.mulf %109, %113 : vector<16x16xf32>
    %cst_45 = arith.constant dense<0.000000e+00> : vector<16x8xf32>
    %115 = tpu.matmul %114, %101, %cst_45 {dimension_numbers = #tpu.dot_dimension_numbers<[1], [0], [0], [1], [0, 0, 1, 1], [], []>} : vector<16x16xf32>, vector<16x8xf32>, vector<16x8xf32> -> vector<16x8xf32>
    %116 = vector.extract_strided_slice %32 {offsets = [24, 0], sizes = [8, 32], strides = [1, 1]} : vector<32x32xf32> to vector<8x32xf32>
    %cst_46 = arith.constant dense<0.000000e+00> : vector<16x32xf32>
    %117 = tpu.matmul %115, %116, %cst_46 {dimension_numbers = #tpu.dot_dimension_numbers<[1], [0], [0], [1], [0, 0, 1, 1], [], []>} : vector<16x8xf32>, vector<8x32xf32>, vector<16x32xf32> -> vector<16x32xf32>
    %118 = arith.addf %98, %117 : vector<16x32xf32>
    %119 = vector.extract_strided_slice %36 {offsets = [16, 0], sizes = [16, 96], strides = [1, 1]} : vector<32x96xf32> to vector<16x96xf32>
    %120 = vector.extract_strided_slice %119 {offsets = [0, 0], sizes = [16, 8], strides = [1, 1]} : vector<16x96xf32> to vector<16x8xf32>
    %121 = vector.extract_strided_slice %119 {offsets = [0, 32], sizes = [16, 8], strides = [1, 1]} : vector<16x96xf32> to vector<16x8xf32>
    %122 = vector.extract_strided_slice %119 {offsets = [0, 64], sizes = [16, 8], strides = [1, 1]} : vector<16x96xf32> to vector<16x8xf32>
    %cst_47 = arith.constant dense<0.000000e+00> : vector<16x16xf32>
    %123 = tpu.matmul %120, %121, %cst_47 {dimension_numbers = #tpu.dot_dimension_numbers<[1], [1], [0], [0], [0, 0, 1, 0], [], []>} : vector<16x8xf32>, vector<16x8xf32>, vector<16x16xf32> -> vector<16x16xf32>
    %cst_48 = arith.constant 0.353553385 : f32
    %124 = vector.broadcast %cst_48 : f32 to vector<16x16xf32>
    %125 = arith.mulf %123, %124 : vector<16x16xf32>
    %cst_49 = arith.constant dense<0xFF800000> : vector<16xf32>
    %126 = vector.multi_reduction <maximumf>, %125, %cst_49 [1] : vector<16x16xf32> to vector<16xf32>
    %127 = vector.shape_cast %126 : vector<16xf32> to vector<16x1xf32>
    %128 = vector.broadcast %127 : vector<16x1xf32> to vector<16x16xf32>
    %129 = arith.subf %125, %128 : vector<16x16xf32>
    %130 = math.exp %129 : vector<16x16xf32>
    %cst_50 = arith.constant dense<0.000000e+00> : vector<16xf32>
    %131 = vector.multi_reduction <add>, %130, %cst_50 [1] : vector<16x16xf32> to vector<16xf32>
    %132 = vector.shape_cast %131 : vector<16xf32> to vector<16x1xf32>
    %133 = tpu.reciprocal %132 {approx = true} : vector<16x1xf32> -> vector<16x1xf32>
    %134 = vector.broadcast %133 : vector<16x1xf32> to vector<16x16xf32>
    %135 = arith.mulf %130, %134 : vector<16x16xf32>
    %cst_51 = arith.constant dense<0.000000e+00> : vector<16x8xf32>
    %136 = tpu.matmul %135, %122, %cst_51 {dimension_numbers = #tpu.dot_dimension_numbers<[1], [0], [0], [1], [0, 0, 1, 1], [], []>} : vector<16x16xf32>, vector<16x8xf32>, vector<16x8xf32> -> vector<16x8xf32>
    %137 = vector.extract_strided_slice %32 {offsets = [0, 0], sizes = [8, 32], strides = [1, 1]} : vector<32x32xf32> to vector<8x32xf32>
    %cst_52 = arith.constant dense<0.000000e+00> : vector<16x32xf32>
    %138 = tpu.matmul %136, %137, %cst_52 {dimension_numbers = #tpu.dot_dimension_numbers<[1], [0], [0], [1], [0, 0, 1, 1], [], []>} : vector<16x8xf32>, vector<8x32xf32>, vector<16x32xf32> -> vector<16x32xf32>
    %139 = vector.broadcast %33 : vector<1x32xf32> to vector<16x32xf32>
    %140 = arith.addf %139, %138 : vector<16x32xf32>
    %141 = vector.extract_strided_slice %119 {offsets = [0, 8], sizes = [16, 8], strides = [1, 1]} : vector<16x96xf32> to vector<16x8xf32>
    %142 = vector.extract_strided_slice %119 {offsets = [0, 40], sizes = [16, 8], strides = [1, 1]} : vector<16x96xf32> to vector<16x8xf32>
    %143 = vector.extract_strided_slice %119 {offsets = [0, 72], sizes = [16, 8], strides = [1, 1]} : vector<16x96xf32> to vector<16x8xf32>
    %cst_53 = arith.constant dense<0.000000e+00> : vector<16x16xf32>
    %144 = tpu.matmul %141, %142, %cst_53 {dimension_numbers = #tpu.dot_dimension_numbers<[1], [1], [0], [0], [0, 0, 1, 0], [], []>} : vector<16x8xf32>, vector<16x8xf32>, vector<16x16xf32> -> vector<16x16xf32>
    %cst_54 = arith.constant 0.353553385 : f32
    %145 = vector.broadcast %cst_54 : f32 to vector<16x16xf32>
    %146 = arith.mulf %144, %145 : vector<16x16xf32>
    %cst_55 = arith.constant dense<0xFF800000> : vector<16xf32>
    %147 = vector.multi_reduction <maximumf>, %146, %cst_55 [1] : vector<16x16xf32> to vector<16xf32>
    %148 = vector.shape_cast %147 : vector<16xf32> to vector<16x1xf32>
    %149 = vector.broadcast %148 : vector<16x1xf32> to vector<16x16xf32>
    %150 = arith.subf %146, %149 : vector<16x16xf32>
    %151 = math.exp %150 : vector<16x16xf32>
    %cst_56 = arith.constant dense<0.000000e+00> : vector<16xf32>
    %152 = vector.multi_reduction <add>, %151, %cst_56 [1] : vector<16x16xf32> to vector<16xf32>
    %153 = vector.shape_cast %152 : vector<16xf32> to vector<16x1xf32>
    %154 = tpu.reciprocal %153 {approx = true} : vector<16x1xf32> -> vector<16x1xf32>
    %155 = vector.broadcast %154 : vector<16x1xf32> to vector<16x16xf32>
    %156 = arith.mulf %151, %155 : vector<16x16xf32>
    %cst_57 = arith.constant dense<0.000000e+00> : vector<16x8xf32>
    %157 = tpu.matmul %156, %143, %cst_57 {dimension_numbers = #tpu.dot_dimension_numbers<[1], [0], [0], [1], [0, 0, 1, 1], [], []>} : vector<16x16xf32>, vector<16x8xf32>, vector<16x8xf32> -> vector<16x8xf32>
    %158 = vector.extract_strided_slice %32 {offsets = [8, 0], sizes = [8, 32], strides = [1, 1]} : vector<32x32xf32> to vector<8x32xf32>
    %cst_58 = arith.constant dense<0.000000e+00> : vector<16x32xf32>
    %159 = tpu.matmul %157, %158, %cst_58 {dimension_numbers = #tpu.dot_dimension_numbers<[1], [0], [0], [1], [0, 0, 1, 1], [], []>} : vector<16x8xf32>, vector<8x32xf32>, vector<16x32xf32> -> vector<16x32xf32>
    %160 = arith.addf %140, %159 : vector<16x32xf32>
    %161 = vector.extract_strided_slice %119 {offsets = [0, 16], sizes = [16, 8], strides = [1, 1]} : vector<16x96xf32> to vector<16x8xf32>
    %162 = vector.extract_strided_slice %119 {offsets = [0, 48], sizes = [16, 8], strides = [1, 1]} : vector<16x96xf32> to vector<16x8xf32>
    %163 = vector.extract_strided_slice %119 {offsets = [0, 80], sizes = [16, 8], strides = [1, 1]} : vector<16x96xf32> to vector<16x8xf32>
    %cst_59 = arith.constant dense<0.000000e+00> : vector<16x16xf32>
    %164 = tpu.matmul %161, %162, %cst_59 {dimension_numbers = #tpu.dot_dimension_numbers<[1], [1], [0], [0], [0, 0, 1, 0], [], []>} : vector<16x8xf32>, vector<16x8xf32>, vector<16x16xf32> -> vector<16x16xf32>
    %cst_60 = arith.constant 0.353553385 : f32
    %165 = vector.broadcast %cst_60 : f32 to vector<16x16xf32>
    %166 = arith.mulf %164, %165 : vector<16x16xf32>
    %cst_61 = arith.constant dense<0xFF800000> : vector<16xf32>
    %167 = vector.multi_reduction <maximumf>, %166, %cst_61 [1] : vector<16x16xf32> to vector<16xf32>
    %168 = vector.shape_cast %167 : vector<16xf32> to vector<16x1xf32>
    %169 = vector.broadcast %168 : vector<16x1xf32> to vector<16x16xf32>
    %170 = arith.subf %166, %169 : vector<16x16xf32>
    %171 = math.exp %170 : vector<16x16xf32>
    %cst_62 = arith.constant dense<0.000000e+00> : vector<16xf32>
    %172 = vector.multi_reduction <add>, %171, %cst_62 [1] : vector<16x16xf32> to vector<16xf32>
    %173 = vector.shape_cast %172 : vector<16xf32> to vector<16x1xf32>
    %174 = tpu.reciprocal %173 {approx = true} : vector<16x1xf32> -> vector<16x1xf32>
    %175 = vector.broadcast %174 : vector<16x1xf32> to vector<16x16xf32>
    %176 = arith.mulf %171, %175 : vector<16x16xf32>
    %cst_63 = arith.constant dense<0.000000e+00> : vector<16x8xf32>
    %177 = tpu.matmul %176, %163, %cst_63 {dimension_numbers = #tpu.dot_dimension_numbers<[1], [0], [0], [1], [0, 0, 1, 1], [], []>} : vector<16x16xf32>, vector<16x8xf32>, vector<16x8xf32> -> vector<16x8xf32>
    %178 = vector.extract_strided_slice %32 {offsets = [16, 0], sizes = [8, 32], strides = [1, 1]} : vector<32x32xf32> to vector<8x32xf32>
    %cst_64 = arith.constant dense<0.000000e+00> : vector<16x32xf32>
    %179 = tpu.matmul %177, %178, %cst_64 {dimension_numbers = #tpu.dot_dimension_numbers<[1], [0], [0], [1], [0, 0, 1, 1], [], []>} : vector<16x8xf32>, vector<8x32xf32>, vector<16x32xf32> -> vector<16x32xf32>
    %180 = arith.addf %160, %179 : vector<16x32xf32>
    %181 = vector.extract_strided_slice %119 {offsets = [0, 24], sizes = [16, 8], strides = [1, 1]} : vector<16x96xf32> to vector<16x8xf32>
    %182 = vector.extract_strided_slice %119 {offsets = [0, 56], sizes = [16, 8], strides = [1, 1]} : vector<16x96xf32> to vector<16x8xf32>
    %183 = vector.extract_strided_slice %119 {offsets = [0, 88], sizes = [16, 8], strides = [1, 1]} : vector<16x96xf32> to vector<16x8xf32>
    %cst_65 = arith.constant dense<0.000000e+00> : vector<16x16xf32>
    %184 = tpu.matmul %181, %182, %cst_65 {dimension_numbers = #tpu.dot_dimension_numbers<[1], [1], [0], [0], [0, 0, 1, 0], [], []>} : vector<16x8xf32>, vector<16x8xf32>, vector<16x16xf32> -> vector<16x16xf32>
    %cst_66 = arith.constant 0.353553385 : f32
    %185 = vector.broadcast %cst_66 : f32 to vector<16x16xf32>
    %186 = arith.mulf %184, %185 : vector<16x16xf32>
    %cst_67 = arith.constant dense<0xFF800000> : vector<16xf32>
    %187 = vector.multi_reduction <maximumf>, %186, %cst_67 [1] : vector<16x16xf32> to vector<16xf32>
    %188 = vector.shape_cast %187 : vector<16xf32> to vector<16x1xf32>
    %189 = vector.broadcast %188 : vector<16x1xf32> to vector<16x16xf32>
    %190 = arith.subf %186, %189 : vector<16x16xf32>
    %191 = math.exp %190 : vector<16x16xf32>
    %cst_68 = arith.constant dense<0.000000e+00> : vector<16xf32>
    %192 = vector.multi_reduction <add>, %191, %cst_68 [1] : vector<16x16xf32> to vector<16xf32>
    %193 = vector.shape_cast %192 : vector<16xf32> to vector<16x1xf32>
    %194 = tpu.reciprocal %193 {approx = true} : vector<16x1xf32> -> vector<16x1xf32>
    %195 = vector.broadcast %194 : vector<16x1xf32> to vector<16x16xf32>
    %196 = arith.mulf %191, %195 : vector<16x16xf32>
    %cst_69 = arith.constant dense<0.000000e+00> : vector<16x8xf32>
    %197 = tpu.matmul %196, %183, %cst_69 {dimension_numbers = #tpu.dot_dimension_numbers<[1], [0], [0], [1], [0, 0, 1, 1], [], []>} : vector<16x16xf32>, vector<16x8xf32>, vector<16x8xf32> -> vector<16x8xf32>
    %198 = vector.extract_strided_slice %32 {offsets = [24, 0], sizes = [8, 32], strides = [1, 1]} : vector<32x32xf32> to vector<8x32xf32>
    %cst_70 = arith.constant dense<0.000000e+00> : vector<16x32xf32>
    %199 = tpu.matmul %197, %198, %cst_70 {dimension_numbers = #tpu.dot_dimension_numbers<[1], [0], [0], [1], [0, 0, 1, 1], [], []>} : vector<16x8xf32>, vector<8x32xf32>, vector<16x32xf32> -> vector<16x32xf32>
    %200 = arith.addf %180, %199 : vector<16x32xf32>
    %201 = tpu.concatenate %118, %200 in 0 : vector<16x32xf32>, vector<16x32xf32> -> vector<32x32xf32>
    %202 = arith.addf %201, %5 : vector<32x32xf32>
    %c0_71 = arith.constant 0 : index
    %c0_72 = arith.constant 0 : index
    %203 = vector.load %arg9[%c0_71, %c0_72] : memref<1x32xf32, #tpu.memory_space<vmem>>, vector<1x32xf32>
    %c0_73 = arith.constant 0 : index
    %c0_74 = arith.constant 0 : index
    %204 = vector.load %arg10[%c0_73, %c0_74] : memref<1x32xf32, #tpu.memory_space<vmem>>, vector<1x32xf32>
    %cst_75 = arith.constant dense<0.000000e+00> : vector<32xf32>
    %205 = vector.multi_reduction <add>, %202, %cst_75 [1] : vector<32x32xf32> to vector<32xf32>
    %206 = vector.shape_cast %205 : vector<32xf32> to vector<32x1xf32>
    %cst_76 = arith.constant 3.200000e+01 : f32
    %207 = vector.broadcast %cst_76 : f32 to vector<32x1xf32>
    %208 = arith.divf %206, %207 : vector<32x1xf32>
    %209 = vector.broadcast %208 : vector<32x1xf32> to vector<32x32xf32>
    %210 = arith.subf %202, %209 : vector<32x32xf32>
    %211 = arith.mulf %210, %210 : vector<32x32xf32>
    %cst_77 = arith.constant dense<0.000000e+00> : vector<32xf32>
    %212 = vector.multi_reduction <add>, %211, %cst_77 [1] : vector<32x32xf32> to vector<32xf32>
    %213 = vector.shape_cast %212 : vector<32xf32> to vector<32x1xf32>
    %cst_78 = arith.constant 3.200000e+01 : f32
    %214 = vector.broadcast %cst_78 : f32 to vector<32x1xf32>
    %215 = arith.divf %213, %214 : vector<32x1xf32>
    %216 = vector.broadcast %208 : vector<32x1xf32> to vector<32x32xf32>
    %217 = arith.subf %202, %216 : vector<32x32xf32>
    %cst_79 = arith.constant 9.99999974E-6 : f32
    %218 = vector.broadcast %cst_79 : f32 to vector<32x1xf32>
    %219 = arith.addf %215, %218 : vector<32x1xf32>
    %220 = math.rsqrt %219 : vector<32x1xf32>
    %221 = vector.broadcast %220 : vector<32x1xf32> to vector<32x32xf32>
    %222 = arith.mulf %217, %221 : vector<32x32xf32>
    %223 = vector.broadcast %203 : vector<1x32xf32> to vector<32x32xf32>
    %224 = arith.mulf %222, %223 : vector<32x32xf32>
    %225 = vector.broadcast %204 : vector<1x32xf32> to vector<32x32xf32>
    %226 = arith.addf %224, %225 : vector<32x32xf32>
    %c0_80 = arith.constant 0 : index
    %c0_81 = arith.constant 0 : index
    %227 = vector.load %arg11[%c0_80, %c0_81] : memref<32x64xf32, #tpu.memory_space<vmem>>, vector<32x64xf32>
    %c0_82 = arith.constant 0 : index
    %c0_83 = arith.constant 0 : index
    %228 = vector.load %arg12[%c0_82, %c0_83] : memref<1x64xf32, #tpu.memory_space<vmem>>, vector<1x64xf32>
    %c0_84 = arith.constant 0 : index
    %c0_85 = arith.constant 0 : index
    %229 = vector.load %arg13[%c0_84, %c0_85] : memref<64x32xf32, #tpu.memory_space<vmem>>, vector<64x32xf32>
    %c0_86 = arith.constant 0 : index
    %c0_87 = arith.constant 0 : index
    %230 = vector.load %arg14[%c0_86, %c0_87] : memref<1x32xf32, #tpu.memory_space<vmem>>, vector<1x32xf32>
    %cst_88 = arith.constant dense<0.000000e+00> : vector<32x64xf32>
    %231 = tpu.matmul %226, %227, %cst_88 {dimension_numbers = #tpu.dot_dimension_numbers<[1], [0], [0], [1], [0, 0, 1, 1], [], []>} : vector<32x32xf32>, vector<32x64xf32>, vector<32x64xf32> -> vector<32x64xf32>
    %232 = vector.broadcast %228 : vector<1x64xf32> to vector<32x64xf32>
    %233 = arith.addf %231, %232 : vector<32x64xf32>
    %cst_89 = arith.constant 0.000000e+00 : f32
    %234 = vector.broadcast %cst_89 : f32 to vector<32x64xf32>
    %235 = arith.maximumf %233, %234 : vector<32x64xf32>
    %cst_90 = arith.constant dense<0.000000e+00> : vector<32x32xf32>
    %236 = tpu.matmul %235, %229, %cst_90 {dimension_numbers = #tpu.dot_dimension_numbers<[1], [0], [0], [1], [0, 0, 1, 1], [], []>} : vector<32x64xf32>, vector<64x32xf32>, vector<32x32xf32> -> vector<32x32xf32>
    %237 = vector.broadcast %230 : vector<1x32xf32> to vector<32x32xf32>
    %238 = arith.addf %236, %237 : vector<32x32xf32>
    %239 = arith.addf %238, %202 : vector<32x32xf32>
    %c0_91 = arith.constant 0 : index
    %c0_92 = arith.constant 0 : index
    %240 = vector.load %arg15[%c0_91, %c0_92] : memref<16x32xf32, #tpu.memory_space<vmem>>, vector<16x32xf32>
    %c0_93 = arith.constant 0 : index
    %c0_94 = arith.constant 0 : index
    %241 = vector.load %arg16[%c0_93, %c0_94] : memref<1x32xf32, #tpu.memory_space<vmem>>, vector<1x32xf32>
    %242 = vector.extract_strided_slice %239 {offsets = [0, 0], sizes = [16, 32], strides = [1, 1]} : vector<32x32xf32> to vector<16x32xf32>
    %243 = tpu.transpose %242, [1, 0] : vector<16x32xf32> -> vector<32x16xf32>
    %cst_95 = arith.constant dense<0.000000e+00> : vector<32x32xf32>
    %244 = tpu.matmul %243, %240, %cst_95 {dimension_numbers = #tpu.dot_dimension_numbers<[1], [0], [0], [1], [0, 0, 1, 1], [], []>} : vector<32x16xf32>, vector<16x32xf32>, vector<32x32xf32> -> vector<32x32xf32>
    %245 = vector.broadcast %241 : vector<1x32xf32> to vector<32x32xf32>
    %246 = arith.addf %244, %245 : vector<32x32xf32>
    %247 = vector.extract_strided_slice %239 {offsets = [16, 0], sizes = [16, 32], strides = [1, 1]} : vector<32x32xf32> to vector<16x32xf32>
    %248 = tpu.transpose %247, [1, 0] : vector<16x32xf32> -> vector<32x16xf32>
    %cst_96 = arith.constant dense<0.000000e+00> : vector<32x32xf32>
    %249 = tpu.matmul %248, %240, %cst_96 {dimension_numbers = #tpu.dot_dimension_numbers<[1], [0], [0], [1], [0, 0, 1, 1], [], []>} : vector<32x16xf32>, vector<16x32xf32>, vector<32x32xf32> -> vector<32x32xf32>
    %250 = vector.broadcast %241 : vector<1x32xf32> to vector<32x32xf32>
    %251 = arith.addf %249, %250 : vector<32x32xf32>
    %252 = tpu.concatenate %246, %251 in 0 : vector<32x32xf32>, vector<32x32xf32> -> vector<64x32xf32>
    %c0_97 = arith.constant 0 : index
    %c0_98 = arith.constant 0 : index
    %253 = vector.load %arg17[%c0_97, %c0_98] : memref<1x32xf32, #tpu.memory_space<vmem>>, vector<1x32xf32>
    %c0_99 = arith.constant 0 : index
    %c0_100 = arith.constant 0 : index
    %254 = vector.load %arg18[%c0_99, %c0_100] : memref<1x32xf32, #tpu.memory_space<vmem>>, vector<1x32xf32>
    %cst_101 = arith.constant dense<0.000000e+00> : vector<64xf32>
    %255 = vector.multi_reduction <add>, %252, %cst_101 [1] : vector<64x32xf32> to vector<64xf32>
    %256 = vector.shape_cast %255 : vector<64xf32> to vector<64x1xf32>
    %cst_102 = arith.constant 3.200000e+01 : f32
    %257 = vector.broadcast %cst_102 : f32 to vector<64x1xf32>
    %258 = arith.divf %256, %257 : vector<64x1xf32>
    %259 = vector.broadcast %258 : vector<64x1xf32> to vector<64x32xf32>
    %260 = arith.subf %252, %259 : vector<64x32xf32>
    %261 = arith.mulf %260, %260 : vector<64x32xf32>
    %cst_103 = arith.constant dense<0.000000e+00> : vector<64xf32>
    %262 = vector.multi_reduction <add>, %261, %cst_103 [1] : vector<64x32xf32> to vector<64xf32>
    %263 = vector.shape_cast %262 : vector<64xf32> to vector<64x1xf32>
    %cst_104 = arith.constant 3.200000e+01 : f32
    %264 = vector.broadcast %cst_104 : f32 to vector<64x1xf32>
    %265 = arith.divf %263, %264 : vector<64x1xf32>
    %266 = vector.broadcast %258 : vector<64x1xf32> to vector<64x32xf32>
    %267 = arith.subf %252, %266 : vector<64x32xf32>
    %cst_105 = arith.constant 9.99999974E-6 : f32
    %268 = vector.broadcast %cst_105 : f32 to vector<64x1xf32>
    %269 = arith.addf %265, %268 : vector<64x1xf32>
    %270 = math.rsqrt %269 : vector<64x1xf32>
    %271 = vector.broadcast %270 : vector<64x1xf32> to vector<64x32xf32>
    %272 = arith.mulf %267, %271 : vector<64x32xf32>
    %273 = vector.broadcast %253 : vector<1x32xf32> to vector<64x32xf32>
    %274 = arith.mulf %272, %273 : vector<64x32xf32>
    %275 = vector.broadcast %254 : vector<1x32xf32> to vector<64x32xf32>
    %276 = arith.addf %274, %275 : vector<64x32xf32>
    %c0_106 = arith.constant 0 : index
    %c0_107 = arith.constant 0 : index
    %277 = vector.load %arg19[%c0_106, %c0_107] : memref<32x96xf32, #tpu.memory_space<vmem>>, vector<32x96xf32>
    %c0_108 = arith.constant 0 : index
    %c0_109 = arith.constant 0 : index
    %278 = vector.load %arg20[%c0_108, %c0_109] : memref<1x96xf32, #tpu.memory_space<vmem>>, vector<1x96xf32>
    %c0_110 = arith.constant 0 : index
    %c0_111 = arith.constant 0 : index
    %279 = vector.load %arg21[%c0_110, %c0_111] : memref<32x32xf32, #tpu.memory_space<vmem>>, vector<32x32xf32>
    %c0_112 = arith.constant 0 : index
    %c0_113 = arith.constant 0 : index
    %280 = vector.load %arg22[%c0_112, %c0_113] : memref<1x32xf32, #tpu.memory_space<vmem>>, vector<1x32xf32>
    %cst_114 = arith.constant dense<0.000000e+00> : vector<64x96xf32>
    %281 = tpu.matmul %276, %277, %cst_114 {dimension_numbers = #tpu.dot_dimension_numbers<[1], [0], [0], [1], [0, 0, 1, 1], [], []>} : vector<64x32xf32>, vector<32x96xf32>, vector<64x96xf32> -> vector<64x96xf32>
    %282 = vector.broadcast %278 : vector<1x96xf32> to vector<64x96xf32>
    %283 = arith.addf %281, %282 : vector<64x96xf32>
    %284 = vector.extract_strided_slice %283 {offsets = [0, 0], sizes = [32, 96], strides = [1, 1]} : vector<64x96xf32> to vector<32x96xf32>
    %285 = vector.extract_strided_slice %284 {offsets = [0, 0], sizes = [32, 8], strides = [1, 1]} : vector<32x96xf32> to vector<32x8xf32>
    %286 = vector.extract_strided_slice %284 {offsets = [0, 32], sizes = [32, 8], strides = [1, 1]} : vector<32x96xf32> to vector<32x8xf32>
    %287 = vector.extract_strided_slice %284 {offsets = [0, 64], sizes = [32, 8], strides = [1, 1]} : vector<32x96xf32> to vector<32x8xf32>
    %cst_115 = arith.constant dense<0.000000e+00> : vector<32x32xf32>
    %288 = tpu.matmul %285, %286, %cst_115 {dimension_numbers = #tpu.dot_dimension_numbers<[1], [1], [0], [0], [0, 0, 1, 0], [], []>} : vector<32x8xf32>, vector<32x8xf32>, vector<32x32xf32> -> vector<32x32xf32>
    %cst_116 = arith.constant 0.353553385 : f32
    %289 = vector.broadcast %cst_116 : f32 to vector<32x32xf32>
    %290 = arith.mulf %288, %289 : vector<32x32xf32>
    %cst_117 = arith.constant dense<0xFF800000> : vector<32xf32>
    %291 = vector.multi_reduction <maximumf>, %290, %cst_117 [1] : vector<32x32xf32> to vector<32xf32>
    %292 = vector.shape_cast %291 : vector<32xf32> to vector<32x1xf32>
    %293 = vector.broadcast %292 : vector<32x1xf32> to vector<32x32xf32>
    %294 = arith.subf %290, %293 : vector<32x32xf32>
    %295 = math.exp %294 : vector<32x32xf32>
    %cst_118 = arith.constant dense<0.000000e+00> : vector<32xf32>
    %296 = vector.multi_reduction <add>, %295, %cst_118 [1] : vector<32x32xf32> to vector<32xf32>
    %297 = vector.shape_cast %296 : vector<32xf32> to vector<32x1xf32>
    %298 = tpu.reciprocal %297 {approx = true} : vector<32x1xf32> -> vector<32x1xf32>
    %299 = vector.broadcast %298 : vector<32x1xf32> to vector<32x32xf32>
    %300 = arith.mulf %295, %299 : vector<32x32xf32>
    %cst_119 = arith.constant dense<0.000000e+00> : vector<32x8xf32>
    %301 = tpu.matmul %300, %287, %cst_119 {dimension_numbers = #tpu.dot_dimension_numbers<[1], [0], [0], [1], [0, 0, 1, 1], [], []>} : vector<32x32xf32>, vector<32x8xf32>, vector<32x8xf32> -> vector<32x8xf32>
    %302 = vector.extract_strided_slice %279 {offsets = [0, 0], sizes = [8, 32], strides = [1, 1]} : vector<32x32xf32> to vector<8x32xf32>
    %cst_120 = arith.constant dense<0.000000e+00> : vector<32x32xf32>
    %303 = tpu.matmul %301, %302, %cst_120 {dimension_numbers = #tpu.dot_dimension_numbers<[1], [0], [0], [1], [0, 0, 1, 1], [], []>} : vector<32x8xf32>, vector<8x32xf32>, vector<32x32xf32> -> vector<32x32xf32>
    %304 = vector.broadcast %280 : vector<1x32xf32> to vector<32x32xf32>
    %305 = arith.addf %304, %303 : vector<32x32xf32>
    %306 = vector.extract_strided_slice %284 {offsets = [0, 8], sizes = [32, 8], strides = [1, 1]} : vector<32x96xf32> to vector<32x8xf32>
    %307 = vector.extract_strided_slice %284 {offsets = [0, 40], sizes = [32, 8], strides = [1, 1]} : vector<32x96xf32> to vector<32x8xf32>
    %308 = vector.extract_strided_slice %284 {offsets = [0, 72], sizes = [32, 8], strides = [1, 1]} : vector<32x96xf32> to vector<32x8xf32>
    %cst_121 = arith.constant dense<0.000000e+00> : vector<32x32xf32>
    %309 = tpu.matmul %306, %307, %cst_121 {dimension_numbers = #tpu.dot_dimension_numbers<[1], [1], [0], [0], [0, 0, 1, 0], [], []>} : vector<32x8xf32>, vector<32x8xf32>, vector<32x32xf32> -> vector<32x32xf32>
    %cst_122 = arith.constant 0.353553385 : f32
    %310 = vector.broadcast %cst_122 : f32 to vector<32x32xf32>
    %311 = arith.mulf %309, %310 : vector<32x32xf32>
    %cst_123 = arith.constant dense<0xFF800000> : vector<32xf32>
    %312 = vector.multi_reduction <maximumf>, %311, %cst_123 [1] : vector<32x32xf32> to vector<32xf32>
    %313 = vector.shape_cast %312 : vector<32xf32> to vector<32x1xf32>
    %314 = vector.broadcast %313 : vector<32x1xf32> to vector<32x32xf32>
    %315 = arith.subf %311, %314 : vector<32x32xf32>
    %316 = math.exp %315 : vector<32x32xf32>
    %cst_124 = arith.constant dense<0.000000e+00> : vector<32xf32>
    %317 = vector.multi_reduction <add>, %316, %cst_124 [1] : vector<32x32xf32> to vector<32xf32>
    %318 = vector.shape_cast %317 : vector<32xf32> to vector<32x1xf32>
    %319 = tpu.reciprocal %318 {approx = true} : vector<32x1xf32> -> vector<32x1xf32>
    %320 = vector.broadcast %319 : vector<32x1xf32> to vector<32x32xf32>
    %321 = arith.mulf %316, %320 : vector<32x32xf32>
    %cst_125 = arith.constant dense<0.000000e+00> : vector<32x8xf32>
    %322 = tpu.matmul %321, %308, %cst_125 {dimension_numbers = #tpu.dot_dimension_numbers<[1], [0], [0], [1], [0, 0, 1, 1], [], []>} : vector<32x32xf32>, vector<32x8xf32>, vector<32x8xf32> -> vector<32x8xf32>
    %323 = vector.extract_strided_slice %279 {offsets = [8, 0], sizes = [8, 32], strides = [1, 1]} : vector<32x32xf32> to vector<8x32xf32>
    %cst_126 = arith.constant dense<0.000000e+00> : vector<32x32xf32>
    %324 = tpu.matmul %322, %323, %cst_126 {dimension_numbers = #tpu.dot_dimension_numbers<[1], [0], [0], [1], [0, 0, 1, 1], [], []>} : vector<32x8xf32>, vector<8x32xf32>, vector<32x32xf32> -> vector<32x32xf32>
    %325 = arith.addf %305, %324 : vector<32x32xf32>
    %326 = vector.extract_strided_slice %284 {offsets = [0, 16], sizes = [32, 8], strides = [1, 1]} : vector<32x96xf32> to vector<32x8xf32>
    %327 = vector.extract_strided_slice %284 {offsets = [0, 48], sizes = [32, 8], strides = [1, 1]} : vector<32x96xf32> to vector<32x8xf32>
    %328 = vector.extract_strided_slice %284 {offsets = [0, 80], sizes = [32, 8], strides = [1, 1]} : vector<32x96xf32> to vector<32x8xf32>
    %cst_127 = arith.constant dense<0.000000e+00> : vector<32x32xf32>
    %329 = tpu.matmul %326, %327, %cst_127 {dimension_numbers = #tpu.dot_dimension_numbers<[1], [1], [0], [0], [0, 0, 1, 0], [], []>} : vector<32x8xf32>, vector<32x8xf32>, vector<32x32xf32> -> vector<32x32xf32>
    %cst_128 = arith.constant 0.353553385 : f32
    %330 = vector.broadcast %cst_128 : f32 to vector<32x32xf32>
    %331 = arith.mulf %329, %330 : vector<32x32xf32>
    %cst_129 = arith.constant dense<0xFF800000> : vector<32xf32>
    %332 = vector.multi_reduction <maximumf>, %331, %cst_129 [1] : vector<32x32xf32> to vector<32xf32>
    %333 = vector.shape_cast %332 : vector<32xf32> to vector<32x1xf32>
    %334 = vector.broadcast %333 : vector<32x1xf32> to vector<32x32xf32>
    %335 = arith.subf %331, %334 : vector<32x32xf32>
    %336 = math.exp %335 : vector<32x32xf32>
    %cst_130 = arith.constant dense<0.000000e+00> : vector<32xf32>
    %337 = vector.multi_reduction <add>, %336, %cst_130 [1] : vector<32x32xf32> to vector<32xf32>
    %338 = vector.shape_cast %337 : vector<32xf32> to vector<32x1xf32>
    %339 = tpu.reciprocal %338 {approx = true} : vector<32x1xf32> -> vector<32x1xf32>
    %340 = vector.broadcast %339 : vector<32x1xf32> to vector<32x32xf32>
    %341 = arith.mulf %336, %340 : vector<32x32xf32>
    %cst_131 = arith.constant dense<0.000000e+00> : vector<32x8xf32>
    %342 = tpu.matmul %341, %328, %cst_131 {dimension_numbers = #tpu.dot_dimension_numbers<[1], [0], [0], [1], [0, 0, 1, 1], [], []>} : vector<32x32xf32>, vector<32x8xf32>, vector<32x8xf32> -> vector<32x8xf32>
    %343 = vector.extract_strided_slice %279 {offsets = [16, 0], sizes = [8, 32], strides = [1, 1]} : vector<32x32xf32> to vector<8x32xf32>
    %cst_132 = arith.constant dense<0.000000e+00> : vector<32x32xf32>
    %344 = tpu.matmul %342, %343, %cst_132 {dimension_numbers = #tpu.dot_dimension_numbers<[1], [0], [0], [1], [0, 0, 1, 1], [], []>} : vector<32x8xf32>, vector<8x32xf32>, vector<32x32xf32> -> vector<32x32xf32>
    %345 = arith.addf %325, %344 : vector<32x32xf32>
    %346 = vector.extract_strided_slice %284 {offsets = [0, 24], sizes = [32, 8], strides = [1, 1]} : vector<32x96xf32> to vector<32x8xf32>
    %347 = vector.extract_strided_slice %284 {offsets = [0, 56], sizes = [32, 8], strides = [1, 1]} : vector<32x96xf32> to vector<32x8xf32>
    %348 = vector.extract_strided_slice %284 {offsets = [0, 88], sizes = [32, 8], strides = [1, 1]} : vector<32x96xf32> to vector<32x8xf32>
    %cst_133 = arith.constant dense<0.000000e+00> : vector<32x32xf32>
    %349 = tpu.matmul %346, %347, %cst_133 {dimension_numbers = #tpu.dot_dimension_numbers<[1], [1], [0], [0], [0, 0, 1, 0], [], []>} : vector<32x8xf32>, vector<32x8xf32>, vector<32x32xf32> -> vector<32x32xf32>
    %cst_134 = arith.constant 0.353553385 : f32
    %350 = vector.broadcast %cst_134 : f32 to vector<32x32xf32>
    %351 = arith.mulf %349, %350 : vector<32x32xf32>
    %cst_135 = arith.constant dense<0xFF800000> : vector<32xf32>
    %352 = vector.multi_reduction <maximumf>, %351, %cst_135 [1] : vector<32x32xf32> to vector<32xf32>
    %353 = vector.shape_cast %352 : vector<32xf32> to vector<32x1xf32>
    %354 = vector.broadcast %353 : vector<32x1xf32> to vector<32x32xf32>
    %355 = arith.subf %351, %354 : vector<32x32xf32>
    %356 = math.exp %355 : vector<32x32xf32>
    %cst_136 = arith.constant dense<0.000000e+00> : vector<32xf32>
    %357 = vector.multi_reduction <add>, %356, %cst_136 [1] : vector<32x32xf32> to vector<32xf32>
    %358 = vector.shape_cast %357 : vector<32xf32> to vector<32x1xf32>
    %359 = tpu.reciprocal %358 {approx = true} : vector<32x1xf32> -> vector<32x1xf32>
    %360 = vector.broadcast %359 : vector<32x1xf32> to vector<32x32xf32>
    %361 = arith.mulf %356, %360 : vector<32x32xf32>
    %cst_137 = arith.constant dense<0.000000e+00> : vector<32x8xf32>
    %362 = tpu.matmul %361, %348, %cst_137 {dimension_numbers = #tpu.dot_dimension_numbers<[1], [0], [0], [1], [0, 0, 1, 1], [], []>} : vector<32x32xf32>, vector<32x8xf32>, vector<32x8xf32> -> vector<32x8xf32>
    %363 = vector.extract_strided_slice %279 {offsets = [24, 0], sizes = [8, 32], strides = [1, 1]} : vector<32x32xf32> to vector<8x32xf32>
    %cst_138 = arith.constant dense<0.000000e+00> : vector<32x32xf32>
    %364 = tpu.matmul %362, %363, %cst_138 {dimension_numbers = #tpu.dot_dimension_numbers<[1], [0], [0], [1], [0, 0, 1, 1], [], []>} : vector<32x8xf32>, vector<8x32xf32>, vector<32x32xf32> -> vector<32x32xf32>
    %365 = arith.addf %345, %364 : vector<32x32xf32>
    %366 = vector.extract_strided_slice %283 {offsets = [32, 0], sizes = [32, 96], strides = [1, 1]} : vector<64x96xf32> to vector<32x96xf32>
    %367 = vector.extract_strided_slice %366 {offsets = [0, 0], sizes = [32, 8], strides = [1, 1]} : vector<32x96xf32> to vector<32x8xf32>
    %368 = vector.extract_strided_slice %366 {offsets = [0, 32], sizes = [32, 8], strides = [1, 1]} : vector<32x96xf32> to vector<32x8xf32>
    %369 = vector.extract_strided_slice %366 {offsets = [0, 64], sizes = [32, 8], strides = [1, 1]} : vector<32x96xf32> to vector<32x8xf32>
    %cst_139 = arith.constant dense<0.000000e+00> : vector<32x32xf32>
    %370 = tpu.matmul %367, %368, %cst_139 {dimension_numbers = #tpu.dot_dimension_numbers<[1], [1], [0], [0], [0, 0, 1, 0], [], []>} : vector<32x8xf32>, vector<32x8xf32>, vector<32x32xf32> -> vector<32x32xf32>
    %cst_140 = arith.constant 0.353553385 : f32
    %371 = vector.broadcast %cst_140 : f32 to vector<32x32xf32>
    %372 = arith.mulf %370, %371 : vector<32x32xf32>
    %cst_141 = arith.constant dense<0xFF800000> : vector<32xf32>
    %373 = vector.multi_reduction <maximumf>, %372, %cst_141 [1] : vector<32x32xf32> to vector<32xf32>
    %374 = vector.shape_cast %373 : vector<32xf32> to vector<32x1xf32>
    %375 = vector.broadcast %374 : vector<32x1xf32> to vector<32x32xf32>
    %376 = arith.subf %372, %375 : vector<32x32xf32>
    %377 = math.exp %376 : vector<32x32xf32>
    %cst_142 = arith.constant dense<0.000000e+00> : vector<32xf32>
    %378 = vector.multi_reduction <add>, %377, %cst_142 [1] : vector<32x32xf32> to vector<32xf32>
    %379 = vector.shape_cast %378 : vector<32xf32> to vector<32x1xf32>
    %380 = tpu.reciprocal %379 {approx = true} : vector<32x1xf32> -> vector<32x1xf32>
    %381 = vector.broadcast %380 : vector<32x1xf32> to vector<32x32xf32>
    %382 = arith.mulf %377, %381 : vector<32x32xf32>
    %cst_143 = arith.constant dense<0.000000e+00> : vector<32x8xf32>
    %383 = tpu.matmul %382, %369, %cst_143 {dimension_numbers = #tpu.dot_dimension_numbers<[1], [0], [0], [1], [0, 0, 1, 1], [], []>} : vector<32x32xf32>, vector<32x8xf32>, vector<32x8xf32> -> vector<32x8xf32>
    %384 = vector.extract_strided_slice %279 {offsets = [0, 0], sizes = [8, 32], strides = [1, 1]} : vector<32x32xf32> to vector<8x32xf32>
    %cst_144 = arith.constant dense<0.000000e+00> : vector<32x32xf32>
    %385 = tpu.matmul %383, %384, %cst_144 {dimension_numbers = #tpu.dot_dimension_numbers<[1], [0], [0], [1], [0, 0, 1, 1], [], []>} : vector<32x8xf32>, vector<8x32xf32>, vector<32x32xf32> -> vector<32x32xf32>
    %386 = vector.broadcast %280 : vector<1x32xf32> to vector<32x32xf32>
    %387 = arith.addf %386, %385 : vector<32x32xf32>
    %388 = vector.extract_strided_slice %366 {offsets = [0, 8], sizes = [32, 8], strides = [1, 1]} : vector<32x96xf32> to vector<32x8xf32>
    %389 = vector.extract_strided_slice %366 {offsets = [0, 40], sizes = [32, 8], strides = [1, 1]} : vector<32x96xf32> to vector<32x8xf32>
    %390 = vector.extract_strided_slice %366 {offsets = [0, 72], sizes = [32, 8], strides = [1, 1]} : vector<32x96xf32> to vector<32x8xf32>
    %cst_145 = arith.constant dense<0.000000e+00> : vector<32x32xf32>
    %391 = tpu.matmul %388, %389, %cst_145 {dimension_numbers = #tpu.dot_dimension_numbers<[1], [1], [0], [0], [0, 0, 1, 0], [], []>} : vector<32x8xf32>, vector<32x8xf32>, vector<32x32xf32> -> vector<32x32xf32>
    %cst_146 = arith.constant 0.353553385 : f32
    %392 = vector.broadcast %cst_146 : f32 to vector<32x32xf32>
    %393 = arith.mulf %391, %392 : vector<32x32xf32>
    %cst_147 = arith.constant dense<0xFF800000> : vector<32xf32>
    %394 = vector.multi_reduction <maximumf>, %393, %cst_147 [1] : vector<32x32xf32> to vector<32xf32>
    %395 = vector.shape_cast %394 : vector<32xf32> to vector<32x1xf32>
    %396 = vector.broadcast %395 : vector<32x1xf32> to vector<32x32xf32>
    %397 = arith.subf %393, %396 : vector<32x32xf32>
    %398 = math.exp %397 : vector<32x32xf32>
    %cst_148 = arith.constant dense<0.000000e+00> : vector<32xf32>
    %399 = vector.multi_reduction <add>, %398, %cst_148 [1] : vector<32x32xf32> to vector<32xf32>
    %400 = vector.shape_cast %399 : vector<32xf32> to vector<32x1xf32>
    %401 = tpu.reciprocal %400 {approx = true} : vector<32x1xf32> -> vector<32x1xf32>
    %402 = vector.broadcast %401 : vector<32x1xf32> to vector<32x32xf32>
    %403 = arith.mulf %398, %402 : vector<32x32xf32>
    %cst_149 = arith.constant dense<0.000000e+00> : vector<32x8xf32>
    %404 = tpu.matmul %403, %390, %cst_149 {dimension_numbers = #tpu.dot_dimension_numbers<[1], [0], [0], [1], [0, 0, 1, 1], [], []>} : vector<32x32xf32>, vector<32x8xf32>, vector<32x8xf32> -> vector<32x8xf32>
    %405 = vector.extract_strided_slice %279 {offsets = [8, 0], sizes = [8, 32], strides = [1, 1]} : vector<32x32xf32> to vector<8x32xf32>
    %cst_150 = arith.constant dense<0.000000e+00> : vector<32x32xf32>
    %406 = tpu.matmul %404, %405, %cst_150 {dimension_numbers = #tpu.dot_dimension_numbers<[1], [0], [0], [1], [0, 0, 1, 1], [], []>} : vector<32x8xf32>, vector<8x32xf32>, vector<32x32xf32> -> vector<32x32xf32>
    %407 = arith.addf %387, %406 : vector<32x32xf32>
    %408 = vector.extract_strided_slice %366 {offsets = [0, 16], sizes = [32, 8], strides = [1, 1]} : vector<32x96xf32> to vector<32x8xf32>
    %409 = vector.extract_strided_slice %366 {offsets = [0, 48], sizes = [32, 8], strides = [1, 1]} : vector<32x96xf32> to vector<32x8xf32>
    %410 = vector.extract_strided_slice %366 {offsets = [0, 80], sizes = [32, 8], strides = [1, 1]} : vector<32x96xf32> to vector<32x8xf32>
    %cst_151 = arith.constant dense<0.000000e+00> : vector<32x32xf32>
    %411 = tpu.matmul %408, %409, %cst_151 {dimension_numbers = #tpu.dot_dimension_numbers<[1], [1], [0], [0], [0, 0, 1, 0], [], []>} : vector<32x8xf32>, vector<32x8xf32>, vector<32x32xf32> -> vector<32x32xf32>
    %cst_152 = arith.constant 0.353553385 : f32
    %412 = vector.broadcast %cst_152 : f32 to vector<32x32xf32>
    %413 = arith.mulf %411, %412 : vector<32x32xf32>
    %cst_153 = arith.constant dense<0xFF800000> : vector<32xf32>
    %414 = vector.multi_reduction <maximumf>, %413, %cst_153 [1] : vector<32x32xf32> to vector<32xf32>
    %415 = vector.shape_cast %414 : vector<32xf32> to vector<32x1xf32>
    %416 = vector.broadcast %415 : vector<32x1xf32> to vector<32x32xf32>
    %417 = arith.subf %413, %416 : vector<32x32xf32>
    %418 = math.exp %417 : vector<32x32xf32>
    %cst_154 = arith.constant dense<0.000000e+00> : vector<32xf32>
    %419 = vector.multi_reduction <add>, %418, %cst_154 [1] : vector<32x32xf32> to vector<32xf32>
    %420 = vector.shape_cast %419 : vector<32xf32> to vector<32x1xf32>
    %421 = tpu.reciprocal %420 {approx = true} : vector<32x1xf32> -> vector<32x1xf32>
    %422 = vector.broadcast %421 : vector<32x1xf32> to vector<32x32xf32>
    %423 = arith.mulf %418, %422 : vector<32x32xf32>
    %cst_155 = arith.constant dense<0.000000e+00> : vector<32x8xf32>
    %424 = tpu.matmul %423, %410, %cst_155 {dimension_numbers = #tpu.dot_dimension_numbers<[1], [0], [0], [1], [0, 0, 1, 1], [], []>} : vector<32x32xf32>, vector<32x8xf32>, vector<32x8xf32> -> vector<32x8xf32>
    %425 = vector.extract_strided_slice %279 {offsets = [16, 0], sizes = [8, 32], strides = [1, 1]} : vector<32x32xf32> to vector<8x32xf32>
    %cst_156 = arith.constant dense<0.000000e+00> : vector<32x32xf32>
    %426 = tpu.matmul %424, %425, %cst_156 {dimension_numbers = #tpu.dot_dimension_numbers<[1], [0], [0], [1], [0, 0, 1, 1], [], []>} : vector<32x8xf32>, vector<8x32xf32>, vector<32x32xf32> -> vector<32x32xf32>
    %427 = arith.addf %407, %426 : vector<32x32xf32>
    %428 = vector.extract_strided_slice %366 {offsets = [0, 24], sizes = [32, 8], strides = [1, 1]} : vector<32x96xf32> to vector<32x8xf32>
    %429 = vector.extract_strided_slice %366 {offsets = [0, 56], sizes = [32, 8], strides = [1, 1]} : vector<32x96xf32> to vector<32x8xf32>
    %430 = vector.extract_strided_slice %366 {offsets = [0, 88], sizes = [32, 8], strides = [1, 1]} : vector<32x96xf32> to vector<32x8xf32>
    %cst_157 = arith.constant dense<0.000000e+00> : vector<32x32xf32>
    %431 = tpu.matmul %428, %429, %cst_157 {dimension_numbers = #tpu.dot_dimension_numbers<[1], [1], [0], [0], [0, 0, 1, 0], [], []>} : vector<32x8xf32>, vector<32x8xf32>, vector<32x32xf32> -> vector<32x32xf32>
    %cst_158 = arith.constant 0.353553385 : f32
    %432 = vector.broadcast %cst_158 : f32 to vector<32x32xf32>
    %433 = arith.mulf %431, %432 : vector<32x32xf32>
    %cst_159 = arith.constant dense<0xFF800000> : vector<32xf32>
    %434 = vector.multi_reduction <maximumf>, %433, %cst_159 [1] : vector<32x32xf32> to vector<32xf32>
    %435 = vector.shape_cast %434 : vector<32xf32> to vector<32x1xf32>
    %436 = vector.broadcast %435 : vector<32x1xf32> to vector<32x32xf32>
    %437 = arith.subf %433, %436 : vector<32x32xf32>
    %438 = math.exp %437 : vector<32x32xf32>
    %cst_160 = arith.constant dense<0.000000e+00> : vector<32xf32>
    %439 = vector.multi_reduction <add>, %438, %cst_160 [1] : vector<32x32xf32> to vector<32xf32>
    %440 = vector.shape_cast %439 : vector<32xf32> to vector<32x1xf32>
    %441 = tpu.reciprocal %440 {approx = true} : vector<32x1xf32> -> vector<32x1xf32>
    %442 = vector.broadcast %441 : vector<32x1xf32> to vector<32x32xf32>
    %443 = arith.mulf %438, %442 : vector<32x32xf32>
    %cst_161 = arith.constant dense<0.000000e+00> : vector<32x8xf32>
    %444 = tpu.matmul %443, %430, %cst_161 {dimension_numbers = #tpu.dot_dimension_numbers<[1], [0], [0], [1], [0, 0, 1, 1], [], []>} : vector<32x32xf32>, vector<32x8xf32>, vector<32x8xf32> -> vector<32x8xf32>
    %445 = vector.extract_strided_slice %279 {offsets = [24, 0], sizes = [8, 32], strides = [1, 1]} : vector<32x32xf32> to vector<8x32xf32>
    %cst_162 = arith.constant dense<0.000000e+00> : vector<32x32xf32>
    %446 = tpu.matmul %444, %445, %cst_162 {dimension_numbers = #tpu.dot_dimension_numbers<[1], [0], [0], [1], [0, 0, 1, 1], [], []>} : vector<32x8xf32>, vector<8x32xf32>, vector<32x32xf32> -> vector<32x32xf32>
    %447 = arith.addf %427, %446 : vector<32x32xf32>
    %448 = tpu.concatenate %365, %447 in 0 : vector<32x32xf32>, vector<32x32xf32> -> vector<64x32xf32>
    %449 = arith.addf %448, %252 : vector<64x32xf32>
    %c0_163 = arith.constant 0 : index
    %c0_164 = arith.constant 0 : index
    %450 = vector.load %arg23[%c0_163, %c0_164] : memref<1x32xf32, #tpu.memory_space<vmem>>, vector<1x32xf32>
    %c0_165 = arith.constant 0 : index
    %c0_166 = arith.constant 0 : index
    %451 = vector.load %arg24[%c0_165, %c0_166] : memref<1x32xf32, #tpu.memory_space<vmem>>, vector<1x32xf32>
    %cst_167 = arith.constant dense<0.000000e+00> : vector<64xf32>
    %452 = vector.multi_reduction <add>, %449, %cst_167 [1] : vector<64x32xf32> to vector<64xf32>
    %453 = vector.shape_cast %452 : vector<64xf32> to vector<64x1xf32>
    %cst_168 = arith.constant 3.200000e+01 : f32
    %454 = vector.broadcast %cst_168 : f32 to vector<64x1xf32>
    %455 = arith.divf %453, %454 : vector<64x1xf32>
    %456 = vector.broadcast %455 : vector<64x1xf32> to vector<64x32xf32>
    %457 = arith.subf %449, %456 : vector<64x32xf32>
    %458 = arith.mulf %457, %457 : vector<64x32xf32>
    %cst_169 = arith.constant dense<0.000000e+00> : vector<64xf32>
    %459 = vector.multi_reduction <add>, %458, %cst_169 [1] : vector<64x32xf32> to vector<64xf32>
    %460 = vector.shape_cast %459 : vector<64xf32> to vector<64x1xf32>
    %cst_170 = arith.constant 3.200000e+01 : f32
    %461 = vector.broadcast %cst_170 : f32 to vector<64x1xf32>
    %462 = arith.divf %460, %461 : vector<64x1xf32>
    %463 = vector.broadcast %455 : vector<64x1xf32> to vector<64x32xf32>
    %464 = arith.subf %449, %463 : vector<64x32xf32>
    %cst_171 = arith.constant 9.99999974E-6 : f32
    %465 = vector.broadcast %cst_171 : f32 to vector<64x1xf32>
    %466 = arith.addf %462, %465 : vector<64x1xf32>
    %467 = math.rsqrt %466 : vector<64x1xf32>
    %468 = vector.broadcast %467 : vector<64x1xf32> to vector<64x32xf32>
    %469 = arith.mulf %464, %468 : vector<64x32xf32>
    %470 = vector.broadcast %450 : vector<1x32xf32> to vector<64x32xf32>
    %471 = arith.mulf %469, %470 : vector<64x32xf32>
    %472 = vector.broadcast %451 : vector<1x32xf32> to vector<64x32xf32>
    %473 = arith.addf %471, %472 : vector<64x32xf32>
    %c0_172 = arith.constant 0 : index
    %c0_173 = arith.constant 0 : index
    %474 = vector.load %arg25[%c0_172, %c0_173] : memref<32x64xf32, #tpu.memory_space<vmem>>, vector<32x64xf32>
    %c0_174 = arith.constant 0 : index
    %c0_175 = arith.constant 0 : index
    %475 = vector.load %arg26[%c0_174, %c0_175] : memref<1x64xf32, #tpu.memory_space<vmem>>, vector<1x64xf32>
    %c0_176 = arith.constant 0 : index
    %c0_177 = arith.constant 0 : index
    %476 = vector.load %arg27[%c0_176, %c0_177] : memref<64x32xf32, #tpu.memory_space<vmem>>, vector<64x32xf32>
    %c0_178 = arith.constant 0 : index
    %c0_179 = arith.constant 0 : index
    %477 = vector.load %arg28[%c0_178, %c0_179] : memref<1x32xf32, #tpu.memory_space<vmem>>, vector<1x32xf32>
    %cst_180 = arith.constant dense<0.000000e+00> : vector<64x64xf32>
    %478 = tpu.matmul %473, %474, %cst_180 {dimension_numbers = #tpu.dot_dimension_numbers<[1], [0], [0], [1], [0, 0, 1, 1], [], []>} : vector<64x32xf32>, vector<32x64xf32>, vector<64x64xf32> -> vector<64x64xf32>
    %479 = vector.broadcast %475 : vector<1x64xf32> to vector<64x64xf32>
    %480 = arith.addf %478, %479 : vector<64x64xf32>
    %cst_181 = arith.constant 0.000000e+00 : f32
    %481 = vector.broadcast %cst_181 : f32 to vector<64x64xf32>
    %482 = arith.maximumf %480, %481 : vector<64x64xf32>
    %cst_182 = arith.constant dense<0.000000e+00> : vector<64x32xf32>
    %483 = tpu.matmul %482, %476, %cst_182 {dimension_numbers = #tpu.dot_dimension_numbers<[1], [0], [0], [1], [0, 0, 1, 1], [], []>} : vector<64x64xf32>, vector<64x32xf32>, vector<64x32xf32> -> vector<64x32xf32>
    %484 = vector.broadcast %477 : vector<1x32xf32> to vector<64x32xf32>
    %485 = arith.addf %483, %484 : vector<64x32xf32>
    %486 = arith.addf %485, %449 : vector<64x32xf32>
    %c0_183 = arith.constant 0 : index
    %c0_184 = arith.constant 0 : index
    %487 = vector.load %arg29[%c0_183, %c0_184] : memref<64x32xf32, #tpu.memory_space<vmem>>, vector<64x32xf32>
    tpu.vector_store %arg29[%c0_183, %c0_184], %486 {strides = array<i32>} : memref<64x32xf32, #tpu.memory_space<vmem>>, vector<64x32xf32>,
    return
  }
}

module attributes {stable_mosaic.version = 11 : i64} {
  func.func @_conv_gap_fc_kernel(%arg0: memref<8x36xf32, #tpu.memory_space<vmem>>, %arg1: memref<36x512xf32, #tpu.memory_space<vmem>>, %arg2: memref<8x1xf32, #tpu.memory_space<vmem>>, %arg3: memref<8x1xf32, #tpu.memory_space<vmem>>, %arg4: memref<1x1xf32, #tpu.memory_space<vmem>>, %arg5: memref<2x1xf32, #tpu.memory_space<vmem>>) attributes {dimension_semantics = [], scalar_prefetch = 0 : i64, scratch_operands = 0 : i64, tpu.core_type = #tpu.core_type<tc>} {
    %c0 = arith.constant 0 : index
    %c0_0 = arith.constant 0 : index
    %0 = vector.load %arg0[%c0, %c0_0] : memref<8x36xf32, #tpu.memory_space<vmem>>, vector<8x36xf32>
    %c0_1 = arith.constant 0 : index
    %c0_2 = arith.constant 0 : index
    %1 = vector.load %arg1[%c0_1, %c0_2] : memref<36x512xf32, #tpu.memory_space<vmem>>, vector<36x512xf32>
    %cst = arith.constant dense<0.000000e+00> : vector<8x512xf32>
    %2 = tpu.matmul %0, %1, %cst {dimension_numbers = #tpu.dot_dimension_numbers<[1], [0], [0], [1], [0, 0, 1, 1], [], []>} : vector<8x36xf32>, vector<36x512xf32>, vector<8x512xf32> -> vector<8x512xf32>
    %c0_3 = arith.constant 0 : index
    %c0_4 = arith.constant 0 : index
    %3 = vector.load %arg2[%c0_3, %c0_4] : memref<8x1xf32, #tpu.memory_space<vmem>>, vector<8x1xf32>
    %4 = vector.broadcast %3 : vector<8x1xf32> to vector<8x512xf32>
    %5 = arith.addf %2, %4 : vector<8x512xf32>
    %cst_5 = arith.constant 0.000000e+00 : f32
    %6 = vector.broadcast %cst_5 : f32 to vector<8x512xf32>
    %7 = arith.maximumf %5, %6 : vector<8x512xf32>
    %8 = vector.extract_strided_slice %7 {offsets = [0, 0], sizes = [8, 256], strides = [1, 1]} : vector<8x512xf32> to vector<8x256xf32>
    %cst_6 = arith.constant dense<0.000000e+00> : vector<8xf32>
    %9 = vector.multi_reduction <add>, %8, %cst_6 [1] : vector<8x256xf32> to vector<8xf32>
    %10 = vector.shape_cast %9 : vector<8xf32> to vector<8x1xf32>
    %cst_7 = arith.constant 2.560000e+02 : f32
    %11 = vector.broadcast %cst_7 : f32 to vector<8x1xf32>
    %12 = arith.divf %10, %11 : vector<8x1xf32>
    %13 = vector.extract_strided_slice %7 {offsets = [0, 256], sizes = [8, 256], strides = [1, 1]} : vector<8x512xf32> to vector<8x256xf32>
    %cst_8 = arith.constant dense<0.000000e+00> : vector<8xf32>
    %14 = vector.multi_reduction <add>, %13, %cst_8 [1] : vector<8x256xf32> to vector<8xf32>
    %15 = vector.shape_cast %14 : vector<8xf32> to vector<8x1xf32>
    %cst_9 = arith.constant 2.560000e+02 : f32
    %16 = vector.broadcast %cst_9 : f32 to vector<8x1xf32>
    %17 = arith.divf %15, %16 : vector<8x1xf32>
    %18 = tpu.concatenate %12, %17 in 1 : vector<8x1xf32>, vector<8x1xf32> -> vector<8x2xf32>
    %19 = tpu.transpose %18, [1, 0] : vector<8x2xf32> -> vector<2x8xf32>
    %c0_10 = arith.constant 0 : index
    %c0_11 = arith.constant 0 : index
    %20 = vector.load %arg3[%c0_10, %c0_11] : memref<8x1xf32, #tpu.memory_space<vmem>>, vector<8x1xf32>
    %cst_12 = arith.constant dense<0.000000e+00> : vector<2x1xf32>
    %21 = tpu.matmul %19, %20, %cst_12 {dimension_numbers = #tpu.dot_dimension_numbers<[1], [0], [0], [1], [0, 0, 1, 1], [], []>} : vector<2x8xf32>, vector<8x1xf32>, vector<2x1xf32> -> vector<2x1xf32>
    %c0_13 = arith.constant 0 : index
    %c0_14 = arith.constant 0 : index
    %22 = vector.load %arg4[%c0_13, %c0_14] : memref<1x1xf32, #tpu.memory_space<vmem>>, vector<1x1xf32>
    %23 = vector.broadcast %22 : vector<1x1xf32> to vector<2x1xf32>
    %24 = arith.addf %21, %23 : vector<2x1xf32>
    %c0_15 = arith.constant 0 : index
    %c0_16 = arith.constant 0 : index
    %25 = vector.load %arg5[%c0_15, %c0_16] : memref<2x1xf32, #tpu.memory_space<vmem>>, vector<2x1xf32>
    tpu.vector_store %arg5[%c0_15, %c0_16], %24 {strides = array<i32>} : memref<2x1xf32, #tpu.memory_space<vmem>>, vector<2x1xf32>,
    return
  }
}

</mosaic_0001>

<bundles_post_ra>
// kernel: squeeze.45
= control target key start
LH: loop header
LB: loop body
LE: loop exit
PB: predicated region body
PF: predicated region fallthrough
CT: control target
= control target key end

     0   :  { %s182_s10 = smov 96   ;;  %s183_s11 = smov 64   ;;  %vm3_vm0 = vcmask 261120   ;;  %vm17_vm1 = vcmask 1048320   ;;  %vm33_vm2 = vcmask 785920   ;;  %vm49_vm3 = vcmask 523520   ;;  %s275_s0 = inlined_call_operand.vmem [shape: f32[2,1,32,32], index: 0, kind: input, shape index: {}]   ;;  %s276_s1 = inlined_call_operand.vmem [shape: f32[1,2048], index: 1, kind: output, shape index: {}]  }
   0x1   :  { %v158_v0 = vld [vmem:[%s275_s0 + $0x3] ss:$4 sm:$0xff]   ;;  %v160_v1 = vld [vmem:[%s275_s0 + $0x2] ss:$4 sm:$0xff]   ;;  %v162_v2 = vld [vmem:[%s275_s0 + $0x1] ss:$4 sm:$0xff]  }
   0x2   :  { %15 = vrot.lane.b32.xlu0 %v158_v0, %s182_s10  ;;  %31 = vrot.lane.b32.xlu1 %v160_v1, %s183_s11  ;;  %s184_s14 = smov 32   ;;  %v159_v3 = vld [vmem:[%s275_s0 + $0x23] ss:$4 sm:$0xff]   ;;  %v161_v4 = vld [vmem:[%s275_s0 + $0x22] ss:$4 sm:$0xff]  }
   0x3   :  { %47 = vrot.lane.b32.xlu2 %v162_v2, %s184_s14  ;;  %v163_v5 = vld [vmem:[%s275_s0 + $0x21] ss:$4 sm:$0xff]   ;;  %v2_v6 = vld [vmem:[%s275_s0] ss:$4 sm:$0xff]  }
   0x4   :  { %4 = vst.msk [vmem:[#allocation0] ss:$8 sm:$0xf] %vm3_vm0, %v2_v6   ;;  %v157_v8 = vld [vmem:[%s275_s0 + $0x20] ss:$4 sm:$0xff]  }
   0x5   :  { %5 = vst.msk [vmem:[#allocation0] ss:$8 sm:$0xf0] %vm3_vm0, %v2_v6  }
   0x6   :  { %10 = vst.msk [vmem:[#allocation0 + $0x40] ss:$8 sm:$0xf] %vm3_vm0, %v157_v8  }
   0x7   :  { %12 = vst.msk [vmem:[#allocation0 + $0x40] ss:$8 sm:$0xf0] %vm3_vm0, %v157_v8  }
   0xa   :  { %22 = vrot.lane.b32.xlu0 %v159_v3, %s182_s10  ;;  %38 = vrot.lane.b32.xlu1 %v161_v4, %s183_s11 }
   0xb   :  { %54 = vrot.lane.b32.xlu2 %v163_v5, %s184_s14 }
  0x5d   :  { %v48_v7 = vpop.permute.xlu2 %47  }
  0x65   :  { %v55_v9 = vpop.permute.xlu2 %54  }
  0x74   :  { %v16_v10 = vpop.permute.xlu0 %15   ;;  %v32_v11 = vpop.permute.xlu1 %31  }
  0x75   :  { %18 = vst.msk [vmem:[#allocation0] ss:$8 sm:$0xf] %vm17_vm1, %v16_v10  }
  0x76   :  { %19 = vst.msk [vmem:[#allocation0] ss:$8 sm:$0xf0] %vm17_vm1, %v16_v10  }
  0x77   :  { %34 = vst.msk [vmem:[#allocation0] ss:$8 sm:$0xf] %vm33_vm2, %v32_v11  }
  0x78   :  { %35 = vst.msk [vmem:[#allocation0] ss:$8 sm:$0xf0] %vm33_vm2, %v32_v11  }
  0x79   :  { %50 = vst.msk [vmem:[#allocation0] ss:$8 sm:$0xf] %vm49_vm3, %v48_v7  }
  0x7a   :  { %51 = vst.msk [vmem:[#allocation0] ss:$8 sm:$0xf0] %vm49_vm3, %v48_v7  }
  0x7c   :  { %v23_v12 = vpop.permute.xlu0 %22   ;;  %v39_v13 = vpop.permute.xlu1 %38  }
  0x7d   :  { %26 = vst.msk [vmem:[#allocation0 + $0x40] ss:$8 sm:$0xf] %vm17_vm1, %v23_v12  }
  0x7e   :  { %28 = vst.msk [vmem:[#allocation0 + $0x40] ss:$8 sm:$0xf0] %vm17_vm1, %v23_v12  }
  0x7f   :  { %42 = vst.msk [vmem:[#allocation0 + $0x40] ss:$8 sm:$0xf] %vm33_vm2, %v39_v13  }
  0x80   :  { %v63_v14 = vld [vmem:[#allocation0] sm:$0x1]  ;;  %v68_v15 = vld [vmem:[#allocation0 + $0x8] sm:$0x1]  ;;  %v74_v16 = vld [vmem:[#allocation0 + $0x10] sm:$0x1] }
  0x81   :  { %66 = vst [vmem:[%s276_s1] sm:$0x1] %v63_v14  ;;  %v80_v17 = vld [vmem:[#allocation0 + $0x18] sm:$0x1]  ;;  %v86_v18 = vld [vmem:[#allocation0 + $0x20] sm:$0x1] }
  0x82   :  { %164 = vst [vmem:[%s276_s1 + $0x1] sm:$0x1] %v68_v15  ;;  %v92_v19 = vld [vmem:[#allocation0 + $0x28] sm:$0x1]  ;;  %v98_v20 = vld [vmem:[#allocation0 + $0x30] sm:$0x1] }
  0x83   :  { %165 = vst [vmem:[%s276_s1 + $0x2] sm:$0x1] %v74_v16  ;;  %v104_v21 = vld [vmem:[#allocation0 + $0x38] sm:$0x1] }
  0x84   :  { %166 = vst [vmem:[%s276_s1 + $0x3] sm:$0x1] %v80_v17 }
  0x85   :  { %167 = vst [vmem:[%s276_s1 + $0x4] sm:$0x1] %v86_v18 }
  0x86   :  { %168 = vst [vmem:[%s276_s1 + $0x5] sm:$0x1] %v92_v19 }
  0x87   :  { %169 = vst [vmem:[%s276_s1 + $0x6] sm:$0x1] %v98_v20 }
  0x88   :  { %170 = vst [vmem:[%s276_s1 + $0x7] sm:$0x1] %v104_v21 }
  0x89   :  { %44 = vst.msk [vmem:[#allocation0 + $0x40] ss:$8 sm:$0xf0] %vm33_vm2, %v39_v13  }
  0x8a   :  { %58 = vst.msk [vmem:[#allocation0 + $0x40] ss:$8 sm:$0xf] %vm49_vm3, %v55_v9  }
  0x8b   :  { %60 = vst.msk [vmem:[#allocation0 + $0x40] ss:$8 sm:$0xf0] %vm49_vm3, %v55_v9  }
  0x91   :  { %v110_v22 = vld [vmem:[#allocation0 + $0x40] sm:$0x1]  ;;  %v116_v23 = vld [vmem:[#allocation0 + $0x48] sm:$0x1]  ;;  %v122_v24 = vld [vmem:[#allocation0 + $0x50] sm:$0x1] }
  0x92   :  { %171 = vst [vmem:[%s276_s1 + $0x8] sm:$0x1] %v110_v22  ;;  %v128_v25 = vld [vmem:[#allocation0 + $0x58] sm:$0x1]  ;;  %v134_v26 = vld [vmem:[#allocation0 + $0x60] sm:$0x1] }
  0x93   :  { %172 = vst [vmem:[%s276_s1 + $0x9] sm:$0x1] %v116_v23  ;;  %v140_v27 = vld [vmem:[#allocation0 + $0x68] sm:$0x1]  ;;  %v146_v28 = vld [vmem:[#allocation0 + $0x70] sm:$0x1] }
  0x94   :  { %173 = vst [vmem:[%s276_s1 + $0xa] sm:$0x1] %v122_v24  ;;  %v152_v29 = vld [vmem:[#allocation0 + $0x78] sm:$0x1] }
  0x95   :  { %174 = vst [vmem:[%s276_s1 + $0xb] sm:$0x1] %v128_v25 }
  0x96   :  { %175 = vst [vmem:[%s276_s1 + $0xc] sm:$0x1] %v134_v26 }
  0x97   :  { %176 = vst [vmem:[%s276_s1 + $0xd] sm:$0x1] %v140_v27 }
  0x98   :  { %177 = vst [vmem:[%s276_s1 + $0xe] sm:$0x1] %v146_v28 }
  0x99   :  { %178 = vst [vmem:[%s276_s1 + $0xf] sm:$0x1] %v152_v29 }

// kernel: squeeze.49
= control target key start
LH: loop header
LB: loop body
LE: loop exit
PB: predicated region body
PF: predicated region fallthrough
CT: control target
= control target key end

     0   :  { %s182_s10 = smov 96   ;;  %s183_s11 = smov 64   ;;  %vm3_vm0 = vcmask 261120   ;;  %vm17_vm1 = vcmask 1048320   ;;  %vm33_vm2 = vcmask 785920   ;;  %vm49_vm3 = vcmask 523520   ;;  %s275_s0 = inlined_call_operand.vmem [shape: f32[64,32], index: 0, kind: input, shape index: {}]   ;;  %s276_s1 = inlined_call_operand.vmem [shape: f32[1,2048], index: 1, kind: output, shape index: {}]  }
   0x1   :  { %v158_v0 = vld [vmem:[%s275_s0 + $0x3] ss:$4 sm:$0xff]   ;;  %v160_v1 = vld [vmem:[%s275_s0 + $0x2] ss:$4 sm:$0xff]   ;;  %v162_v2 = vld [vmem:[%s275_s0 + $0x1] ss:$4 sm:$0xff]  }
   0x2   :  { %15 = vrot.lane.b32.xlu0 %v158_v0, %s182_s10  ;;  %31 = vrot.lane.b32.xlu1 %v160_v1, %s183_s11  ;;  %s184_s14 = smov 32   ;;  %v159_v3 = vld [vmem:[%s275_s0 + $0x23] ss:$4 sm:$0xff]   ;;  %v161_v4 = vld [vmem:[%s275_s0 + $0x22] ss:$4 sm:$0xff]  }
   0x3   :  { %47 = vrot.lane.b32.xlu2 %v162_v2, %s184_s14  ;;  %v163_v5 = vld [vmem:[%s275_s0 + $0x21] ss:$4 sm:$0xff]   ;;  %v2_v6 = vld [vmem:[%s275_s0] ss:$4 sm:$0xff]  }
   0x4   :  { %4 = vst.msk [vmem:[#allocation0] ss:$8 sm:$0xf] %vm3_vm0, %v2_v6   ;;  %v157_v8 = vld [vmem:[%s275_s0 + $0x20] ss:$4 sm:$0xff]  }
   0x5   :  { %5 = vst.msk [vmem:[#allocation0] ss:$8 sm:$0xf0] %vm3_vm0, %v2_v6  }
   0x6   :  { %10 = vst.msk [vmem:[#allocation0 + $0x40] ss:$8 sm:$0xf] %vm3_vm0, %v157_v8  }
   0x7   :  { %12 = vst.msk [vmem:[#allocation0 + $0x40] ss:$8 sm:$0xf0] %vm3_vm0, %v157_v8  }
   0xa   :  { %22 = vrot.lane.b32.xlu0 %v159_v3, %s182_s10  ;;  %38 = vrot.lane.b32.xlu1 %v161_v4, %s183_s11 }
   0xb   :  { %54 = vrot.lane.b32.xlu2 %v163_v5, %s184_s14 }
  0x5d   :  { %v48_v7 = vpop.permute.xlu2 %47  }
  0x65   :  { %v55_v9 = vpop.permute.xlu2 %54  }
  0x74   :  { %v16_v10 = vpop.permute.xlu0 %15   ;;  %v32_v11 = vpop.permute.xlu1 %31  }
  0x75   :  { %18 = vst.msk [vmem:[#allocation0] ss:$8 sm:$0xf] %vm17_vm1, %v16_v10  }
  0x76   :  { %19 = vst.msk [vmem:[#allocation0] ss:$8 sm:$0xf0] %vm17_vm1, %v16_v10  }
  0x77   :  { %34 = vst.msk [vmem:[#allocation0] ss:$8 sm:$0xf] %vm33_vm2, %v32_v11  }
  0x78   :  { %35 = vst.msk [vmem:[#allocation0] ss:$8 sm:$0xf0] %vm33_vm2, %v32_v11  }
  0x79   :  { %50 = vst.msk [vmem:[#allocation0] ss:$8 sm:$0xf] %vm49_vm3, %v48_v7  }
  0x7a   :  { %51 = vst.msk [vmem:[#allocation0] ss:$8 sm:$0xf0] %vm49_vm3, %v48_v7  }
  0x7c   :  { %v23_v12 = vpop.permute.xlu0 %22   ;;  %v39_v13 = vpop.permute.xlu1 %38  }
  0x7d   :  { %26 = vst.msk [vmem:[#allocation0 + $0x40] ss:$8 sm:$0xf] %vm17_vm1, %v23_v12  }
  0x7e   :  { %28 = vst.msk [vmem:[#allocation0 + $0x40] ss:$8 sm:$0xf0] %vm17_vm1, %v23_v12  }
  0x7f   :  { %42 = vst.msk [vmem:[#allocation0 + $0x40] ss:$8 sm:$0xf] %vm33_vm2, %v39_v13  }
  0x80   :  { %v63_v14 = vld [vmem:[#allocation0] sm:$0x1]  ;;  %v68_v15 = vld [vmem:[#allocation0 + $0x8] sm:$0x1]  ;;  %v74_v16 = vld [vmem:[#allocation0 + $0x10] sm:$0x1] }
  0x81   :  { %66 = vst [vmem:[%s276_s1] sm:$0x1] %v63_v14  ;;  %v80_v17 = vld [vmem:[#allocation0 + $0x18] sm:$0x1]  ;;  %v86_v18 = vld [vmem:[#allocation0 + $0x20] sm:$0x1] }
  0x82   :  { %164 = vst [vmem:[%s276_s1 + $0x1] sm:$0x1] %v68_v15  ;;  %v92_v19 = vld [vmem:[#allocation0 + $0x28] sm:$0x1]  ;;  %v98_v20 = vld [vmem:[#allocation0 + $0x30] sm:$0x1] }
  0x83   :  { %165 = vst [vmem:[%s276_s1 + $0x2] sm:$0x1] %v74_v16  ;;  %v104_v21 = vld [vmem:[#allocation0 + $0x38] sm:$0x1] }
  0x84   :  { %166 = vst [vmem:[%s276_s1 + $0x3] sm:$0x1] %v80_v17 }
  0x85   :  { %167 = vst [vmem:[%s276_s1 + $0x4] sm:$0x1] %v86_v18 }
  0x86   :  { %168 = vst [vmem:[%s276_s1 + $0x5] sm:$0x1] %v92_v19 }
  0x87   :  { %169 = vst [vmem:[%s276_s1 + $0x6] sm:$0x1] %v98_v20 }
  0x88   :  { %170 = vst [vmem:[%s276_s1 + $0x7] sm:$0x1] %v104_v21 }
  0x89   :  { %44 = vst.msk [vmem:[#allocation0 + $0x40] ss:$8 sm:$0xf0] %vm33_vm2, %v39_v13  }
  0x8a   :  { %58 = vst.msk [vmem:[#allocation0 + $0x40] ss:$8 sm:$0xf] %vm49_vm3, %v55_v9  }
  0x8b   :  { %60 = vst.msk [vmem:[#allocation0 + $0x40] ss:$8 sm:$0xf0] %vm49_vm3, %v55_v9  }
  0x91   :  { %v110_v22 = vld [vmem:[#allocation0 + $0x40] sm:$0x1]  ;;  %v116_v23 = vld [vmem:[#allocation0 + $0x48] sm:$0x1]  ;;  %v122_v24 = vld [vmem:[#allocation0 + $0x50] sm:$0x1] }
  0x92   :  { %171 = vst [vmem:[%s276_s1 + $0x8] sm:$0x1] %v110_v22  ;;  %v128_v25 = vld [vmem:[#allocation0 + $0x58] sm:$0x1]  ;;  %v134_v26 = vld [vmem:[#allocation0 + $0x60] sm:$0x1] }
  0x93   :  { %172 = vst [vmem:[%s276_s1 + $0x9] sm:$0x1] %v116_v23  ;;  %v140_v27 = vld [vmem:[#allocation0 + $0x68] sm:$0x1]  ;;  %v146_v28 = vld [vmem:[#allocation0 + $0x70] sm:$0x1] }
  0x94   :  { %173 = vst [vmem:[%s276_s1 + $0xa] sm:$0x1] %v122_v24  ;;  %v152_v29 = vld [vmem:[#allocation0 + $0x78] sm:$0x1] }
  0x95   :  { %174 = vst [vmem:[%s276_s1 + $0xb] sm:$0x1] %v128_v25 }
  0x96   :  { %175 = vst [vmem:[%s276_s1 + $0xc] sm:$0x1] %v134_v26 }
  0x97   :  { %176 = vst [vmem:[%s276_s1 + $0xd] sm:$0x1] %v140_v27 }
  0x98   :  { %177 = vst [vmem:[%s276_s1 + $0xe] sm:$0x1] %v146_v28 }
  0x99   :  { %178 = vst [vmem:[%s276_s1 + $0xf] sm:$0x1] %v152_v29 }

// kernel: _lambda_.4
= control target key start
LH: loop header
LB: loop body
LE: loop exit
PB: predicated region body
PF: predicated region fallthrough
CT: control target
= control target key end

     0   :  { %vm57_vm0 = vcmask 1040384   ;;  %v529_v3 = vmov 0   ;;  %vm53_vm1 = vcmask 72704   ;;  %vm466_vm2 = vcmask 1043456   ;;  %s752_s1 = inlined_call_operand.vmem [shape: f32[9,2048], index: 1, kind: input, shape index: {}]   ;;  %s753_s0 = inlined_call_operand.vmem [shape: f32[4,9], index: 0, kind: input, shape index: {}]   ;;  %s754_s2 = inlined_call_operand.vmem [shape: f32[4,1], index: 2, kind: input, shape index: {}]   ;;  %s755_s3 = inlined_call_operand.vmem [shape: f32[4,2048], index: 3, kind: output, shape index: {}]  }
   0x1   :  { %v33_v0 = vld [vmem:[%s752_s1 + $0x90] sm:$0x1]  ;;  %v34_v1 = vld [vmem:[%s752_s1 + $0x98] sm:$0x1]  ;;  %528 = vset.pattern.permute.xlu0 %v529_v3  ;;  %v567_v5 = vld [vmem:[%s753_s0] sm:$0xf] }
   0x2   :  { %v17_v2 = vld [vmem:[%s752_s1 + $0x10] sm:$0xff]  ;;  %499 = vmatpush.msk.msra.mxu2 %vm57_vm0, %v33_v0  ;;  %501 = vmatpush.msk.msra.mxu3 %vm57_vm0, %v34_v1  ;;  %v18_v4 = vld [vmem:[%s752_s1 + $0x18] sm:$0xff]  ;;  %v32_v7 = vld [vmem:[%s752_s1 + $0x88] sm:$0x1] }
   0x3   :  { %v38_v6 = vld [vmem:[%s752_s1 + $0xb8] sm:$0x1]  ;;  %v37_v8 = vld [vmem:[%s752_s1 + $0xb0] sm:$0x1]  ;;  %v31_v9 = vld [vmem:[%s752_s1 + $0x80] sm:$0x1]  ;;  %497 = vmatpush.msk.msra.mxu1 %vm57_vm0, %v32_v7 }
   0x4   :  { %161 = vmatpush.msra.mxu2 %v17_v2  ;;  %181 = vmatpush.msra.mxu3 %v18_v4  ;;  %v16_v10 = vld [vmem:[%s752_s1 + $0x8] sm:$0xff]  ;;  %v22_v11 = vld [vmem:[%s752_s1 + $0x38] sm:$0xff]  ;;  %v15_v12 = vld [vmem:[%s752_s1] sm:$0xff] }
   0x5   :  { %500 = vmatmul.msk.f32.vlgmr.msra.gmra.mxu2 %vm53_vm1, %v567_v5  ;;  %502 = vmatmul.msk.f32.vlgmr.msra.gmra.mxu3 %vm53_vm1, %v567_v5  ;;  %v36_v13 = vld [vmem:[%s752_s1 + $0xa8] sm:$0x1]  ;;  %v21_v14 = vld [vmem:[%s752_s1 + $0x30] sm:$0xff]  ;;  %v35_v15 = vld [vmem:[%s752_s1 + $0xa0] sm:$0x1] }
   0x6   :  { %509 = vmatpush.msk.msrb.mxu3 %vm57_vm0, %v38_v6  ;;  %507 = vmatpush.msk.msrb.mxu2 %vm57_vm0, %v37_v8  ;;  %v42_v16 = vld [vmem:[%s752_s1 + $0xd8] sm:$0x1]  ;;  %v20_v17 = vld [vmem:[%s752_s1 + $0x28] sm:$0xff]  ;;  %v41_v18 = vld [vmem:[%s752_s1 + $0xd0] sm:$0x1] }
   0x7   :  { %495 = vmatpush.msk.msra.mxu0 %vm57_vm0, %v31_v9  ;;  %141 = vmatpush.msra.mxu1 %v16_v10  ;;  %v19_v19 = vld [vmem:[%s752_s1 + $0x20] sm:$0xff]  ;;  %v26_v20 = vld [vmem:[%s752_s1 + $0x58] sm:$0xff]  ;;  %v40_v21 = vld [vmem:[%s752_s1 + $0xc8] sm:$0x1] }
   0x8   :  { %261 = vmatpush.msrb.mxu3 %v22_v11  ;;  %498 = vmatmul.msk.f32.vlgmr.msra.gmra.mxu1 %vm53_vm1, %v567_v5  ;;  %v25_v22 = vld [vmem:[%s752_s1 + $0x50] sm:$0xff]  ;;  %v39_v23 = vld [vmem:[%s752_s1 + $0xc0] sm:$0x1]  ;;  %v46_v24 = vld [vmem:[%s752_s1 + $0xf8] sm:$0x1] }
   0x9   :  { %121 = vmatpush.msra.mxu0 %v15_v12  ;;  %505 = vmatpush.msk.msrb.mxu1 %vm57_vm0, %v36_v13  ;;  %v47_v25 = vld [vmem:[%s754_s2] sm:$0xf]  ;;  %v24_v26 = vld [vmem:[%s752_s1 + $0x48] sm:$0xff]  ;;  %v45_v27 = vld [vmem:[%s752_s1 + $0xf0] sm:$0x1] }
   0xa   :  { %496 = vmatmul.msk.f32.vlgmr.msra.gmra.mxu0 %vm53_vm1, %v567_v5  ;;  %241 = vmatpush.msrb.mxu2 %v21_v14  ;;  %v23_v28 = vld [vmem:[%s752_s1 + $0x40] sm:$0xff]  ;;  %v30_v29 = vld [vmem:[%s752_s1 + $0x78] sm:$0xff]  ;;  %v44_v30 = vld [vmem:[%s752_s1 + $0xe8] sm:$0x1] }
   0xb   :  { %503 = vmatpush.msk.msrb.mxu0 %vm57_vm0, %v35_v15  ;;  %517 = vmatpush.msk.msra.mxu3 %vm57_vm0, %v42_v16  ;;  %v29_v31 = vld [vmem:[%s752_s1 + $0x70] sm:$0xff]  ;;  %v43_v32 = vld [vmem:[%s752_s1 + $0xe0] sm:$0x1]  ;;  %v28_v33 = vld [vmem:[%s752_s1 + $0x68] sm:$0xff] }
   0xc   :  { %221 = vmatpush.msrb.mxu1 %v20_v17  ;;  %515 = vmatpush.msk.msra.mxu2 %vm57_vm0, %v41_v18  ;;  %v27_v34 = vld [vmem:[%s752_s1 + $0x60] sm:$0xff] }
   0xd   :  { %508 = vmatmul.msk.f32.vlgmr.msrb.gmra.mxu2 %vm53_vm1, %v567_v5  ;;  %510 = vmatmul.msk.f32.vlgmr.msrb.gmra.mxu3 %vm53_vm1, %v567_v5 }
   0xe   :  { %201 = vmatpush.msrb.mxu0 %v19_v19  ;;  %341 = vmatpush.msra.mxu3 %v26_v20 }
   0xf   :  { %513 = vmatpush.msk.msra.mxu1 %vm57_vm0, %v40_v21  ;;  %321 = vmatpush.msra.mxu2 %v25_v22 }
  0x10   :  { %511 = vmatpush.msk.msra.mxu0 %vm57_vm0, %v39_v23  ;;  %506 = vmatmul.msk.f32.vlgmr.msrb.gmra.mxu1 %vm53_vm1, %v567_v5 }
  0x11   :  { %525 = vmatpush.msk.msrb.mxu3 %vm57_vm0, %v46_v24  ;;  %50 = vperm.xlu0 %528, %v47_v25  }
  0x12   :  { %504 = vmatmul.msk.f32.vlgmr.msrb.gmra.mxu0 %vm53_vm1, %v567_v5  ;;  %301 = vmatpush.msra.mxu1 %v24_v26 }
  0x13   :  { %523 = vmatpush.msk.msrb.mxu2 %vm57_vm0, %v45_v27  ;;  %281 = vmatpush.msra.mxu0 %v23_v28 }
  0x14   :  { %421 = vmatpush.msrb.mxu3 %v30_v29  ;;  %521 = vmatpush.msk.msrb.mxu1 %vm57_vm0, %v44_v30 }
  0x15   :  { %516 = vmatmul.msk.f32.vlgmr.msra.gmra.mxu2 %vm53_vm1, %v567_v5  ;;  %518 = vmatmul.msk.f32.vlgmr.msra.gmra.mxu3 %vm53_vm1, %v567_v5 }
  0x16   :  { %401 = vmatpush.msrb.mxu2 %v29_v31  ;;  %519 = vmatpush.msk.msrb.mxu0 %vm57_vm0, %v43_v32 }
  0x17   :  { %381 = vmatpush.msrb.mxu1 %v28_v33 }
  0x18   :  { %514 = vmatmul.msk.f32.vlgmr.msra.gmra.mxu1 %vm53_vm1, %v567_v5  ;;  %361 = vmatpush.msrb.mxu0 %v27_v34 }
  0x1a   :  { %512 = vmatmul.msk.f32.vlgmr.msra.gmra.mxu0 %vm53_vm1, %v567_v5 }
  0x1d   :  { %524 = vmatmul.msk.f32.vlgmr.msrb.gmra.mxu2 %vm53_vm1, %v567_v5  ;;  %526 = vmatmul.msk.f32.vlgmr.msrb.gmra.mxu3 %vm53_vm1, %v567_v5 }
  0x20   :  { %522 = vmatmul.msk.f32.vlgmr.msrb.gmra.mxu1 %vm53_vm1, %v567_v5 }
  0x22   :  { %520 = vmatmul.msk.f32.vlgmr.msrb.gmra.mxu0 %vm53_vm1, %v567_v5 }
  0x83   :  { %v702_v35 = vpop.permute.xlu0 %50 }
  0x85   :  { %v143_v36 = vpop.f32.mrf.mxu1 }
  0x86   :  { %v144_v38 = vadd.f32 %v143_v36, %v702_v35 }
  0x87   :  { %v123_v37 = vpop.f32.mrf.mxu0 }
  0x88   :  { %v124_v39 = vadd.f32 %v123_v37, %v702_v35  ;;  %v163_v40 = vpop.f32.mrf.mxu2  ;;  %v183_v41 = vpop.f32.mrf.mxu3  ;;  %v427_v42 = vmax.f32 %v144_v38, 0.0 }
  0x89   :  { %v164_v43 = vadd.f32 %v163_v40, %v702_v35  ;;  %v184_v44 = vadd.f32 %v183_v41, %v702_v35 }
  0x8a   :  { %v426_v45 = vmax.f32 %v124_v39, 0.0  ;;  %v458_v46 = vrot.slane %v427_v42, 4 }
  0x8b   :  { %v428_v47 = vmax.f32 %v164_v43, 0.0  ;;  %v429_v48 = vmax.f32 %v184_v44, 0.0 }
  0x8c   :  { %v467_v49 = vsel %vm466_vm2, %v426_v45, %v458_v46 }
  0x8d   :  { %v459_v50 = vrot.slane %v429_v48, 4  ;;  %483 = vst [vmem:[%s755_s3] sm:$0xff] %v467_v49  ;;  %v223_v51 = vpop.f32.mrf.mxu1 }
  0x8e   :  { %v224_v53 = vadd.f32 %v223_v51, %v702_v35 }
  0x8f   :  { %v468_v52 = vsel %vm466_vm2, %v428_v47, %v459_v50  ;;  %v203_v54 = vpop.f32.mrf.mxu0 }
  0x90   :  { %484 = vst [vmem:[%s755_s3 + $0x8] sm:$0xff] %v468_v52  ;;  %v204_v55 = vadd.f32 %v203_v54, %v702_v35  ;;  %v243_v56 = vpop.f32.mrf.mxu2  ;;  %v263_v57 = vpop.f32.mrf.mxu3  ;;  %v431_v58 = vmax.f32 %v224_v53, 0.0 }
  0x91   :  { %v244_v59 = vadd.f32 %v243_v56, %v702_v35  ;;  %v264_v60 = vadd.f32 %v263_v57, %v702_v35 }
  0x92   :  { %v430_v61 = vmax.f32 %v204_v55, 0.0  ;;  %v460_v62 = vrot.slane %v431_v58, 4 }
  0x93   :  { %v432_v63 = vmax.f32 %v244_v59, 0.0  ;;  %v433_v0 = vmax.f32 %v264_v60, 0.0 }
  0x94   :  { %v469_v1 = vsel %vm466_vm2, %v430_v61, %v460_v62 }
  0x95   :  { %v461_v2 = vrot.slane %v433_v0, 4  ;;  %485 = vst [vmem:[%s755_s3 + $0x10] sm:$0xff] %v469_v1  ;;  %v303_v3 = vpop.f32.mrf.mxu1 }
  0x96   :  { %v304_v5 = vadd.f32 %v303_v3, %v702_v35 }
  0x97   :  { %v470_v4 = vsel %vm466_vm2, %v432_v63, %v461_v2  ;;  %v283_v6 = vpop.f32.mrf.mxu0 }
  0x98   :  { %486 = vst [vmem:[%s755_s3 + $0x18] sm:$0xff] %v470_v4  ;;  %v284_v7 = vadd.f32 %v283_v6, %v702_v35  ;;  %v323_v8 = vpop.f32.mrf.mxu2  ;;  %v343_v9 = vpop.f32.mrf.mxu3  ;;  %v435_v10 = vmax.f32 %v304_v5, 0.0 }
  0x99   :  { %v324_v11 = vadd.f32 %v323_v8, %v702_v35  ;;  %v344_v12 = vadd.f32 %v343_v9, %v702_v35 }
  0x9a   :  { %v434_v13 = vmax.f32 %v284_v7, 0.0  ;;  %v462_v14 = vrot.slane %v435_v10, 4 }
  0x9b   :  { %v436_v15 = vmax.f32 %v324_v11, 0.0  ;;  %v437_v16 = vmax.f32 %v344_v12, 0.0 }
  0x9c   :  { %v471_v17 = vsel %vm466_vm2, %v434_v13, %v462_v14 }
  0x9d   :  { %v463_v18 = vrot.slane %v437_v16, 4  ;;  %487 = vst [vmem:[%s755_s3 + $0x20] sm:$0xff] %v471_v17  ;;  %v383_v19 = vpop.f32.mrf.mxu1 }
  0x9e   :  { %v384_v21 = vadd.f32 %v383_v19, %v702_v35 }
  0x9f   :  { %v472_v20 = vsel %vm466_vm2, %v436_v15, %v463_v18  ;;  %v363_v22 = vpop.f32.mrf.mxu0 }
  0xa0   :  { %488 = vst [vmem:[%s755_s3 + $0x28] sm:$0xff] %v472_v20  ;;  %v364_v23 = vadd.f32 %v363_v22, %v702_v35  ;;  %v403_v24 = vpop.f32.mrf.mxu2  ;;  %v423_v25 = vpop.f32.mrf.mxu3  ;;  %v439_v26 = vmax.f32 %v384_v21, 0.0 }
  0xa1   :  { %v404_v27 = vadd.f32 %v403_v24, %v702_v35  ;;  %v424_v28 = vadd.f32 %v423_v25, %v702_v35 }
  0xa2   :  { %v438_v29 = vmax.f32 %v364_v23, 0.0  ;;  %v464_v30 = vrot.slane %v439_v26, 4 }
  0xa3   :  { %v441_v31 = vmax.f32 %v424_v28, 0.0  ;;  %v440_v33 = vmax.f32 %v404_v27, 0.0 }
  0xa4   :  { %v473_v32 = vsel %vm466_vm2, %v438_v29, %v464_v30 }
  0xa5   :  { %v465_v34 = vrot.slane %v441_v31, 4  ;;  %489 = vst [vmem:[%s755_s3 + $0x30] sm:$0xff] %v473_v32 }
  0xa7   :  { %v474_v36 = vsel %vm466_vm2, %v440_v33, %v465_v34 }
  0xa8   :  { %490 = vst [vmem:[%s755_s3 + $0x38] sm:$0xff] %v474_v36 }

// kernel: squeeze.55
= control target key start
LH: loop header
LB: loop body
LE: loop exit
PB: predicated region body
PF: predicated region fallthrough
CT: control target
= control target key end

     0   :  { %s88_s8 = smov 112   ;;  %s89_s11 = smov 80   ;;  %vm3_vm0 = vcmask 130048   ;;  %vm9_vm1 = vcmask 1048448   ;;  %vm15_vm2 = vcmask 917248   ;;  %vm21_vm3 = vcmask 786048   ;;  %s141_s0 = inlined_call_operand.vmem [shape: f32[2,16,16], index: 0, kind: input, shape index: {}]   ;;  %s142_s1 = inlined_call_operand.vmem [shape: f32[1,512], index: 1, kind: output, shape index: {}]  }
   0x1   :  { %v71_v0 = vld [vmem:[%s141_s0 + $0x7] ss:$8 sm:$0xf]   ;;  %v73_v1 = vld [vmem:[%s141_s0 + $0x5] ss:$8 sm:$0xf]  }
   0x2   :  { %7 = vrot.lane.b32.xlu0 %v71_v0, %s88_s8  ;;  %19 = vrot.lane.b32.xlu1 %v73_v1, %s89_s11  ;;  %v75_v2 = vld [vmem:[%s141_s0 + $0x3] ss:$8 sm:$0xf]   ;;  %s90_s14 = smov 48   ;;  %s91_s19 = smov 96   ;;  %vm27_vm4 = vcmask 654848  }
   0x3   :  { %31 = vrot.lane.b32.xlu2 %v75_v2, %s90_s14  ;;  %v72_v3 = vld [vmem:[%s141_s0 + $0x6] ss:$8 sm:$0xf]   ;;  %v74_v4 = vld [vmem:[%s141_s0 + $0x4] ss:$8 sm:$0xf]  }
   0x4   :  { %s92_s20 = smov 64   ;;  %v76_v5 = vld [vmem:[%s141_s0 + $0x2] ss:$8 sm:$0xf]   ;;  %s93_s23 = smov 32   ;;  %vm33_vm5 = vcmask 523648  }
   0x5   :  { %v77_v6 = vld [vmem:[%s141_s0 + $0x1] ss:$8 sm:$0xf]   ;;  %s94_s26 = smov 16   ;;  %vm39_vm6 = vcmask 392448   ;;  %vm45_vm7 = vcmask 261248  }
   0x6   :  { %v2_v7 = vld [vmem:[%s141_s0] ss:$8 sm:$0xf]  }
   0x7   :  { %4 = vst.msk [vmem:[#allocation0] ss:$8 sm:$0xf] %vm3_vm0, %v2_v7  }
   0xa   :  { %13 = vrot.lane.b32.xlu0 %v72_v3, %s91_s19  ;;  %25 = vrot.lane.b32.xlu1 %v74_v4, %s92_s20 }
   0xb   :  { %37 = vrot.lane.b32.xlu2 %v76_v5, %s93_s23 }
  0x12   :  { %43 = vrot.lane.b32.xlu0 %v77_v6, %s94_s26 }
  0x5d   :  { %v32_v8 = vpop.permute.xlu2 %31  }
  0x65   :  { %v38_v9 = vpop.permute.xlu2 %37  }
  0x74   :  { %v8_v10 = vpop.permute.xlu0 %7   ;;  %v20_v11 = vpop.permute.xlu1 %19  }
  0x75   :  { %10 = vst.msk [vmem:[#allocation0] ss:$8 sm:$0xf] %vm9_vm1, %v8_v10  }
  0x7c   :  { %v14_v12 = vpop.permute.xlu0 %13   ;;  %v26_v13 = vpop.permute.xlu1 %25  }
  0x7d   :  { %16 = vst.msk [vmem:[#allocation0] ss:$8 sm:$0xf] %vm15_vm2, %v14_v12  }
  0x7e   :  { %22 = vst.msk [vmem:[#allocation0] ss:$8 sm:$0xf] %vm21_vm3, %v20_v11  }
  0x7f   :  { %28 = vst.msk [vmem:[#allocation0] ss:$8 sm:$0xf] %vm27_vm4, %v26_v13  }
  0x80   :  { %34 = vst.msk [vmem:[#allocation0] ss:$8 sm:$0xf] %vm33_vm5, %v32_v8  }
  0x81   :  { %40 = vst.msk [vmem:[#allocation0] ss:$8 sm:$0xf] %vm39_vm6, %v38_v9  }
  0x84   :  { %v44_v14 = vpop.permute.xlu0 %43  }
  0x85   :  { %46 = vst.msk [vmem:[#allocation0] ss:$8 sm:$0xf] %vm45_vm7, %v44_v14  }
  0x8c   :  { %v49_v15 = vld [vmem:[#allocation0] sm:$0x1]  ;;  %v54_v16 = vld [vmem:[#allocation0 + $0x8] sm:$0x1]  ;;  %v60_v17 = vld [vmem:[#allocation0 + $0x10] sm:$0x1] }
  0x8d   :  { %52 = vst [vmem:[%s142_s1] sm:$0x1] %v49_v15  ;;  %v66_v18 = vld [vmem:[#allocation0 + $0x18] sm:$0x1] }
  0x8e   :  { %78 = vst [vmem:[%s142_s1 + $0x1] sm:$0x1] %v54_v16 }
  0x8f   :  { %79 = vst [vmem:[%s142_s1 + $0x2] sm:$0x1] %v60_v17 }
  0x90   :  { %80 = vst [vmem:[%s142_s1 + $0x3] sm:$0x1] %v66_v18 }

// kernel: _lambda_.3
= control target key start
LH: loop header
LB: loop body
LE: loop exit
PB: predicated region body
PF: predicated region fallthrough
CT: control target
= control target key end

     0   :  { %s5094_s6 = smov 1   ;;  %s5095_s10 = smov 2   ;;  %s6800_s0 = inlined_call_operand.smem [shape: u32[30], index: -1, kind: input, shape index: {}] }
   0x1   :  { %s5153_s5 = sld [smem:[%s6800_s0]]   ;;  %s5096_s14 = smov 3  }
   0x2   :  { %s5158_s9 = sld [smem:[%s6800_s0 + %s5094_s6]]   ;;  %s5097_s18 = smov 4  }
   0x3   :  { %s5163_s13 = sld [smem:[%s6800_s0 + %s5095_s10]]   ;;  %s5098_s22 = smov 5  }
   0x4   :  { %s5168_s17 = sld [smem:[%s6800_s0 + %s5096_s14]]   ;;  %s5099_s26 = smov 6  }
   0x5   :  { %s5173_s21 = sld [smem:[%s6800_s0 + %s5097_s18]]   ;;  %s5100_s30 = smov 7  }
   0x6   :  { %s5178_s25 = sld [smem:[%s6800_s0 + %s5098_s22]]   ;;  %s5101_s4 = smov 8  }
   0x7   :  { %s5183_s29 = sld [smem:[%s6800_s0 + %s5099_s26]]   ;;  %s5102_s10 = smov 9  }
   0x8   :  { %s5188_s3 = sld [smem:[%s6800_s0 + %s5100_s30]]   ;;  %s5103_s15 = smov 10  }
   0x9   :  { %s5193_s8 = sld [smem:[%s6800_s0 + %s5101_s4]]   ;;  %s5104_s20 = smov 11  }
   0xa   :  { %s5198_s14 = sld [smem:[%s6800_s0 + %s5102_s10]]   ;;  %s5105_s26 = smov 12  }
   0xb   :  { %s5203_s19 = sld [smem:[%s6800_s0 + %s5103_s15]]   ;;  %s5106_s1 = smov 13  }
   0xc   :  { %s5208_s24 = sld [smem:[%s6800_s0 + %s5104_s20]]   ;;  %s5107_s7 = smov 14  }
   0xd   :  { %s5213_s30 = sld [smem:[%s6800_s0 + %s5105_s26]]   ;;  %s5108_s15 = smov 15  }
   0xe   :  { %s5218_s6 = sld [smem:[%s6800_s0 + %s5106_s1]]   ;;  %s5109_s22 = smov 16  }
   0xf   :  { %s5223_s12 = sld [smem:[%s6800_s0 + %s5107_s7]]   ;;  %s5110_s28 = smov 17  }
  0x10   :  { %6802 = sst [smem:[#allocation20_spill]] %s5198_s14  ;;  %s5111_s7 = smov 18  }
  0x11   :  { %6803 = sst [smem:[#allocation21_spill]] %s5203_s19 }
  0x12   :  { %s5228_s20 = sld [smem:[%s6800_s0 + %s5108_s15]]   ;;  %s5112_s15 = smov 19  }
  0x13   :  { %6804 = sst [smem:[#allocation22_spill]] %s5213_s30 }
  0x14   :  { %6805 = sst [smem:[#allocation23_spill]] %s5218_s6 }
  0x15   :  { %6806 = sst [smem:[#allocation24_spill]] %s5223_s12 }
  0x16   :  { %s5233_s27 = sld [smem:[%s6800_s0 + %s5109_s22]]   ;;  %s5113_s22 = smov 20  }
  0x17   :  { %s5238_s4 = sld [smem:[%s6800_s0 + %s5110_s28]]   ;;  %s5114_s28 = smov 21  }
  0x18   :  { %s5243_s12 = sld [smem:[%s6800_s0 + %s5111_s7]]   ;;  %s5115_s7 = smov 22  }
  0x19   :  { %s5248_s30 = sld [smem:[%s6800_s0 + %s5112_s15]]   ;;  %s5116_s15 = smov 23  }
  0x1a   :  { %s5268_s6 = sld [smem:[%s6800_s0 + %s5116_s15]]   ;;  %s5120_s15 = smov 27  }
  0x1c   :  { %6807 = sst [smem:[#allocation25_spill]] %s5233_s27 }
  0x1d   :  { %6808 = sst [smem:[#allocation26_spill]] %s5238_s4 }
  0x1e   :  { %6809 = sst [smem:[#allocation27_spill]] %s5243_s12 }
  0x1f   :  { %s5253_s27 = sld [smem:[%s6800_s0 + %s5113_s22]]   ;;  %s5117_s22 = smov 24  }
  0x20   :  { %s5258_s4 = sld [smem:[%s6800_s0 + %s5114_s28]]   ;;  %s5118_s28 = smov 25  }
  0x21   :  { %s5263_s12 = sld [smem:[%s6800_s0 + %s5115_s7]]   ;;  %s5119_s7 = smov 26  }
  0x22   :  { %6812 = sst [smem:[#allocation30_spill]] %s5268_s6 }
  0x23   :  { %s5278_s19 = sld [smem:[%s6800_s0 + %s5118_s28]]   ;;  %s5122_s28 = smov 29  }
  0x24   :  { %s5288_s6 = sld [smem:[%s6800_s0 + %s5120_s15]]  }
  0x25   :  { %6810 = sst [smem:[#allocation28_spill]] %s5253_s27 }
  0x26   :  { %s5273_s27 = sld [smem:[%s6800_s0 + %s5117_s22]]   ;;  %s5121_s22 = smov 28  }
  0x27   :  { %6811 = sst [smem:[#allocation29_spill]] %s5263_s12 }
  0x28   :  { %s5283_s12 = sld [smem:[%s6800_s0 + %s5119_s7]]  }
  0x29   :  { %s5298_s14 = sld [smem:[%s6800_s0 + %s5122_s28]]  }
  0x2c   :  { %6813 = sst [smem:[#allocation31_spill]] %s5273_s27 }
  0x2d   :  { %s5293_s27 = sld [smem:[%s6800_s0 + %s5121_s22]]  }
  0x2e   :  { %64 = vsyncpa [#allocation3], 0 }
  0x2f   :  { %65 = vsyncpa [#allocation5], 0 }
  0x30   :  { %66 = vsyncpa [#allocation8], 0 }
  0x31   :  { %67 = vsyncpa [#allocation11], 0 }
  0x32   :  { %68 = vsyncpa [#allocation14], 0  ;;  %s98_s7 = sshll.u32 %s5188_s3, 4  ;;  %s5123_s10 = smov [#allocation4]   ;;  %s99_s7 = int_to_ptr.hbm [resolvable:$true] %s98_s7 }
  0x33   :  { %s100_s11 = sshll.u32 %s5123_s10, 4  ;;  %s136_s15 = sshll.u32 %s5228_s20, 4  ;;  %s101_s11 = int_to_ptr.vmem [resolvable:$true] %s100_s11  ;;  %s137_s15 = int_to_ptr.hbm [resolvable:$true] %s136_s15 }
  0x34   :  { %s4892_s16 = sshra.s32 %s99_s7, 4  ;;  %s4896_s0 = scalar_lea.hbm %s5188_s3, 32  ;;  %s4893_s16 = int_to_ptr.hbm [resolvable:$true] %s4892_s16 }
  0x35   :  { %s4894_s18 = scalar_lea.hbm %s4893_s16, 32  ;;  %p4897_p1 = scmp.lt.s32.totalorder %s4893_s16, %s5188_s3 }
  0x36   :  { %p4895_p0 = scmp.ne.s32.totalorder %s4893_s16, %s4894_s18  ;;  %p4898_p2 = scmp.lt.s32.totalorder %s4896_s0, %s4894_s18 }
  0x38   :  { %p4899_p3 = por %p4898_p2, %p4897_p1 }
  0x3a   :  { %p4900_p4 = pnand %p4899_p3, %p4895_p0 }
  0x3c   :  { %4903 = shalt.err (!%p4900_p4)
}
  0x3d   :  { %s5124_s22 = smov 128   ;;  %s5125_s23 = smov 8  }
  0x3e   :  { %106 = dma.hbm_to_vmem [thread:$0]  %s99_s7, 512, %s101_s11, [#allocation5], %s5124_s22, %s5124_s22, %s5125_s23  }
  0x3f   :  { %s5126_s26 = smov [#allocation7]   ;;  %s170_s1 = sshll.u32 %s5258_s4, 4  ;;  %s5308_s1 = int_to_ptr.hbm [resolvable:$true] %s170_s1 }
  0x40   :  { %s138_s28 = sshll.u32 %s5126_s26, 4  ;;  %s4916_s3 = sshra.s32 %s137_s15, 4  ;;  %s139_s28 = int_to_ptr.vmem [resolvable:$true] %s138_s28  ;;  %s4917_s3 = int_to_ptr.hbm [resolvable:$true] %s4916_s3 }
  0x41   :  { %s4918_s2 = scalar_lea.hbm %s4917_s3, 16  ;;  %s4920_s10 = scalar_lea.hbm %s5228_s20, 16 }
  0x42   :  { %p4919_p5 = scmp.ne.s32.totalorder %s4917_s3, %s4918_s2  ;;  %p4921_p6 = scmp.lt.s32.totalorder %s4917_s3, %s5228_s20 }
  0x43   :  { %p4922_p7 = scmp.lt.s32.totalorder %s4920_s10, %s4918_s2 }
  0x45   :  { %p4923_p8 = por %p4922_p7, %p4921_p6 }
  0x47   :  { %p4924_p9 = pnand %p4923_p8, %p4919_p5 }
  0x49   :  { %4927 = shalt.err (!%p4924_p9)
}
  0x4a   :  { %144 = dma.hbm_to_vmem [thread:$0]  %s137_s15, 256, %s139_s28, [#allocation8], %s5124_s22, %s5124_s22, %s5125_s23  }
  0x4b   :  { %s83_s7 = sshll.u32 %s5178_s25, 4  ;;  %s5127_s11 = smov [#allocation10]   ;;  %s5316_s7 = int_to_ptr.hbm [resolvable:$true] %s83_s7 }
  0x4c   :  { %s172_s16 = sshll.u32 %s5127_s11, 4  ;;  %s4940_s18 = sshra.s32 %s5308_s1, 4  ;;  %s173_s16 = int_to_ptr.vmem [resolvable:$true] %s172_s16  ;;  %s4941_s18 = int_to_ptr.hbm [resolvable:$true] %s4940_s18 }
  0x4d   :  { %s4942_s20 = scalar_lea.hbm %s4941_s18, 32  ;;  %s4944_s0 = scalar_lea.hbm %s5258_s4, 32 }
  0x4e   :  { %p4943_p10 = scmp.ne.s32.totalorder %s4941_s18, %s4942_s20  ;;  %p4945_p11 = scmp.lt.s32.totalorder %s4941_s18, %s5258_s4 }
  0x4f   :  { %p4946_p12 = scmp.lt.s32.totalorder %s4944_s0, %s4942_s20 }
  0x51   :  { %p4947_p13 = por %p4946_p12, %p4945_p11 }
  0x53   :  { %p4948_p0 = pnand %p4947_p13, %p4943_p10 }
  0x55   :  { %4951 = shalt.err (!%p4948_p0)
}
  0x56   :  { %178 = dma.hbm_to_vmem [thread:$0]  %s5308_s1, 512, %s173_s16, [#allocation11], %s5124_s22, %s5124_s22, %s5125_s23  }
  0x57   :  { %s5128_s15 = smov [#allocation2]   ;;  %s117_s28 = sshll.u32 %s5208_s24, 4  ;;  %s5326_s28 = int_to_ptr.hbm [resolvable:$true] %s117_s28 }
  0x58   :  { %s85_s26 = sshll.u32 %s5128_s15, 4  ;;  %s4964_s4 = sshra.s32 %s5316_s7, 4  ;;  %s86_s26 = int_to_ptr.vmem [resolvable:$true] %s85_s26  ;;  %s4965_s4 = int_to_ptr.hbm [resolvable:$true] %s4964_s4 }
  0x59   :  { %s4966_s3 = scalar_lea.hbm %s4965_s4, 32  ;;  %s4968_s2 = scalar_lea.hbm %s5178_s25, 32 }
  0x5a   :  { %p4967_p1 = scmp.ne.s32.totalorder %s4965_s4, %s4966_s3  ;;  %p4969_p2 = scmp.lt.s32.totalorder %s4965_s4, %s5178_s25 }
  0x5b   :  { %p4970_p3 = scmp.lt.s32.totalorder %s4968_s2, %s4966_s3 }
  0x5d   :  { %p4971_p4 = por %p4970_p3, %p4969_p2 }
  0x5f   :  { %p4972_p5 = pnand %p4971_p4, %p4967_p1 }
  0x61   :  { %4975 = shalt.err (!%p4972_p5)
}
  0x62   :  { %91 = dma.hbm_to_vmem [thread:$0]  %s5316_s7, 512, %s86_s26, [#allocation3], %s5124_s22, %s5124_s22, %s5125_s23  }
  0x63   :  { %s155_s1 = sshll.u32 %s5248_s30, 4  ;;  %s5129_s10 = smov [#allocation6]   ;;  %s5336_s1 = int_to_ptr.hbm [resolvable:$true] %s155_s1 }
  0x64   :  { %s119_s11 = sshll.u32 %s5129_s10, 4  ;;  %s4988_s25 = sshra.s32 %s5326_s28, 4  ;;  %s120_s11 = int_to_ptr.vmem [resolvable:$true] %s119_s11  ;;  %s4989_s25 = int_to_ptr.hbm [resolvable:$true] %s4988_s25 }
  0x65   :  { %s4990_s16 = scalar_lea.hbm %s4989_s25, 32  ;;  %s4992_s18 = scalar_lea.hbm %s5208_s24, 32 }
  0x66   :  { %p4991_p6 = scmp.ne.s32.totalorder %s4989_s25, %s4990_s16  ;;  %p4993_p7 = scmp.lt.s32.totalorder %s4989_s25, %s5208_s24 }
  0x67   :  { %p4994_p8 = scmp.lt.s32.totalorder %s4992_s18, %s4990_s16 }
  0x69   :  { %p4995_p9 = por %p4994_p8, %p4993_p7 }
  0x6b   :  { %p4996_p10 = pnand %p4995_p9, %p4991_p6 }
  0x6d   :  { %4999 = shalt.err (!%p4996_p10)
}
  0x6e   :  { %125 = dma.hbm_to_vmem [thread:$0]  %s5326_s28, 512, %s120_s11, [#allocation5], %s5124_s22, %s5124_s22, %s5125_s23  }
  0x6f   :  { %s5130_s7 = smov [#allocation9]   ;;  %s189_s0 = sshll.u32 %s5278_s19, 4  ;;  %s5346_s0 = int_to_ptr.hbm [resolvable:$true] %s189_s0 }
  0x70   :  { %s157_s20 = sshll.u32 %s5130_s7, 4  ;;  %s5012_s24 = sshra.s32 %s5336_s1, 4  ;;  %s158_s20 = int_to_ptr.vmem [resolvable:$true] %s157_s20  ;;  %s5013_s24 = int_to_ptr.hbm [resolvable:$true] %s5012_s24 }
  0x71   :  { %s5014_s15 = scalar_lea.hbm %s5013_s24, 32  ;;  %s5016_s26 = scalar_lea.hbm %s5248_s30, 32 }
  0x72   :  { %p5015_p11 = scmp.ne.s32.totalorder %s5013_s24, %s5014_s15  ;;  %p5017_p12 = scmp.lt.s32.totalorder %s5013_s24, %s5248_s30 }
  0x73   :  { %p5018_p13 = scmp.lt.s32.totalorder %s5016_s26, %s5014_s15 }
  0x75   :  { %p5019_p0 = por %p5018_p13, %p5017_p12 }
  0x77   :  { %p5020_p1 = pnand %p5019_p0, %p5015_p11 }
  0x79   :  { %5023 = shalt.err (!%p5020_p1)
}
  0x7a   :  { %163 = dma.hbm_to_vmem [thread:$0]  %s5336_s1, 512, %s158_s20, [#allocation8], %s5124_s22, %s5124_s22, %s5125_s23  }
  0x7b   :  { %s204_s28 = sshll.u32 %s5288_s6, 4  ;;  %s5131_s4 = smov [#allocation12]   ;;  %s5356_s28 = int_to_ptr.hbm [resolvable:$true] %s204_s28 }
  0x7c   :  { %s191_s3 = sshll.u32 %s5131_s4, 4  ;;  %s5036_s30 = sshra.s32 %s5346_s0, 4  ;;  %s192_s3 = int_to_ptr.vmem [resolvable:$true] %s191_s3  ;;  %s5037_s30 = int_to_ptr.hbm [resolvable:$true] %s5036_s30 }
  0x7d   :  { %s5038_s2 = scalar_lea.hbm %s5037_s30, 32  ;;  %s5040_s10 = scalar_lea.hbm %s5278_s19, 32 }
  0x7e   :  { %p5039_p2 = scmp.ne.s32.totalorder %s5037_s30, %s5038_s2  ;;  %p5041_p3 = scmp.lt.s32.totalorder %s5037_s30, %s5278_s19 }
  0x7f   :  { %p5042_p4 = scmp.lt.s32.totalorder %s5040_s10, %s5038_s2 }
  0x81   :  { %p5043_p5 = por %p5042_p4, %p5041_p3 }
  0x83   :  { %p5044_p6 = pnand %p5043_p5, %p5039_p2 }
  0x85   :  { %5047 = shalt.err (!%p5044_p6)
}
  0x86   :  { %197 = dma.hbm_to_vmem [thread:$0]  %s5346_s0, 512, %s192_s3, [#allocation11], %s5124_s22, %s5124_s22, %s5125_s23  }
  0x87   :  { %s5132_s1 = smov [#allocation13]   ;;  %s5060_s25 = sshra.s32 %s5356_s28, 4  ;;  %s5061_s25 = int_to_ptr.hbm [resolvable:$true] %s5060_s25 }
  0x88   :  { %s206_s11 = sshll.u32 %s5132_s1, 4  ;;  %s5062_s16 = scalar_lea.hbm %s5061_s25, 64  ;;  %s207_s11 = int_to_ptr.vmem [resolvable:$true] %s206_s11 }
  0x89   :  { %p5063_p7 = scmp.ne.s32.totalorder %s5061_s25, %s5062_s16  ;;  %s5064_s19 = scalar_lea.hbm %s5288_s6, 64 }
  0x8a   :  { %p5065_p8 = scmp.lt.s32.totalorder %s5061_s25, %s5288_s6  ;;  %p5066_p9 = scmp.lt.s32.totalorder %s5064_s19, %s5062_s16 }
  0x8c   :  { %p5067_p10 = por %p5066_p9, %p5065_p8 }
  0x8e   :  { %p5068_p11 = pnand %p5067_p10, %p5063_p7 }
  0x90   :  { %5071 = shalt.err (!%p5068_p11)
}
  0x91   :  { %212 = dma.hbm_to_vmem [thread:$0]  %s5356_s28, 1024, %s207_s11, [#allocation14], %s5124_s22, %s5124_s22, %s5125_s23  }
  0x92   :  { %5084 = dma.done.wait [#allocation3], 512  }
  0x93   :  { %5085 = vsyncadd [#allocation3], 4294966784 }
  0x94   :  { %5086 = dma.done.wait [#allocation5], 1024  }
  0x95   :  { %5087 = vsyncadd [#allocation5], 4294966272 }
  0x96   :  { %5088 = dma.done.wait [#allocation8], 768  }
  0x97   :  { %5089 = vsyncadd [#allocation8], 4294966528 }
  0x98   :  { %5090 = dma.done.wait [#allocation11], 1024  }
  0x99   :  { %5091 = vsyncadd [#allocation11], 4294966272 }
  0x9a   :  { %5092 = dma.done.wait [#allocation14], 1024  }
  0x9b   :  { %5093 = vsyncadd [#allocation14], 4294966272  ;;  %vm256_vm0 = vcmask 64512   ;;  %v251_v0 = vld [vmem:[%s5158_s9] sm:$0xff]  ;;  %v248_v2 = vld [vmem:[%s5153_s5 + $0x8] sm:$0xff]  ;;  %vm300_vm1 = vcmask 261120  }
  0x9c   :  { %v247_v1 = vld [vmem:[%s5153_s5] sm:$0xff]  ;;  %284 = vmatpush.msra.mxu0 %v251_v0  ;;  %v5133_v10 = vmov 32.0   ;;  %v249_v27 = vld [vmem:[%s5153_s5 + $0x10] sm:$0xff]  ;;  %v250_v28 = vld [vmem:[%s5153_s5 + $0x18] sm:$0xff]  ;;  %s5134_s5 = smov 88   ;;  %s5135_s9 = smov 96  }
  0x9d   :  { %4216 = vmatmul.msk.f32.vlgmr.msra.gmra.mxu0 %vm256_vm0, %v247_v1  ;;  %v5378_v3 = vld [vmem:[%s5163_s13] ss:$0 sm:$0xff]  ;;  %4650 = vrcp.f32 %v5133_v10  ;;  %v413_v29 = vld [vmem:[#allocation2 + $0x18] sm:$0xff]  ;;  %v412_v30 = vld [vmem:[#allocation2 + $0x10] sm:$0xff]  ;;  %s5136_s13 = smov 120   ;;  %vm503_vm9 = vcmask 130048  }
  0x9e   :  { %447 = vmatpush.msrb.mxu0 %v413_v29  ;;  %4456 = vmatpush.msra.mxu1 %v413_v29  ;;  %v411_v31 = vld [vmem:[#allocation2 + $0x8] sm:$0xff]  ;;  %v410_v32 = vld [vmem:[#allocation2] sm:$0xff]  ;;  %s5140_s6 = smov 56   ;;  %s5141_s22 = smov 48  }
  0x9f   :  { %v5405_v47 = vld [vmem:[%s5168_s17] ss:$0 sm:$0xff]  ;;  %s5137_s17 = smov 80   ;;  %s5142_s23 = smov 72  }
  0xa0   :  { %448 = vmatpush.msrb.mxu0 %v412_v30  ;;  %4457 = vmatpush.msra.mxu1 %v412_v30  ;;  %v5408_v51 = vld [vmem:[%s5173_s21] ss:$0 sm:$0xff]  ;;  %s5138_s21 = smov 112   ;;  %s5143_s18 = smov 104  }
  0xa1   :  { %v5417_v63 = vld [vmem:[%s5183_s29] ss:$0 sm:$0xff]  ;;  %s5139_s29 = smov 64   ;;  %s5144_s7 = smov 40  }
  0xa2   :  { %449 = vmatpush.msrb.mxu0 %v411_v31  ;;  %4458 = vmatpush.msra.mxu1 %v411_v31  ;;  %s6815_s20 = sld [smem:[#allocation21_spill]] }
  0xa3   :  { %v4651_v11 = vpop.eup %4650  ;;  %s6816_s0 = sld [smem:[#allocation23_spill]] }
  0xa4   :  { %v314_v12 = vmul.f32 32.0, %v4651_v11  ;;  %vm318_vm2 = vweird.f32 %v4651_v11  ;;  %450 = vmatpush.msrb.mxu0 %v410_v32  ;;  %4459 = vmatpush.msra.mxu1 %v410_v32  ;;  %s6817_s24 = sld [smem:[#allocation22_spill]] }
  0xa5   :  { %4217 = vmatmul.msk.f32.gmra.mxu0 %vm256_vm0, %v248_v2  ;;  %s6818_s15 = sld [smem:[#allocation24_spill]] }
  0xa6   :  { %v315_v13 = vsub.f32 1.0, %v314_v12  ;;  %s6819_s26 = sld [smem:[#allocation25_spill]] }
  0xa7   :  { %s6820_s28 = sld [smem:[#allocation26_spill]] }
  0xa8   :  { %v316_v14 = vmul.f32 %v4651_v11, %v315_v13  ;;  %s6821_s4 = sld [smem:[#allocation27_spill]] }
  0xa9   :  { %s6822_s3 = sld [smem:[#allocation28_spill]] }
  0xaa   :  { %v317_v15 = vadd.f32 %v4651_v11, %v316_v14  ;;  %s6823_s30 = sld [smem:[#allocation29_spill]] }
  0xab   :  { %s6824_s2 = sld [smem:[#allocation30_spill]] }
  0xac   :  { %v5390_v16 = vsel %vm318_vm2, %v4651_v11, %v317_v15  ;;  %s6825_s10 = sld [smem:[#allocation31_spill]] }
  0xad   :  { %4218 = vmatmul.msk.f32.gmra.mxu0 %vm256_vm0, %v249_v27 }
  0xb5   :  { %4219 = vmatmul.msk.f32.gmra.mxu0 %vm256_vm0, %v250_v28 }
 0x11a   :  { %v286_v4 = vpop.f32.mrf.mxu0 }
 0x11b   :  { %v5381_v5 = vadd.f32 %v5378_v3, %v286_v4 }
 0x11d   :  { %v301_v6 = vsel %vm300_vm1, %v5381_v5, 0.0 }
 0x11e   :  { %302 = vadd.xlane.f32.xlu0 %v301_v6 }
 0x122   :  { %v289_v7 = vpop.f32.mrf.mxu0 }
 0x123   :  { %v5386_v8 = vadd.f32 %v5378_v3, %v289_v7 }
 0x125   :  { %v304_v9 = vsel %vm300_vm1, %v5386_v8, 0.0 }
 0x126   :  { %305 = vadd.xlane.f32.xlu0 %v304_v9 }
 0x12a   :  { %v292_v61 = vpop.f32.mrf.mxu0 }
 0x12b   :  { %v5443_v9 = vadd.f32 %v5378_v3, %v292_v61 }
 0x12d   :  { %v307_v10 = vsel %vm300_vm1, %v5443_v9, 0.0 }
 0x132   :  { %v295_v62 = vpop.f32.mrf.mxu0 }
 0x133   :  { %v5438_v6 = vadd.f32 %v5378_v3, %v295_v62 }
 0x135   :  { %v310_v7 = vsel %vm300_vm1, %v5438_v6, 0.0 }
 0x191   :  { %v303_v17 = vpop.xlane.xlu0 %302 }
 0x192   :  { %v320_v18 = vmul.f32 %v5390_v16, %v303_v17 }
 0x194   :  { %v324_v19 = vsub.f32 %v5381_v5, %v320_v18 }
 0x196   :  { %v328_v20 = vmul.f32 %v324_v19, %v324_v19 }
 0x198   :  { %v332_v21 = vsel %vm300_vm1, %v328_v20, 0.0 }
 0x199   :  { %333 = vadd.xlane.f32.xlu1 %v332_v21  ;;  %v306_v22 = vpop.xlane.xlu0 %305 }
 0x19a   :  { %v321_v23 = vmul.f32 %v5390_v16, %v306_v22 }
 0x19c   :  { %v325_v24 = vsub.f32 %v5386_v8, %v321_v23 }
 0x19e   :  { %v329_v25 = vmul.f32 %v325_v24, %v325_v24 }
 0x1a0   :  { %v335_v26 = vsel %vm300_vm1, %v329_v25, 0.0 }
 0x1a1   :  { %336 = vadd.xlane.f32.xlu1 %v335_v26 }
 0x20c   :  { %v334_v33 = vpop.xlane.xlu1 %333 }
 0x20d   :  { %v344_v34 = vmul.f32 %v334_v33, %v5390_v16 }
 0x20f   :  { %v348_v35 = vadd.f32 1e-05, %v344_v34 }
 0x211   :  { %4652 = vrsqrt.f32 %v348_v35  ;;  %vm358_vm4 = vweird.f32 %v348_v35 }
 0x214   :  { %v337_v36 = vpop.xlane.xlu1 %336 }
 0x215   :  { %v345_v37 = vmul.f32 %v337_v36, %v5390_v16 }
 0x217   :  { %v4653_v38 = vpop.eup %4652  ;;  %v349_v39 = vadd.f32 1e-05, %v345_v37 }
 0x218   :  { %v353_v40 = vmul.f32 %v4653_v38, %v348_v35  ;;  %vm359_vm3 = vweird.f32 %v4653_v38 }
 0x219   :  { %4654 = vrsqrt.f32 %v349_v39  ;;  %vm360_vm5 = vmor %vm358_vm4, %vm359_vm3  ;;  %vm368_vm7 = vweird.f32 %v349_v39 }
 0x21a   :  { %v354_v41 = vmul.f32 %v4653_v38, %v353_v40 }
 0x21c   :  { %v355_v42 = vmul.f32 0.5, %v354_v41 }
 0x21e   :  { %v356_v43 = vsub.f32 1.5, %v355_v42 }
 0x21f   :  { %v4655_v44 = vpop.eup %4654 }
 0x220   :  { %v357_v45 = vmul.f32 %v4653_v38, %v356_v43  ;;  %v363_v46 = vmul.f32 %v4655_v44, %v349_v39  ;;  %vm369_vm6 = vweird.f32 %v4655_v44 }
 0x221   :  { %vm370_vm8 = vmor %vm368_vm7, %vm369_vm6 }
 0x222   :  { %v361_v48 = vsel %vm360_vm5, %v4653_v38, %v357_v45  ;;  %v364_v49 = vmul.f32 %v4655_v44, %v363_v46 }
 0x223   :  { %v392_v50 = vmul.f32 %v361_v48, %v324_v19 }
 0x224   :  { %v365_v52 = vmul.f32 0.5, %v364_v49 }
 0x225   :  { %v399_v53 = vmul.f32 %v5405_v47, %v392_v50 }
 0x226   :  { %v366_v54 = vsub.f32 1.5, %v365_v52 }
 0x227   :  { %v406_v55 = vadd.f32 %v5408_v51, %v399_v53 }
 0x228   :  { %v367_v56 = vmul.f32 %v4655_v44, %v366_v54 }
 0x229   :  { %4220 = vmatmul.msk.f32.vlgmr.msrb.gmra.mxu0 %vm300_vm1, %v406_v55 }
 0x22a   :  { %v371_v57 = vsel %vm370_vm8, %v4655_v44, %v367_v56  ;;  %vm1669_vm8 = vcmask 523264  }
 0x22b   :  { %v393_v58 = vmul.f32 %v371_v57, %v325_v24 }
 0x22d   :  { %v400_v59 = vmul.f32 %v5405_v47, %v393_v58 }
 0x22f   :  { %v407_v60 = vadd.f32 %v5408_v51, %v400_v59 }
 0x231   :  { %4221 = vmatmul.msk.f32.gmra.mxu0 %vm300_vm1, %v407_v60 }
 0x2a6   :  { %v452_v0 = vpop.f32.mrf.mxu0 }
 0x2a7   :  { %v5420_v1 = vadd.f32 %v5417_v63, %v452_v0 }
 0x2a9   :  { %599 = vrot.lane.b32.xlu1 %v5420_v1, %s5134_s5 }
 0x2ae   :  { %v455_v2 = vpop.f32.mrf.mxu0 }
 0x2af   :  { %v5425_v4 = vadd.f32 %v5417_v63, %v455_v2 }
 0x2b1   :  { %601 = vrot.lane.b32.xlu0 %v5425_v4, %s5134_s5  ;;  %468 = vrot.lane.b32.xlu2 %v5425_v4, %s5135_s9  ;;  %v5493_v41 = vpack.i.bf16 %v5420_v1, %v5425_v4 }
 0x2b9   :  { %597 = vrot.lane.b32.xlu0 %v5425_v4, %s5136_s13  ;;  %466 = vrot.lane.b32.xlu2 %v5420_v1, %s5135_s9 }
 0x2c1   :  { %595 = vrot.lane.b32.xlu2 %v5420_v1, %s5136_s13 }
 0x2d3   :  { %311 = vadd.xlane.f32.xlu1 %v310_v7 }
 0x2ea   :  { %308 = vadd.xlane.f32.xlu2 %v307_v10 }
 0x2ec   :  { %728 = vrot.lane.b32.xlu1 %v5420_v1, %s5137_s17 }
 0x30b   :  { %v469_v11 = vpop.permute.xlu2 %468 }
 0x30c   :  { %4224 = vmatpush.xpose.msk.msra.mxu3 %vm256_vm0, %v469_v11 }
 0x313   :  { %v467_v12 = vpop.permute.xlu2 %466 }
 0x314   :  { %4225 = vmatpush.xpose.msk.msra.mxu3 %vm256_vm0, %v467_v12 }
 0x317   :  { %4226 = vmatmul.msk.f32.vlgmr.msra.gmra.mxu3 %vm256_vm0, %v5420_v1 }
 0x31b   :  { %v600_v13 = vpop.permute.xlu1 %599  ;;  %v596_v14 = vpop.permute.xlu2 %595 }
 0x31f   :  { %4227 = vmatmul.msk.f32.gmra.mxu3 %vm256_vm0, %v5425_v4 }
 0x323   :  { %v602_v3 = vpop.permute.xlu0 %601 }
 0x324   :  { %4232 = vmatpush.xpose.msk.msra.mxu2 %vm256_vm0, %v602_v3 }
 0x328   :  { %4233 = vmatpush.xpose.msk.msra.mxu2 %vm256_vm0, %v600_v13 }
 0x32b   :  { %4234 = vmatmul.msk.f32.vlgmr.msra.gmra.mxu2 %vm256_vm0, %v596_v14  ;;  %v598_v15 = vpop.permute.xlu0 %597 }
 0x333   :  { %4235 = vmatmul.msk.f32.gmra.mxu2 %vm256_vm0, %v598_v15 }
 0x346   :  { %v312_v17 = vpop.xlane.xlu1 %311 }
 0x347   :  { %v323_v18 = vmul.f32 %v5390_v16, %v312_v17 }
 0x349   :  { %v5461_v19 = vsub.f32 %v5438_v6, %v323_v18 }
 0x34b   :  { %v331_v20 = vmul.f32 %v5461_v19, %v5461_v19 }
 0x34d   :  { %v341_v21 = vsel %vm300_vm1, %v331_v20, 0.0 }
 0x34e   :  { %342 = vadd.xlane.f32.xlu2 %v341_v21 }
 0x35d   :  { %v309_v22 = vpop.xlane.xlu2 %308 }
 0x35e   :  { %v322_v23 = vmul.f32 %v5390_v16, %v309_v22  ;;  %v729_v43 = vpop.permute.xlu1 %728 }
 0x360   :  { %v326_v24 = vsub.f32 %v5443_v9, %v322_v23 }
 0x362   :  { %v330_v25 = vmul.f32 %v326_v24, %v326_v24 }
 0x364   :  { %v338_v26 = vsel %vm300_vm1, %v330_v25, 0.0 }
 0x365   :  { %339 = vadd.xlane.f32.xlu0 %v338_v26 }
 0x366   :  { %730 = vrot.lane.b32.xlu2 %v5425_v4, %s5137_s17 }
 0x36e   :  { %726 = vrot.lane.b32.xlu2 %v5425_v4, %s5138_s21 }
 0x379   :  { %724 = vrot.lane.b32.xlu0 %v5420_v1, %s5138_s21 }
 0x39a   :  { %v495_v27 = vpop.f32.mrf.mxu3 }
 0x39b   :  { %v5475_v28 = vmul.f32 0.35355338, %v495_v27 }
 0x39d   :  { %v504_v29 = vsel %vm503_vm9, %v5475_v28, -inf }
 0x39e   :  { %505 = vmax.xlane.f32.xlu2 %v504_v29 }
 0x3a2   :  { %v498_v30 = vpop.f32.mrf.mxu3 }
 0x3a3   :  { %v5479_v31 = vmul.f32 0.35355338, %v498_v30 }
 0x3a5   :  { %v507_v32 = vsel %vm503_vm9, %v5479_v31, -inf }
 0x3a6   :  { %508 = vmax.xlane.f32.xlu0 %v507_v32 }
 0x3ae   :  { %v628_v33 = vpop.f32.mrf.mxu2 }
 0x3af   :  { %v5483_v34 = vmul.f32 0.35355338, %v628_v33 }
 0x3b1   :  { %v636_v35 = vsel %vm503_vm9, %v5483_v34, -inf }
 0x3b2   :  { %637 = vmax.xlane.f32.xlu1 %v636_v35 }
 0x3b6   :  { %v631_v36 = vpop.f32.mrf.mxu2 }
 0x3b7   :  { %v5487_v37 = vmul.f32 0.35355338, %v631_v36 }
 0x3b9   :  { %v639_v38 = vsel %vm503_vm9, %v5487_v37, -inf }
 0x3ba   :  { %640 = vmax.xlane.f32.xlu2 %v639_v38 }
 0x3c1   :  { %v343_v39 = vpop.xlane.xlu2 %342 }
 0x3c2   :  { %v347_v42 = vmul.f32 %v343_v39, %v5390_v16 }
 0x3c4   :  { %v351_v44 = vadd.f32 1e-05, %v347_v42 }
 0x3c6   :  { %4656 = vrsqrt.f32 %v351_v44  ;;  %vm388_vm14 = vweird.f32 %v351_v44 }
 0x3c9   :  { %v731_v40 = vpop.permute.xlu2 %730 }
 0x3ca   :  { %4240 = vmatpush.xpose.msk.msrb.mxu1 %vm256_vm0, %v731_v40 }
 0x3cb   :  { %4513 = vrot.lane.b32.xlu1 %v5493_v41, %s5139_s29 }
 0x3cc   :  { %v4657_v46 = vpop.eup %4656 }
 0x3cd   :  { %v383_v50 = vmul.f32 %v4657_v46, %v351_v44  ;;  %vm389_vm11 = vweird.f32 %v4657_v46 }
 0x3ce   :  { %4241 = vmatpush.xpose.msk.msrb.mxu1 %vm256_vm0, %v729_v43  ;;  %vm390_vm15 = vmor %vm388_vm14, %vm389_vm11 }
 0x3cf   :  { %v384_v52 = vmul.f32 %v4657_v46, %v383_v50 }
 0x3d1   :  { %v385_v54 = vmul.f32 0.5, %v384_v52  ;;  %v727_v14 = vpop.permute.xlu2 %726 }
 0x3d3   :  { %v386_v57 = vsub.f32 1.5, %v385_v54 }
 0x3d5   :  { %v387_v60 = vmul.f32 %v4657_v46, %v386_v57 }
 0x3d7   :  { %v391_v2 = vsel %vm390_vm15, %v4657_v46, %v387_v60 }
 0x3d8   :  { %v340_v45 = vpop.xlane.xlu0 %339  ;;  %v395_v11 = vmul.f32 %v391_v2, %v5461_v19 }
 0x3d9   :  { %v346_v48 = vmul.f32 %v340_v45, %v5390_v16 }
 0x3da   :  { %v402_v12 = vmul.f32 %v5405_v47, %v395_v11  ;;  %v5541_v11 = vld [vmem:[#allocation4] sm:$0xff] }
 0x3db   :  { %v350_v49 = vadd.f32 1e-05, %v346_v48 }
 0x3dc   :  { %v409_v3 = vadd.f32 %v5408_v51, %v402_v12 }
 0x3dd   :  { %4658 = vrsqrt.f32 %v350_v49  ;;  %vm378_vm12 = vweird.f32 %v350_v49 }
 0x3e3   :  { %v4659_v53 = vpop.eup %4658 }
 0x3e4   :  { %v373_v55 = vmul.f32 %v4659_v53, %v350_v49  ;;  %vm379_vm10 = vweird.f32 %v4659_v53 }
 0x3e5   :  { %vm380_vm13 = vmor %vm378_vm12, %vm379_vm10 }
 0x3e6   :  { %v374_v56 = vmul.f32 %v4659_v53, %v373_v55 }
 0x3e8   :  { %v375_v58 = vmul.f32 0.5, %v374_v56 }
 0x3ea   :  { %v376_v59 = vsub.f32 1.5, %v375_v58 }
 0x3eb   :  { %v725_v13 = vpop.permute.xlu0 %724 }
 0x3ec   :  { %v377_v61 = vmul.f32 %v4659_v53, %v376_v59 }
 0x3ee   :  { %v381_v62 = vsel %vm380_vm13, %v4659_v53, %v377_v61 }
 0x3ef   :  { %v394_v0 = vmul.f32 %v381_v62, %v326_v24 }
 0x3f1   :  { %v401_v7 = vmul.f32 %v5405_v47, %v394_v0 }
 0x3f3   :  { %v408_v10 = vadd.f32 %v5408_v51, %v401_v7 }
 0x3f5   :  { %4222 = vmatmul.msk.f32.vlgmr.msra.gmra.mxu1 %vm300_vm1, %v408_v10 }
 0x3fd   :  { %4223 = vmatmul.msk.f32.gmra.mxu1 %vm300_vm1, %v409_v3 }
 0x405   :  { %4242 = vmatmul.msk.f32.vlgmr.msrb.gmra.mxu1 %vm256_vm0, %v725_v13  ;;  %v5544_v13 = vld [vmem:[#allocation4 + $0x8] sm:$0xff] }
 0x40d   :  { %4243 = vmatmul.msk.f32.gmra.mxu1 %vm256_vm0, %v727_v14 }
 0x411   :  { %v506_v15 = vpop.xlane.xlu2 %505 }
 0x412   :  { %v510_v17 = vsub.f32 %v5475_v28, %v506_v15 }
 0x414   :  { %v512_v18 = vmul.f32 1.442695, %v510_v17 }
 0x416   :  { %4660 = vpow2.f32 %v512_v18 }
 0x419   :  { %v509_v19 = vpop.xlane.xlu0 %508 }
 0x41a   :  { %v511_v20 = vsub.f32 %v5479_v31, %v509_v19 }
 0x41c   :  { %v4661_v21 = vpop.eup %4660  ;;  %v514_v47 = vmul.f32 1.442695, %v511_v20 }
 0x41d   :  { %v516_v51 = vsel %vm503_vm9, %v4661_v21, 0.0 }
 0x41e   :  { %4662 = vpow2.f32 %v514_v47  ;;  %517 = vadd.xlane.f32.xlu0 %v516_v51 }
 0x424   :  { %v4663_v22 = vpop.eup %4662 }
 0x425   :  { %v638_v23 = vpop.xlane.xlu1 %637  ;;  %v519_v24 = vsel %vm503_vm9, %v4663_v22, 0.0 }
 0x426   :  { %v642_v25 = vsub.f32 %v5483_v34, %v638_v23  ;;  %520 = vadd.xlane.f32.xlu2 %v519_v24 }
 0x428   :  { %v644_v26 = vmul.f32 1.442695, %v642_v25 }
 0x42a   :  { %4664 = vpow2.f32 %v644_v26  ;;  %v5562_v26 = vld [vmem:[#allocation4 + $0x10] sm:$0xff] }
 0x42d   :  { %v641_v27 = vpop.xlane.xlu2 %640 }
 0x42e   :  { %v643_v28 = vsub.f32 %v5487_v37, %v641_v27 }
 0x430   :  { %v4665_v29 = vpop.eup %4664  ;;  %v646_v30 = vmul.f32 1.442695, %v643_v28 }
 0x431   :  { %v648_v31 = vsel %vm503_vm9, %v4665_v29, 0.0 }
 0x432   :  { %4666 = vpow2.f32 %v646_v30  ;;  %649 = vadd.xlane.f32.xlu0 %v648_v31 }
 0x438   :  { %v4667_v32 = vpop.eup %4666 }
 0x439   :  { %v651_v33 = vsel %vm503_vm9, %v4667_v32, 0.0 }
 0x43a   :  { %652 = vadd.xlane.f32.xlu0 %v651_v33 }
 0x43d   :  { %v4514_v35 = vpop.permute.xlu1 %4513 }
 0x43e   :  { %4518 = vrot.lane.b32.xlu2 %v5493_v41, %s5140_s6  ;;  %v4515_v34 = vunpack.i.l.bf16 %v4514_v35  ;;  %v4516_v36 = vunpack.i.h.bf16 %v4514_v35 }
 0x440   :  { %552 = vmatpush.msrb.mxu3 %v4515_v34 }
 0x442   :  { %553 = vmatpush.msrb.mxu3 %v4516_v36 }
 0x444   :  { %582 = vmatpush.msra.mxu3 %v5541_v11 }
 0x446   :  { %4523 = vrot.lane.b32.xlu2 %v5493_v41, %s5141_s22 }
 0x44e   :  { %859 = vrot.lane.b32.xlu2 %v5425_v4, %s5142_s23 }
 0x456   :  { %853 = vrot.lane.b32.xlu2 %v5420_v1, %s5143_s18 }
 0x45e   :  { %855 = vrot.lane.b32.xlu2 %v5425_v4, %s5143_s18 }
 0x472   :  { %v458_v37 = vpop.f32.mrf.mxu1 }
 0x473   :  { %v5535_v56 = vadd.f32 %v5417_v63, %v458_v37 }
 0x47a   :  { %v5528_v38 = vpop.f32.mrf.mxu1 }
 0x47b   :  { %v5556_v23 = vadd.f32 %v5417_v63, %v5528_v38 }
 0x482   :  { %v757_v39 = vpop.f32.mrf.mxu1 }
 0x483   :  { %v763_v40 = vmul.f32 0.35355338, %v757_v39 }
 0x485   :  { %v765_v42 = vsel %vm503_vm9, %v763_v40, -inf }
 0x486   :  { %766 = vmax.xlane.f32.xlu0 %v765_v42 }
 0x48a   :  { %v760_v43 = vpop.f32.mrf.mxu1 }
 0x48b   :  { %v764_v44 = vmul.f32 0.35355338, %v760_v43 }
 0x48d   :  { %v768_v45 = vsel %vm503_vm9, %v764_v44, -inf }
 0x48e   :  { %769 = vmax.xlane.f32.xlu1 %v768_v45 }
 0x491   :  { %v518_v46 = vpop.xlane.xlu0 %517 }
 0x492   :  { %4668 = vrcp.f32 %v518_v46 }
 0x498   :  { %v4669_v48 = vpop.eup %4668 }
 0x499   :  { %v521_v49 = vpop.xlane.xlu2 %520  ;;  %v524_v50 = vmul.f32 %v4669_v48, %v4661_v21 }
 0x49a   :  { %4670 = vrcp.f32 %v521_v49 }
 0x49b   :  { %4228 = vmatmul.msk.f32.vlgmr.msrb.gmra.mxu3 %vm503_vm9, %v524_v50 }
 0x49c   :  { %714 = vmatpush.msrb.mxu3 %v5544_v13 }
 0x4a0   :  { %v4671_v4 = vpop.eup %4670 }
 0x4a1   :  { %v4519_v52 = vpop.permute.xlu2 %4518  ;;  %v525_v53 = vmul.f32 %v4671_v4, %v4663_v22 }
 0x4a2   :  { %v4520_v54 = vunpack.i.l.bf16 %v4519_v52  ;;  %v4521_v55 = vunpack.i.h.bf16 %v4519_v52 }
 0x4a3   :  { %4229 = vmatmul.msk.f32.gmra.mxu3 %vm503_vm9, %v525_v53 }
 0x4a4   :  { %684 = vmatpush.msra.mxu0 %v4520_v54 }
 0x4a5   :  { %v650_v57 = vpop.xlane.xlu0 %649 }
 0x4a6   :  { %4672 = vrcp.f32 %v650_v57  ;;  %685 = vmatpush.msra.mxu0 %v4521_v55 }
 0x4a7   :  { %984 = vrot.lane.b32.xlu1 %v5535_v56, %s5135_s9 }
 0x4a8   :  { %843 = vmatpush.msrb.mxu0 %v5562_v26 }
 0x4a9   :  { %v4524_v58 = vpop.permute.xlu2 %4523 }
 0x4aa   :  { %v4525_v59 = vunpack.i.l.bf16 %v4524_v58  ;;  %v4526_v61 = vunpack.i.h.bf16 %v4524_v58 }
 0x4ac   :  { %v4673_v60 = vpop.eup %4672  ;;  %813 = vmatpush.msrb.mxu2 %v4525_v59 }
 0x4ad   :  { %v656_v62 = vmul.f32 %v4673_v60, %v4665_v29  ;;  %v653_v0 = vpop.xlane.xlu0 %652 }
 0x4ae   :  { %4674 = vrcp.f32 %v653_v0  ;;  %814 = vmatpush.msrb.mxu2 %v4526_v61 }
 0x4af   :  { %4236 = vmatmul.msk.f32.vlgmr.msra.gmra.mxu0 %vm503_vm9, %v656_v62 }
 0x4b1   :  { %v860_v51 = vpop.permute.xlu2 %859 }
 0x4b4   :  { %v4675_v2 = vpop.eup %4674 }
 0x4b5   :  { %v657_v7 = vmul.f32 %v4675_v2, %v4667_v32 }
 0x4b7   :  { %4237 = vmatmul.msk.f32.gmra.mxu0 %vm503_vm9, %v657_v7 }
 0x4b9   :  { %v854_v32 = vpop.permute.xlu2 %853 }
 0x4c1   :  { %v856_v35 = vpop.permute.xlu2 %855 }
 0x4f9   :  { %v767_v10 = vpop.xlane.xlu0 %766 }
 0x4fa   :  { %v771_v12 = vsub.f32 %v763_v40, %v767_v10 }
 0x4fc   :  { %v773_v3 = vmul.f32 1.442695, %v771_v12 }
 0x4fe   :  { %4676 = vpow2.f32 %v773_v3 }
 0x501   :  { %v770_v14 = vpop.xlane.xlu1 %769 }
 0x502   :  { %v772_v15 = vsub.f32 %v764_v44, %v770_v14 }
 0x504   :  { %v4677_v17 = vpop.eup %4676  ;;  %v775_v18 = vmul.f32 1.442695, %v772_v15 }
 0x505   :  { %v777_v19 = vsel %vm503_vm9, %v4677_v17, 0.0 }
 0x506   :  { %4678 = vpow2.f32 %v775_v18  ;;  %778 = vadd.xlane.f32.xlu0 %v777_v19 }
 0x50c   :  { %v4679_v20 = vpop.eup %4678 }
 0x50d   :  { %v780_v21 = vsel %vm503_vm9, %v4679_v20, 0.0 }
 0x50e   :  { %781 = vadd.xlane.f32.xlu0 %v780_v21 }
 0x519   :  { %v985_v34 = vpop.permute.xlu1 %984 }
 0x51e   :  { %v555_v47 = vpop.f32.mrf.mxu3 }
 0x51f   :  { %4230 = vmatmul.msk.f32.vlgmr.msra.gmra.mxu3 %vm256_vm0, %v555_v47 }
 0x520   :  { %4248 = vmatpush.xpose.msk.msra.mxu3 %vm256_vm0, %v860_v51 }
 0x522   :  { %857 = vrot.lane.b32.xlu0 %v5420_v1, %s5142_s23 }
 0x526   :  { %v558_v22 = vpop.f32.mrf.mxu3 }
 0x527   :  { %4231 = vmatmul.msk.f32.gmra.mxu3 %vm256_vm0, %v558_v22 }
 0x52a   :  { %986 = vrot.lane.b32.xlu0 %v5556_v23, %s5135_s9 }
 0x52c   :  { %v687_v24 = vpop.f32.mrf.mxu0 }
 0x52f   :  { %4238 = vmatmul.msk.f32.vlgmr.msrb.gmra.mxu3 %vm256_vm0, %v687_v24 }
 0x534   :  { %v690_v25 = vpop.f32.mrf.mxu0 }
 0x537   :  { %4239 = vmatmul.msk.f32.gmra.mxu3 %vm256_vm0, %v690_v25 }
 0x579   :  { %v779_v27 = vpop.xlane.xlu0 %778 }
 0x57a   :  { %4680 = vrcp.f32 %v779_v27 }
 0x580   :  { %v4681_v1 = vpop.eup %4680 }
 0x581   :  { %v782_v28 = vpop.xlane.xlu0 %781  ;;  %v785_v29 = vmul.f32 %v4681_v1, %v4677_v17  ;;  %v5601_v17 = vpack.i.bf16 %v5535_v56, %v5556_v23 }
 0x582   :  { %4682 = vrcp.f32 %v782_v28 }
 0x583   :  { %4244 = vmatmul.msk.f32.vlgmr.msrb.gmra.mxu2 %vm503_vm9, %v785_v29 }
 0x588   :  { %v4683_v63 = vpop.eup %4682 }
 0x589   :  { %v786_v30 = vmul.f32 %v4683_v63, %v4679_v20 }
 0x58b   :  { %4245 = vmatmul.msk.f32.gmra.mxu2 %vm503_vm9, %v786_v30 }
 0x594   :  { %v858_v31 = vpop.permute.xlu0 %857 }
 0x595   :  { %4249 = vmatpush.xpose.msk.msra.mxu3 %vm256_vm0, %v858_v31 }
 0x598   :  { %4250 = vmatmul.msk.f32.vlgmr.msra.gmra.mxu3 %vm256_vm0, %v854_v32 }
 0x59c   :  { %v987_v33 = vpop.permute.xlu0 %986 }
 0x59d   :  { %4256 = vmatpush.xpose.msk.msra.mxu0 %vm256_vm0, %v987_v33 }
 0x5a0   :  { %4251 = vmatmul.msk.f32.gmra.mxu3 %vm256_vm0, %v856_v35  ;;  %v5626_v35 = vld [vmem:[#allocation4 + $0x18] sm:$0xff] }
 0x5a1   :  { %4257 = vmatpush.xpose.msk.msra.mxu0 %vm256_vm0, %v985_v34  ;;  %972 = vmatpush.msra.mxu2 %v5626_v35 }
 0x5a2   :  { %v5572_v36 = vpop.f32.mrf.mxu3 }
 0x5aa   :  { %v5574_v37 = vpop.f32.mrf.mxu3 }
 0x5b2   :  { %v5577_v39 = vpop.f32.mrf.mxu3 }
 0x5ba   :  { %v5580_v42 = vpop.f32.mrf.mxu3 }
 0x606   :  { %v816_v38 = vpop.f32.mrf.mxu2 }
 0x607   :  { %4246 = vmatmul.msk.f32.vlgmr.msrb.gmra.mxu0 %vm256_vm0, %v816_v38 }
 0x60e   :  { %v819_v40 = vpop.f32.mrf.mxu2 }
 0x60f   :  { %4247 = vmatmul.msk.f32.gmra.mxu0 %vm256_vm0, %v819_v40 }
 0x617   :  { %4258 = vmatmul.msk.f32.vlgmr.msra.gmra.mxu0 %vm256_vm0, %v5535_v56 }
 0x61b   :  { %v886_v43 = vpop.f32.mrf.mxu3 }
 0x61c   :  { %v892_v44 = vmul.f32 0.35355338, %v886_v43 }
 0x61e   :  { %v894_v45 = vsel %vm503_vm9, %v892_v44, -inf }
 0x61f   :  { %4259 = vmatmul.msk.f32.gmra.mxu0 %vm256_vm0, %v5556_v23  ;;  %895 = vmax.xlane.f32.xlu2 %v894_v45 }
 0x623   :  { %v889_v46 = vpop.f32.mrf.mxu3 }
 0x624   :  { %v893_v48 = vmul.f32 0.35355338, %v889_v46 }
 0x626   :  { %v897_v49 = vsel %vm503_vm9, %v893_v48, -inf }
 0x627   :  { %898 = vmax.xlane.f32.xlu0 %v897_v49 }
 0x637   :  { %4528 = vrot.lane.b32.xlu2 %v5493_v41, %s5144_s7 }
 0x684   :  { %v5590_v50 = vpop.f32.mrf.mxu0 }
 0x68c   :  { %v5592_v57 = vpop.f32.mrf.mxu0 }
 0x692   :  { %v896_v4 = vpop.xlane.xlu2 %895 }
 0x693   :  { %v900_v52 = vsub.f32 %v892_v44, %v896_v4 }
 0x694   :  { %v1013_v2 = vpop.f32.mrf.mxu0 }
 0x695   :  { %v902_v53 = vmul.f32 1.442695, %v900_v52  ;;  %v1019_v10 = vmul.f32 0.35355338, %v1013_v2 }
 0x697   :  { %4684 = vpow2.f32 %v902_v53  ;;  %v1021_v12 = vsel %vm503_vm9, %v1019_v10, -inf }
 0x69a   :  { %v4529_v54 = vpop.permute.xlu2 %4528  ;;  %v899_v55 = vpop.xlane.xlu0 %898 }
 0x69b   :  { %v4530_v58 = vunpack.i.l.bf16 %v4529_v54  ;;  %v901_v59 = vsub.f32 %v893_v48, %v899_v55  ;;  %v4531_v61 = vunpack.i.h.bf16 %v4529_v54 }
 0x69c   :  { %v1016_v3 = vpop.f32.mrf.mxu0 }
 0x69d   :  { %v4685_v60 = vpop.eup %4684  ;;  %v904_v62 = vmul.f32 1.442695, %v901_v59  ;;  %942 = vmatpush.msra.mxu1 %v4530_v58  ;;  %v1020_v14 = vmul.f32 0.35355338, %v1016_v3 }
 0x69e   :  { %v906_v0 = vsel %vm503_vm9, %v4685_v60, 0.0 }
 0x69f   :  { %4686 = vpow2.f32 %v904_v62  ;;  %907 = vadd.xlane.f32.xlu1 %v906_v0  ;;  %943 = vmatpush.msra.mxu1 %v4531_v61  ;;  %v1024_v15 = vsel %vm503_vm9, %v1020_v14, -inf }
 0x6a1   :  { %1099 = vmatpush.msrb.mxu1 %v5541_v11 }
 0x6a5   :  { %v4687_v41 = vpop.eup %4686 }
 0x6a6   :  { %v909_v7 = vsel %vm503_vm9, %v4687_v41, 0.0 }
 0x6a7   :  { %910 = vadd.xlane.f32.xlu0 %v909_v7 }
 0x6af   :  { %1022 = vmax.xlane.f32.xlu0 %v1021_v12 }
 0x6b7   :  { %1025 = vmax.xlane.f32.xlu0 %v1024_v15 }
 0x6b8   :  { %4533 = vrot.lane.b32.xlu1 %v5601_v17, %s5139_s29 }
 0x6c0   :  { %1113 = vrot.lane.b32.xlu1 %v5535_v56, %s5134_s5 }
 0x6c8   :  { %1109 = vrot.lane.b32.xlu1 %v5535_v56, %s5136_s13 }
 0x6d0   :  { %1242 = vrot.lane.b32.xlu1 %v5535_v56, %s5137_s17 }
 0x6d8   :  { %1240 = vrot.lane.b32.xlu1 %v5556_v23, %s5138_s21 }
 0x712   :  { %v908_v11 = vpop.xlane.xlu1 %907 }
 0x713   :  { %4688 = vrcp.f32 %v908_v11 }
 0x719   :  { %v4689_v18 = vpop.eup %4688 }
 0x71a   :  { %v914_v19 = vmul.f32 %v4689_v18, %v4685_v60  ;;  %v911_v20 = vpop.xlane.xlu0 %910 }
 0x71b   :  { %4690 = vrcp.f32 %v911_v20 }
 0x71c   :  { %4252 = vmatmul.msk.f32.vlgmr.msra.gmra.mxu1 %vm503_vm9, %v914_v19 }
 0x721   :  { %v4691_v21 = vpop.eup %4690 }
 0x722   :  { %v1023_v47 = vpop.xlane.xlu0 %1022  ;;  %v915_v51 = vmul.f32 %v4691_v21, %v4687_v41 }
 0x723   :  { %v1027_v22 = vsub.f32 %v1019_v10, %v1023_v47 }
 0x724   :  { %4253 = vmatmul.msk.f32.gmra.mxu1 %vm503_vm9, %v915_v51 }
 0x725   :  { %v1029_v24 = vmul.f32 1.442695, %v1027_v22 }
 0x727   :  { %4692 = vpow2.f32 %v1029_v24 }
 0x72a   :  { %v4534_v25 = vpop.permute.xlu1 %4533  ;;  %v1026_v27 = vpop.xlane.xlu0 %1025 }
 0x72b   :  { %v4535_v1 = vunpack.i.l.bf16 %v4534_v25  ;;  %v1028_v28 = vsub.f32 %v1020_v14, %v1026_v27  ;;  %v4536_v63 = vunpack.i.h.bf16 %v4534_v25 }
 0x72d   :  { %v4693_v29 = vpop.eup %4692  ;;  %v1031_v30 = vmul.f32 1.442695, %v1028_v28  ;;  %1069 = vmatpush.msrb.mxu3 %v4535_v1 }
 0x72e   :  { %v1033_v31 = vsel %vm503_vm9, %v4693_v29, 0.0 }
 0x72f   :  { %4694 = vpow2.f32 %v1031_v30  ;;  %1070 = vmatpush.msrb.mxu3 %v4536_v63  ;;  %1034 = vadd.xlane.f32.xlu2 %v1033_v31 }
 0x731   :  { %1228 = vmatpush.msra.mxu3 %v5544_v13 }
 0x732   :  { %v1114_v34 = vpop.permute.xlu1 %1113 }
 0x735   :  { %v4695_v32 = vpop.eup %4694 }
 0x736   :  { %v1036_v33 = vsel %vm503_vm9, %v4695_v32, 0.0 }
 0x737   :  { %1037 = vadd.xlane.f32.xlu0 %v1036_v33  ;;  %v5665_v33 = vld [vmem:[%s5193_s8] ss:$0 sm:$0xff]  ;;  %s6814_s8 = sld [smem:[#allocation20_spill]] }
 0x73a   :  { %v1110_v43 = vpop.permute.xlu1 %1109 }
 0x742   :  { %v1243_v49 = vpop.permute.xlu1 %1242 }
 0x747   :  { %1244 = vrot.lane.b32.xlu2 %v5556_v23, %s5137_s17 }
 0x74a   :  { %v1241_v62 = vpop.permute.xlu1 %1240 }
 0x74b   :  { %1115 = vrot.lane.b32.xlu0 %v5556_v23, %s5134_s5 }
 0x753   :  { %1111 = vrot.lane.b32.xlu0 %v5556_v23, %s5136_s13 }
 0x75b   :  { %1238 = vrot.lane.b32.xlu0 %v5535_v56, %s5138_s21 }
 0x799   :  { %v945_v13 = vpop.f32.mrf.mxu1 }
 0x79a   :  { %4254 = vmatmul.msk.f32.vlgmr.msra.gmra.mxu2 %vm256_vm0, %v945_v13  ;;  %v593_v13 = vadd.f32 %v5665_v33, %v5572_v36 }
 0x7a1   :  { %v948_v38 = vpop.f32.mrf.mxu1 }
 0x7a2   :  { %4255 = vmatmul.msk.f32.gmra.mxu2 %vm256_vm0, %v948_v38  ;;  %v1035_v40 = vpop.xlane.xlu2 %1034 }
 0x7a3   :  { %4696 = vrcp.f32 %v1035_v40 }
 0x7a9   :  { %v4697_v44 = vpop.eup %4696 }
 0x7aa   :  { %v1041_v45 = vmul.f32 %v4697_v44, %v4693_v29  ;;  %v1245_v46 = vpop.permute.xlu2 %1244  ;;  %v1038_v48 = vpop.xlane.xlu0 %1037 }
 0x7ab   :  { %4698 = vrcp.f32 %v1038_v48  ;;  %4272 = vmatpush.xpose.msk.msra.mxu1 %vm256_vm0, %v1245_v46 }
 0x7ac   :  { %4260 = vmatmul.msk.f32.vlgmr.msrb.gmra.mxu3 %vm503_vm9, %v1041_v45 }
 0x7af   :  { %4273 = vmatpush.xpose.msk.msra.mxu1 %vm256_vm0, %v1243_v49 }
 0x7b1   :  { %v4699_v4 = vpop.eup %4698 }
 0x7b2   :  { %v1042_v52 = vmul.f32 %v4699_v4, %v4695_v32 }
 0x7b4   :  { %4261 = vmatmul.msk.f32.gmra.mxu3 %vm503_vm9, %v1042_v52 }
 0x7bd   :  { %v1116_v53 = vpop.permute.xlu0 %1115 }
 0x7be   :  { %4264 = vmatpush.xpose.msk.msrb.mxu2 %vm256_vm0, %v1116_v53 }
 0x7c2   :  { %4265 = vmatpush.xpose.msk.msrb.mxu2 %vm256_vm0, %v1114_v34  ;;  %v722_v34 = vadd.f32 %v5577_v39, %v593_v13  ;;  %v1606_v13 = vld [vmem:[#allocation6 + $0x10] sm:$0xff] }
 0x7c5   :  { %4266 = vmatmul.msk.f32.vlgmr.msrb.gmra.mxu2 %vm256_vm0, %v1110_v43  ;;  %v1112_v54 = vpop.permute.xlu0 %1111 }
 0x7cd   :  { %4267 = vmatmul.msk.f32.gmra.mxu2 %vm256_vm0, %v1112_v54  ;;  %v1239_v60 = vpop.permute.xlu0 %1238 }
 0x81d   :  { %v974_v58 = vpop.f32.mrf.mxu2 }
 0x825   :  { %v5641_v61 = vpop.f32.mrf.mxu2 }
 0x82f   :  { %v1072_v55 = vpop.f32.mrf.mxu3 }
 0x830   :  { %4262 = vmatmul.msk.f32.vlgmr.msrb.gmra.mxu1 %vm256_vm0, %v1072_v55 }
 0x837   :  { %v1075_v59 = vpop.f32.mrf.mxu3 }
 0x838   :  { %4263 = vmatmul.msk.f32.gmra.mxu1 %vm256_vm0, %v1075_v59 }
 0x840   :  { %4274 = vmatmul.msk.f32.vlgmr.msra.gmra.mxu1 %vm256_vm0, %v1239_v60 }
 0x848   :  { %v1142_v0 = vpop.f32.mrf.mxu2  ;;  %4275 = vmatmul.msk.f32.gmra.mxu1 %vm256_vm0, %v1241_v62 }
 0x849   :  { %v1148_v41 = vmul.f32 0.35355338, %v1142_v0 }
 0x84b   :  { %v1150_v2 = vsel %vm503_vm9, %v1148_v41, -inf }
 0x84c   :  { %1151 = vmax.xlane.f32.xlu0 %v1150_v2 }
 0x850   :  { %v1145_v7 = vpop.f32.mrf.mxu2 }
 0x851   :  { %v1149_v10 = vmul.f32 0.35355338, %v1145_v7 }
 0x853   :  { %v1153_v12 = vsel %vm503_vm9, %v1149_v10, -inf }
 0x854   :  { %1154 = vmax.xlane.f32.xlu1 %v1153_v12 }
 0x860   :  { %4538 = vrot.lane.b32.xlu0 %v5601_v17, %s5140_s6 }
 0x8ad   :  { %v5649_v3 = vpop.f32.mrf.mxu1 }
 0x8b5   :  { %v5651_v15 = vpop.f32.mrf.mxu1 }
 0x8bd   :  { %v1271_v47 = vpop.f32.mrf.mxu1 }
 0x8be   :  { %v1277_v24 = vmul.f32 0.35355338, %v1271_v47 }
 0x8bf   :  { %v1152_v14 = vpop.xlane.xlu0 %1151 }
 0x8c0   :  { %v1156_v11 = vsub.f32 %v1148_v41, %v1152_v14  ;;  %v1279_v29 = vsel %vm503_vm9, %v1277_v24, -inf }
 0x8c2   :  { %v1158_v18 = vmul.f32 1.442695, %v1156_v11 }
 0x8c4   :  { %4700 = vpow2.f32 %v1158_v18 }
 0x8c5   :  { %v1274_v63 = vpop.f32.mrf.mxu1 }
 0x8c6   :  { %v1278_v31 = vmul.f32 0.35355338, %v1274_v63 }
 0x8c7   :  { %v1155_v19 = vpop.xlane.xlu1 %1154 }
 0x8c8   :  { %v1157_v20 = vsub.f32 %v1149_v10, %v1155_v19  ;;  %v1282_v32 = vsel %vm503_vm9, %v1278_v31, -inf }
 0x8ca   :  { %v4701_v21 = vpop.eup %4700  ;;  %v1160_v51 = vmul.f32 1.442695, %v1157_v20 }
 0x8cb   :  { %v1162_v22 = vsel %vm503_vm9, %v4701_v21, 0.0 }
 0x8cc   :  { %4702 = vpow2.f32 %v1160_v51  ;;  %1163 = vadd.xlane.f32.xlu2 %v1162_v22 }
 0x8d2   :  { %v4703_v25 = vpop.eup %4702  ;;  %v4539_v27 = vpop.permute.xlu0 %4538 }
 0x8d3   :  { %v4540_v1 = vunpack.i.l.bf16 %v4539_v27  ;;  %v1165_v28 = vsel %vm503_vm9, %v4703_v25, 0.0  ;;  %v4541_v30 = vunpack.i.h.bf16 %v4539_v27 }
 0x8d4   :  { %1166 = vadd.xlane.f32.xlu1 %v1165_v28  ;;  %1280 = vmax.xlane.f32.xlu2 %v1279_v29 }
 0x8d5   :  { %1198 = vmatpush.msrb.mxu0 %v4540_v1 }
 0x8d7   :  { %1199 = vmatpush.msrb.mxu0 %v4541_v30 }
 0x8d9   :  { %1357 = vmatpush.msra.mxu0 %v5562_v26  ;;  %v851_v26 = vadd.f32 %v5590_v50, %v722_v34  ;;  %v1605_v34 = vld [vmem:[#allocation6 + $0x8] sm:$0xff] }
 0x8db   :  { %v980_v38 = vadd.f32 %v974_v58, %v851_v26 }
 0x8dc   :  { %1283 = vmax.xlane.f32.xlu1 %v1282_v32  ;;  %v1607_v32 = vld [vmem:[#allocation6 + $0x18] sm:$0xff] }
 0x8dd   :  { %v5672_v40 = vadd.f32 %v980_v38, %v5381_v5  ;;  %v594_v5 = vadd.f32 %v5665_v33, %v5574_v37  ;;  %v1604_v38 = vld [vmem:[#allocation6] sm:$0xff] }
 0x8df   :  { %v1502_v43 = vsel %vm300_vm1, %v5672_v40, 0.0  ;;  %v723_v49 = vadd.f32 %v5580_v42, %v594_v5 }
 0x8e1   :  { %v852_v58 = vadd.f32 %v5592_v57, %v723_v49 }
 0x8e3   :  { %v981_v0 = vadd.f32 %v5641_v61, %v852_v58 }
 0x8e5   :  { %v5686_v42 = vadd.f32 %v981_v0, %v5386_v8  ;;  %v5723_v0 = vld [vmem:[%s6815_s20] ss:$0 sm:$0xff] }
 0x8e7   :  { %v1505_v2 = vsel %vm300_vm1, %v5686_v42, 0.0 }
 0x8ec   :  { %4543 = vrot.lane.b32.xlu2 %v5601_v17, %s5141_s22 }
 0x8f4   :  { %1371 = vrot.lane.b32.xlu2 %v5535_v56, %s5142_s23 }
 0x8fc   :  { %1367 = vrot.lane.b32.xlu2 %v5535_v56, %s5143_s18 }
 0x925   :  { %1503 = vadd.xlane.f32.xlu2 %v1502_v43 }
 0x93f   :  { %v1164_v44 = vpop.xlane.xlu2 %1163 }
 0x940   :  { %4704 = vrcp.f32 %v1164_v44 }
 0x946   :  { %v4705_v56 = vpop.eup %4704 }
 0x947   :  { %v1170_v45 = vmul.f32 %v4705_v56, %v4701_v21  ;;  %v1167_v46 = vpop.xlane.xlu1 %1166  ;;  %v1281_v48 = vpop.xlane.xlu2 %1280 }
 0x948   :  { %4706 = vrcp.f32 %v1167_v46  ;;  %v1285_v36 = vsub.f32 %v1277_v24, %v1281_v48 }
 0x949   :  { %4268 = vmatmul.msk.f32.vlgmr.msrb.gmra.mxu0 %vm503_vm9, %v1170_v45 }
 0x94a   :  { %v1287_v39 = vmul.f32 1.442695, %v1285_v36  ;;  %1645 = vmatpush.msrb.mxu0 %v1607_v32 }
 0x94c   :  { %4708 = vpow2.f32 %v1287_v39  ;;  %1646 = vmatpush.msrb.mxu0 %v1606_v13 }
 0x94e   :  { %v4707_v50 = vpop.eup %4706  ;;  %1647 = vmatpush.msrb.mxu0 %v1605_v34 }
 0x94f   :  { %v1284_v4 = vpop.xlane.xlu1 %1283  ;;  %v4544_v52 = vpop.permute.xlu2 %4543  ;;  %v1171_v53 = vmul.f32 %v4707_v50, %v4703_v25 }
 0x950   :  { %v1286_v54 = vsub.f32 %v1278_v31, %v1284_v4  ;;  %v4545_v55 = vunpack.i.l.bf16 %v4544_v52  ;;  %v4546_v62 = vunpack.i.h.bf16 %v4544_v52  ;;  %1648 = vmatpush.msrb.mxu0 %v1604_v38 }
 0x951   :  { %4269 = vmatmul.msk.f32.gmra.mxu0 %vm503_vm9, %v1171_v53 }
 0x952   :  { %v4709_v59 = vpop.eup %4708  ;;  %v1289_v60 = vmul.f32 1.442695, %v1286_v54  ;;  %1327 = vmatpush.msra.mxu2 %v4545_v55  ;;  %v5717_v54 = vld [vmem:[%s6814_s8] ss:$0 sm:$0xff] }
 0x953   :  { %v1291_v37 = vsel %vm503_vm9, %v4709_v59, 0.0 }
 0x954   :  { %4710 = vpow2.f32 %v1289_v60  ;;  %1292 = vadd.xlane.f32.xlu0 %v1291_v37  ;;  %1328 = vmatpush.msra.mxu2 %v4546_v62 }
 0x956   :  { %1486 = vmatpush.msrb.mxu2 %v5626_v35 }
 0x957   :  { %v1372_v61 = vpop.permute.xlu2 %1371 }
 0x95a   :  { %v4711_v41 = vpop.eup %4710 }
 0x95b   :  { %v1294_v57 = vsel %vm503_vm9, %v4711_v41, 0.0 }
 0x95c   :  { %1295 = vadd.xlane.f32.xlu1 %v1294_v57  ;;  %1506 = vadd.xlane.f32.xlu0 %v1505_v2 }
 0x95f   :  { %v1368_v7 = vpop.permute.xlu2 %1367 }
 0x975   :  { %1373 = vrot.lane.b32.xlu1 %v5556_v23, %s5142_s23 }
 0x97d   :  { %1369 = vrot.lane.b32.xlu1 %v5556_v23, %s5143_s18 }
 0x998   :  { %v1504_v35 = vpop.xlane.xlu2 %1503 }
 0x999   :  { %v1514_v8 = vmul.f32 %v1504_v35, %v5390_v16 }
 0x99b   :  { %v5697_v10 = vsub.f32 %v5672_v40, %v1514_v8 }
 0x99d   :  { %v1522_v12 = vmul.f32 %v5697_v10, %v5697_v10 }
 0x99f   :  { %v1526_v14 = vsel %vm300_vm1, %v1522_v12, 0.0 }
 0x9a7   :  { %1527 = vadd.xlane.f32.xlu1 %v1526_v14 }
 0x9c6   :  { %v1201_v11 = vpop.f32.mrf.mxu0 }
 0x9c7   :  { %v1293_v18 = vpop.xlane.xlu0 %1292  ;;  %4270 = vmatmul.msk.f32.vlgmr.msra.gmra.mxu3 %vm256_vm0, %v1201_v11 }
 0x9c8   :  { %4712 = vrcp.f32 %v1293_v18 }
 0x9ce   :  { %v4713_v23 = vpop.eup %4712  ;;  %v1204_v19 = vpop.f32.mrf.mxu0 }
 0x9cf   :  { %v1299_v20 = vmul.f32 %v4713_v23, %v4709_v59  ;;  %v1296_v21 = vpop.xlane.xlu1 %1295  ;;  %4271 = vmatmul.msk.f32.gmra.mxu3 %vm256_vm0, %v1204_v19  ;;  %v1507_v47 = vpop.xlane.xlu0 %1506  ;;  %v1616_v23 = vld [vmem:[%s6816_s0 + $0x38] sm:$0xff]  ;;  %v1615_v19 = vld [vmem:[%s6816_s0 + $0x30] sm:$0xff] }
 0x9d0   :  { %4714 = vrcp.f32 %v1296_v21  ;;  %v1515_v51 = vmul.f32 %v1507_v47, %v5390_v16  ;;  %v1613_v21 = vld [vmem:[%s6816_s0 + $0x20] sm:$0xff]  ;;  %v1612_v47 = vld [vmem:[%s6816_s0 + $0x18] sm:$0xff] }
 0x9d1   :  { %4276 = vmatmul.msk.f32.vlgmr.msra.gmra.mxu2 %vm503_vm9, %v1299_v20  ;;  %v1614_v20 = vld [vmem:[%s6816_s0 + $0x28] sm:$0xff] }
 0x9d2   :  { %v1519_v22 = vsub.f32 %v5686_v42, %v1515_v51  ;;  %v1611_v51 = vld [vmem:[%s6816_s0 + $0x10] sm:$0xff] }
 0x9d4   :  { %v1523_v24 = vmul.f32 %v1519_v22, %v1519_v22 }
 0x9d6   :  { %v4715_v25 = vpop.eup %4714  ;;  %v1529_v27 = vsel %vm300_vm1, %v1523_v24, 0.0  ;;  %v1609_v24 = vld [vmem:[%s6816_s0] sm:$0xff] }
 0x9d7   :  { %1530 = vadd.xlane.f32.xlu0 %v1529_v27  ;;  %v1300_v1 = vmul.f32 %v4715_v25, %v4711_v41 }
 0x9d9   :  { %4277 = vmatmul.msk.f32.gmra.mxu2 %vm503_vm9, %v1300_v1  ;;  %v5749_v1 = vld [vmem:[%s6817_s24] ss:$0 sm:$0xff] }
 0x9e7   :  { %v1374_v28 = vpop.permute.xlu1 %1373 }
 0x9e8   :  { %4280 = vmatpush.xpose.msk.msrb.mxu3 %vm256_vm0, %v1374_v28 }
 0x9ec   :  { %4281 = vmatpush.xpose.msk.msrb.mxu3 %vm256_vm0, %v1372_v61 }
 0x9ef   :  { %4282 = vmatmul.msk.f32.vlgmr.msrb.gmra.mxu3 %vm256_vm0, %v1368_v7  ;;  %v1370_v29 = vpop.permute.xlu1 %1369 }
 0x9f0   :  { %1690 = vmatpush.msra.mxu3 %v1616_v23 }
 0x9f2   :  { %1691 = vmatpush.msra.mxu3 %v1615_v19 }
 0x9f4   :  { %1692 = vmatpush.msra.mxu3 %v1614_v20  ;;  %v1108_v20 = vadd.f32 %v5665_v33, %v5651_v15 }
 0x9f6   :  { %1693 = vmatpush.msra.mxu3 %v1613_v21 }
 0x9f7   :  { %4283 = vmatmul.msk.f32.gmra.mxu3 %vm256_vm0, %v1370_v29 }
 0x9f8   :  { %1694 = vmatpush.msra.mxu3 %v1612_v47 }
 0x9fa   :  { %1695 = vmatpush.msra.mxu3 %v1611_v51 }
 0xa1a   :  { %v1528_v63 = vpop.xlane.xlu1 %1527 }
 0xa1b   :  { %v1538_v30 = vmul.f32 %v1528_v63, %v5390_v16 }
 0xa1d   :  { %v1542_v31 = vadd.f32 1e-05, %v1538_v30 }
 0xa1f   :  { %4716 = vrsqrt.f32 %v1542_v31  ;;  %vm1552_vm3 = vweird.f32 %v1542_v31 }
 0xa25   :  { %v4717_v26 = vpop.eup %4716 }
 0xa26   :  { %v1547_v43 = vmul.f32 %v4717_v26, %v1542_v31  ;;  %vm1553_vm2 = vweird.f32 %v4717_v26 }
 0xa27   :  { %vm1554_vm4 = vmor %vm1552_vm3, %vm1553_vm2 }
 0xa28   :  { %v1548_v44 = vmul.f32 %v4717_v26, %v1547_v43 }
 0xa2a   :  { %v1549_v46 = vmul.f32 0.5, %v1548_v44 }
 0xa2c   :  { %v1550_v36 = vsub.f32 1.5, %v1549_v46 }
 0xa2e   :  { %v1551_v39 = vmul.f32 %v4717_v26, %v1550_v36  ;;  %v5760_v36 = vld [vmem:[%s6818_s15] ss:$0 sm:$0xff] }
 0xa30   :  { %v1555_v4 = vsel %vm1554_vm4, %v4717_v26, %v1551_v39 }
 0xa31   :  { %v1586_v55 = vmul.f32 %v1555_v4, %v5697_v10 }
 0xa33   :  { %v1593_v62 = vmul.f32 %v5717_v54, %v1586_v55 }
 0xa35   :  { %v1600_v57 = vadd.f32 %v5723_v0, %v1593_v62 }
 0xa4a   :  { %v1531_v56 = vpop.xlane.xlu0 %1530  ;;  %v5725_v37 = vpop.f32.mrf.mxu3 }
 0xa4b   :  { %v1539_v45 = vmul.f32 %v1531_v56, %v5390_v16 }
 0xa4d   :  { %v1543_v48 = vadd.f32 1e-05, %v1539_v45 }
 0xa4f   :  { %4718 = vrsqrt.f32 %v1543_v48  ;;  %vm1562_vm6 = vweird.f32 %v1543_v48 }
 0xa52   :  { %v5730_v7 = vpop.f32.mrf.mxu3 }
 0xa53   :  { %v1237_v47 = vadd.f32 %v5730_v7, %v1108_v20  ;;  %v2068_v20 = vld [vmem:[#allocation9 + $0x8] sm:$0xff] }
 0xa54   :  { %v1330_v5 = vpop.f32.mrf.mxu2 }
 0xa55   :  { %v4719_v50 = vpop.eup %4718  ;;  %4278 = vmatmul.msk.f32.vlgmr.msra.gmra.mxu0 %vm256_vm0, %v1330_v5 }
 0xa56   :  { %v1557_v49 = vmul.f32 %v4719_v50, %v1543_v48  ;;  %vm1563_vm5 = vweird.f32 %v4719_v50 }
 0xa57   :  { %vm1564_vm7 = vmor %vm1562_vm6, %vm1563_vm5 }
 0xa58   :  { %v1558_v52 = vmul.f32 %v4719_v50, %v1557_v49 }
 0xa5a   :  { %v1559_v53 = vmul.f32 0.5, %v1558_v52 }
 0xa5c   :  { %v1560_v58 = vsub.f32 1.5, %v1559_v53  ;;  %v1333_v59 = vpop.f32.mrf.mxu2 }
 0xa5d   :  { %4279 = vmatmul.msk.f32.gmra.mxu0 %vm256_vm0, %v1333_v59 }
 0xa5e   :  { %v1561_v60 = vmul.f32 %v4719_v50, %v1560_v58 }
 0xa60   :  { %v1565_v41 = vsel %vm1564_vm7, %v4719_v50, %v1561_v60 }
 0xa61   :  { %v1587_v2 = vmul.f32 %v1565_v41, %v1519_v22  ;;  %v1610_v22 = vld [vmem:[%s6816_s0 + $0x8] sm:$0xff] }
 0xa62   :  { %1696 = vmatpush.msra.mxu3 %v1610_v22 }
 0xa63   :  { %v1594_v61 = vmul.f32 %v5717_v54, %v1587_v2 }
 0xa64   :  { %1697 = vmatpush.msra.mxu3 %v1609_v24 }
 0xa65   :  { %4288 = vmatmul.msk.f32.vlgmr.msrb.gmra.mxu0 %vm300_vm1, %v1600_v57  ;;  %v1601_v35 = vadd.f32 %v5723_v0, %v1594_v61  ;;  %v1716_v57 = vld [vmem:[#allocation7 + $0x8] sm:$0xff] }
 0xa66   :  { %1852 = vmatpush.msra.mxu2 %v1716_v57 }
 0xa6d   :  { %4289 = vmatmul.msk.f32.gmra.mxu0 %vm300_vm1, %v1601_v35 }
 0xa72   :  { %v1400_v8 = vpop.f32.mrf.mxu3 }
 0xa73   :  { %v1406_v10 = vmul.f32 0.35355338, %v1400_v8 }
 0xa75   :  { %v1408_v12 = vsel %vm503_vm9, %v1406_v10, -inf }
 0xa76   :  { %1409 = vmax.xlane.f32.xlu0 %v1408_v12 }
 0xa7a   :  { %v1403_v14 = vpop.f32.mrf.mxu3 }
 0xa7b   :  { %v1407_v11 = vmul.f32 0.35355338, %v1403_v14  ;;  %v1107_v14 = vadd.f32 %v5665_v33, %v5649_v3 }
 0xa7d   :  { %v1411_v18 = vsel %vm503_vm9, %v1407_v11, -inf }
 0xa7e   :  { %1412 = vmax.xlane.f32.xlu0 %v1411_v18 }
 0xad2   :  { %v5744_v25 = vpop.f32.mrf.mxu0 }
 0xada   :  { %v5746_v27 = vpop.f32.mrf.mxu0 }
 0xadb   :  { %v1366_v3 = vadd.f32 %v5746_v27, %v1237_v47 }
 0xae2   :  { %v1650_v28 = vpop.f32.mrf.mxu0 }
 0xae3   :  { %v1651_v29 = vadd.f32 %v5749_v1, %v1650_v28 }
 0xae5   :  { %v1662_v63 = vmax.f32 %v1651_v29, 0.0 }
 0xae7   :  { %4292 = vmatmul.msk.f32.vlgmr.msra.gmra.mxu3 %vm1669_vm8, %v1662_v63 }
 0xae9   :  { %v1410_v30 = vpop.xlane.xlu0 %1409 }
 0xaea   :  { %v1414_v31 = vsub.f32 %v1406_v10, %v1410_v30  ;;  %v1653_v32 = vpop.f32.mrf.mxu0 }
 0xaeb   :  { %v1654_v13 = vadd.f32 %v5749_v1, %v1653_v32 }
 0xaec   :  { %v1416_v34 = vmul.f32 1.442695, %v1414_v31 }
 0xaed   :  { %v1663_v26 = vmax.f32 %v1654_v13, 0.0 }
 0xaee   :  { %4720 = vpow2.f32 %v1416_v34 }
 0xaef   :  { %4293 = vmatmul.msk.f32.gmra.mxu3 %vm1669_vm8, %v1663_v26 }
 0xaf1   :  { %v1413_v38 = vpop.xlane.xlu0 %1412 }
 0xaf2   :  { %v1415_v43 = vsub.f32 %v1407_v11, %v1413_v38  ;;  %v1236_v11 = vadd.f32 %v5725_v37, %v1107_v14 }
 0xaf4   :  { %v4721_v44 = vpop.eup %4720  ;;  %v1418_v56 = vmul.f32 1.442695, %v1415_v43  ;;  %v1365_v18 = vadd.f32 %v5744_v25, %v1236_v11  ;;  %v5791_v25 = vld [vmem:[%s6819_s26] ss:$0 sm:$0xff]  ;;  %v2070_v11 = vld [vmem:[#allocation9 + $0x18] sm:$0xff] }
 0xaf5   :  { %v1420_v45 = vsel %vm503_vm9, %v4721_v44, 0.0  ;;  %2116 = vmatpush.msra.mxu0 %v2070_v11 }
 0xaf6   :  { %4722 = vpow2.f32 %v1418_v56  ;;  %1421 = vadd.xlane.f32.xlu0 %v1420_v45 }
 0xafc   :  { %v4723_v46 = vpop.eup %4722 }
 0xafd   :  { %v1423_v48 = vsel %vm503_vm9, %v4723_v46, 0.0 }
 0xafe   :  { %1424 = vadd.xlane.f32.xlu2 %v1423_v48 }
 0xb0a   :  { %4548 = vrot.lane.b32.xlu0 %v5601_v17, %s5144_s7 }
 0xb69   :  { %v1422_v52 = vpop.xlane.xlu0 %1421 }
 0xb6a   :  { %v1699_v39 = vpop.f32.mrf.mxu3  ;;  %4724 = vrcp.f32 %v1422_v52 }
 0xb6b   :  { %v1700_v5 = vadd.f32 %v5760_v36, %v1699_v39 }
 0xb6d   :  { %v1711_v50 = vadd.f32 %v1700_v5, %v5672_v40 }
 0xb6f   :  { %1718 = vxpose.xlu1.b32.start [1/2] (short) (narrow) %v1711_v50, 32 }
 0xb70   :  { %v4725_v59 = vpop.eup %4724 }
 0xb71   :  { %v1425_v55 = vpop.xlane.xlu2 %1424  ;;  %v1428_v62 = vmul.f32 %v4725_v59, %v4721_v44 }
 0xb72   :  { %v1702_v49 = vpop.f32.mrf.mxu3  ;;  %4726 = vrcp.f32 %v1425_v55 }
 0xb73   :  { %v1703_v4 = vadd.f32 %v5760_v36, %v1702_v49 }
 0xb75   :  { %v1712_v53 = vadd.f32 %v1703_v4, %v5686_v42  ;;  %v1715_v42 = vld [vmem:[#allocation7] sm:$0xff] }
 0xb76   :  { %1853 = vmatpush.msra.mxu2 %v1715_v42 }
 0xb77   :  { %1719 = vxpose.xlu1.b32.end [2/2] (short) (narrow) %v1712_v53, 32 }
 0xb78   :  { %v4727_v40 = vpop.eup %4726 }
 0xb79   :  { %v1429_v41 = vmul.f32 %v4727_v40, %v4723_v46 }
 0xb7c   :  { %v4549_v58 = vpop.permute.xlu0 %4548 }
 0xb7d   :  { %v4550_v17 = vunpack.i.l.bf16 %v4549_v58  ;;  %v4551_v60 = vunpack.i.h.bf16 %v4549_v58 }
 0xb7f   :  { %1456 = vmatpush.msrb.mxu1 %v4550_v17 }
 0xb81   :  { %1457 = vmatpush.msrb.mxu1 %v4551_v60 }
 0xb82   :  { %4284 = vmatmul.msk.f32.vlgmr.msrb.gmra.mxu1 %vm503_vm9, %v1428_v62 }
 0xb83   :  { %1779 = vmatpush.msra.mxu1 %v1716_v57 }
 0xb85   :  { %1780 = vmatpush.msra.mxu1 %v1715_v42 }
 0xb8a   :  { %4285 = vmatmul.msk.f32.gmra.mxu1 %vm503_vm9, %v1429_v41 }
 0xbff   :  { %v1459_v2 = vpop.f32.mrf.mxu1 }
 0xc00   :  { %4286 = vmatmul.msk.f32.vlgmr.msrb.gmra.mxu2 %vm256_vm0, %v1459_v2 }
 0xc07   :  { %v1462_v61 = vpop.f32.mrf.mxu1 }
 0xc08   :  { %4287 = vmatmul.msk.f32.gmra.mxu2 %vm256_vm0, %v1462_v61 }
 0xc13   :  { %v1734_v35 = vpop.trf.xlu1 }
 0xc14   :  { %4296 = vmatmul.msk.f32.vlgmr.msra.gmra.mxu1 %vm503_vm9, %v1734_v35 }
 0xc1b   :  { %v1735_v8 = vpop.trf.xlu1 }
 0xc1c   :  { %4297 = vmatmul.msk.f32.gmra.mxu1 %vm503_vm9, %v1735_v8 }
 0xc23   :  { %v1736_v10 = vpop.trf.xlu1 }
 0xc24   :  { %4298 = vmatmul.msk.f32.gmra.mxu1 %vm503_vm9, %v1736_v10 }
 0xc2b   :  { %v1737_v12 = vpop.trf.xlu1 }
 0xc2c   :  { %4299 = vmatmul.msk.f32.gmra.mxu1 %vm503_vm9, %v1737_v12 }
 0xc83   :  { %v1488_v23 = vpop.f32.mrf.mxu2 }
 0xc84   :  { %v1494_v19 = vadd.f32 %v1488_v23, %v1365_v18  ;;  %v2069_v23 = vld [vmem:[#allocation9 + $0x10] sm:$0xff] }
 0xc85   :  { %2117 = vmatpush.msra.mxu0 %v2069_v23 }
 0xc86   :  { %v5781_v21 = vadd.f32 %v1494_v19, %v5443_v9 }
 0xc87   :  { %2118 = vmatpush.msra.mxu0 %v2068_v20 }
 0xc88   :  { %v1508_v51 = vsel %vm300_vm1, %v5781_v21, 0.0 }
 0xc89   :  { %1509 = vadd.xlane.f32.xlu2 %v1508_v51 }
 0xc8b   :  { %v1491_v22 = vpop.f32.mrf.mxu2 }
 0xc8c   :  { %v1495_v37 = vadd.f32 %v1491_v22, %v1366_v3 }
 0xc8e   :  { %v5788_v24 = vadd.f32 %v1495_v37, %v5438_v6  ;;  %v2067_v37 = vld [vmem:[#allocation9] sm:$0xff] }
 0xc8f   :  { %2119 = vmatpush.msra.mxu0 %v2067_v37 }
 0xc90   :  { %v1511_v15 = vsel %vm300_vm1, %v5788_v24, 0.0 }
 0xc91   :  { %v1782_v9 = vpop.f32.mrf.mxu1  ;;  %1512 = vadd.xlane.f32.xlu2 %v1511_v15 }
 0xc92   :  { %v5796_v33 = vadd.f32 %v5791_v25, %v1782_v9 }
 0xc94   :  { %v1869_v7 = vsel %vm300_vm1, %v5796_v33, 0.0 }
 0xc95   :  { %1870 = vadd.xlane.f32.xlu0 %v1869_v7 }
 0xc99   :  { %v1785_v27 = vpop.f32.mrf.mxu1 }
 0xc9a   :  { %v5801_v28 = vadd.f32 %v5791_v25, %v1785_v27 }
 0xc9c   :  { %v1872_v6 = vsel %vm300_vm1, %v5801_v28, 0.0 }
 0xc9d   :  { %1873 = vadd.xlane.f32.xlu2 %v1872_v6 }
 0xca1   :  { %v1788_v29 = vpop.f32.mrf.mxu1 }
 0xca2   :  { %v5806_v63 = vadd.f32 %v5791_v25, %v1788_v29 }
 0xca4   :  { %v1875_v30 = vsel %vm300_vm1, %v5806_v63, 0.0 }
 0xca5   :  { %1876 = vadd.xlane.f32.xlu2 %v1875_v30 }
 0xca9   :  { %v1791_v31 = vpop.f32.mrf.mxu1 }
 0xcaa   :  { %v5811_v32 = vadd.f32 %v5791_v25, %v1791_v31 }
 0xcac   :  { %v1878_v13 = vsel %vm300_vm1, %v5811_v32, 0.0 }
 0xcad   :  { %1879 = vadd.xlane.f32.xlu2 %v1878_v13 }
 0xcfc   :  { %v1510_v34 = vpop.xlane.xlu2 %1509 }
 0xcfd   :  { %v1516_v26 = vmul.f32 %v1510_v34, %v5390_v16 }
 0xcff   :  { %v5817_v38 = vsub.f32 %v5781_v21, %v1516_v26 }
 0xd01   :  { %v1524_v43 = vmul.f32 %v5817_v38, %v5817_v38 }
 0xd03   :  { %v1532_v44 = vsel %vm300_vm1, %v1524_v43, 0.0 }
 0xd04   :  { %1533 = vadd.xlane.f32.xlu2 %v1532_v44  ;;  %v1513_v56 = vpop.xlane.xlu2 %1512 }
 0xd05   :  { %v1517_v45 = vmul.f32 %v1513_v56, %v5390_v16 }
 0xd07   :  { %v5824_v46 = vsub.f32 %v5788_v24, %v1517_v45 }
 0xd08   :  { %v1871_v48 = vpop.xlane.xlu0 %1870 }
 0xd09   :  { %v1893_v39 = vmul.f32 %v1871_v48, %v5390_v16  ;;  %v1525_v5 = vmul.f32 %v5824_v46, %v5824_v46 }
 0xd0b   :  { %v5830_v50 = vsub.f32 %v5796_v33, %v1893_v39  ;;  %v1535_v49 = vsel %vm300_vm1, %v1525_v5, 0.0 }
 0xd0c   :  { %1536 = vadd.xlane.f32.xlu2 %v1535_v49 }
 0xd0d   :  { %v1909_v4 = vmul.f32 %v5830_v50, %v5830_v50 }
 0xd0f   :  { %v1917_v52 = vsel %vm300_vm1, %v1909_v4, 0.0 }
 0xd10   :  { %1918 = vadd.xlane.f32.xlu0 %v1917_v52  ;;  %v1874_v53 = vpop.xlane.xlu2 %1873 }
 0xd11   :  { %v1894_v55 = vmul.f32 %v1874_v53, %v5390_v16 }
 0xd13   :  { %v5838_v58 = vsub.f32 %v5801_v28, %v1894_v55 }
 0xd15   :  { %v1910_v59 = vmul.f32 %v5838_v58, %v5838_v58 }
 0xd17   :  { %v1920_v17 = vsel %vm300_vm1, %v1910_v59, 0.0 }
 0xd18   :  { %1921 = vadd.xlane.f32.xlu2 %v1920_v17  ;;  %v1877_v60 = vpop.xlane.xlu2 %1876 }
 0xd19   :  { %v1895_v62 = vmul.f32 %v1877_v60, %v5390_v16 }
 0xd1b   :  { %v5845_v40 = vsub.f32 %v5806_v63, %v1895_v62 }
 0xd1d   :  { %v1911_v41 = vmul.f32 %v5845_v40, %v5845_v40 }
 0xd1f   :  { %v1923_v57 = vsel %vm300_vm1, %v1911_v41, 0.0 }
 0xd20   :  { %1924 = vadd.xlane.f32.xlu0 %v1923_v57  ;;  %v1880_v42 = vpop.xlane.xlu2 %1879 }
 0xd21   :  { %v1896_v2 = vmul.f32 %v1880_v42, %v5390_v16 }
 0xd23   :  { %v5852_v61 = vsub.f32 %v5811_v32, %v1896_v2 }
 0xd25   :  { %v1912_v35 = vmul.f32 %v5852_v61, %v5852_v61 }
 0xd27   :  { %v1926_v8 = vsel %vm300_vm1, %v1912_v35, 0.0 }
 0xd28   :  { %1927 = vadd.xlane.f32.xlu1 %v1926_v8 }
 0xd77   :  { %v1534_v10 = vpop.xlane.xlu2 %1533 }
 0xd78   :  { %v1540_v12 = vmul.f32 %v1534_v10, %v5390_v16 }
 0xd7a   :  { %v1544_v14 = vadd.f32 1e-05, %v1540_v12  ;;  %v5869_v12 = vld [vmem:[%s6820_s28] ss:$0 sm:$0xff] }
 0xd7c   :  { %4728 = vrsqrt.f32 %v1544_v14  ;;  %vm1572_vm11 = vweird.f32 %v1544_v14 }
 0xd7f   :  { %v1537_v18 = vpop.xlane.xlu2 %1536 }
 0xd80   :  { %v1541_v19 = vmul.f32 %v1537_v18, %v5390_v16 }
 0xd82   :  { %v4729_v47 = vpop.eup %4728  ;;  %v1545_v51 = vadd.f32 1e-05, %v1541_v19 }
 0xd83   :  { %v1567_v3 = vmul.f32 %v4729_v47, %v1544_v14  ;;  %v1919_v22 = vpop.xlane.xlu0 %1918  ;;  %vm1573_vm10 = vweird.f32 %v4729_v47 }
 0xd84   :  { %4730 = vrsqrt.f32 %v1545_v51  ;;  %v1941_v15 = vmul.f32 %v1919_v22, %v5390_v16  ;;  %vm1574_vm12 = vmor %vm1572_vm11, %vm1573_vm10  ;;  %vm1582_vm14 = vweird.f32 %v1545_v51 }
 0xd85   :  { %v1568_v9 = vmul.f32 %v4729_v47, %v1567_v3 }
 0xd86   :  { %v1949_v7 = vadd.f32 1e-05, %v1941_v15 }
 0xd87   :  { %v1569_v27 = vmul.f32 0.5, %v1568_v9 }
 0xd88   :  { %4732 = vrsqrt.f32 %v1949_v7  ;;  %vm1963_vm3 = vweird.f32 %v1949_v7 }
 0xd89   :  { %v1570_v6 = vsub.f32 1.5, %v1569_v27 }
 0xd8a   :  { %v4731_v29 = vpop.eup %4730 }
 0xd8b   :  { %v1571_v30 = vmul.f32 %v4729_v47, %v1570_v6  ;;  %v1577_v31 = vmul.f32 %v4731_v29, %v1545_v51  ;;  %v1922_v13 = vpop.xlane.xlu2 %1921  ;;  %vm1583_vm13 = vweird.f32 %v4731_v29  ;;  %v5877_v51 = vld [vmem:[%s6821_s4] ss:$0 sm:$0xff] }
 0xd8c   :  { %v1942_v34 = vmul.f32 %v1922_v13, %v5390_v16  ;;  %vm1584_vm15 = vmor %vm1582_vm14, %vm1583_vm13 }
 0xd8d   :  { %v1578_v26 = vmul.f32 %v4731_v29, %v1577_v31  ;;  %v1575_v43 = vsel %vm1574_vm12, %v4729_v47, %v1571_v30 }
 0xd8e   :  { %v4733_v44 = vpop.eup %4732  ;;  %v1950_v56 = vadd.f32 1e-05, %v1942_v34  ;;  %v1588_v45 = vmul.f32 %v1575_v43, %v5817_v38 }
 0xd8f   :  { %v1579_v48 = vmul.f32 0.5, %v1578_v26  ;;  %v1958_v39 = vmul.f32 %v4733_v44, %v1949_v7  ;;  %vm1964_vm2 = vweird.f32 %v4733_v44 }
 0xd90   :  { %4734 = vrsqrt.f32 %v1950_v56  ;;  %v1595_v5 = vmul.f32 %v5717_v54, %v1588_v45  ;;  %vm1965_vm4 = vmor %vm1963_vm3, %vm1964_vm2  ;;  %vm1973_vm6 = vweird.f32 %v1950_v56 }
 0xd91   :  { %v1580_v49 = vsub.f32 1.5, %v1579_v48  ;;  %v1959_v4 = vmul.f32 %v4733_v44, %v1958_v39 }
 0xd92   :  { %v1602_v52 = vadd.f32 %v5723_v0, %v1595_v5 }
 0xd93   :  { %v1581_v53 = vmul.f32 %v4731_v29, %v1580_v49  ;;  %v1960_v55 = vmul.f32 0.5, %v1959_v4  ;;  %v1925_v59 = vpop.xlane.xlu0 %1924 }
 0xd94   :  { %v1943_v17 = vmul.f32 %v1925_v59, %v5390_v16  ;;  %4290 = vmatmul.msk.f32.gmra.mxu0 %vm300_vm1, %v1602_v52 }
 0xd95   :  { %v1961_v38 = vsub.f32 1.5, %v1960_v55  ;;  %v1585_v60 = vsel %vm1584_vm15, %v4731_v29, %v1581_v53 }
 0xd96   :  { %v4735_v62 = vpop.eup %4734  ;;  %v1951_v41 = vadd.f32 1e-05, %v1943_v17  ;;  %v1589_v57 = vmul.f32 %v1585_v60, %v5824_v46 }
 0xd97   :  { %v1962_v42 = vmul.f32 %v4733_v44, %v1961_v38  ;;  %v1968_v2 = vmul.f32 %v4735_v62, %v1950_v56  ;;  %vm1974_vm5 = vweird.f32 %v4735_v62  ;;  %v5898_v38 = vld [vmem:[%s6822_s3] ss:$0 sm:$0xff] }
 0xd98   :  { %4736 = vrsqrt.f32 %v1951_v41  ;;  %v1596_v35 = vmul.f32 %v5717_v54, %v1589_v57  ;;  %vm1975_vm7 = vmor %vm1973_vm6, %vm1974_vm5  ;;  %vm1983_vm11 = vweird.f32 %v1951_v41 }
 0xd99   :  { %v1966_v8 = vsel %vm1965_vm4, %v4733_v44, %v1962_v42  ;;  %v1969_v10 = vmul.f32 %v4735_v62, %v1968_v2 }
 0xd9a   :  { %v2037_v14 = vmul.f32 %v1966_v8, %v5830_v50  ;;  %v1603_v11 = vadd.f32 %v5723_v0, %v1596_v35 }
 0xd9b   :  { %v1970_v18 = vmul.f32 0.5, %v1969_v10  ;;  %v1928_v23 = vpop.xlane.xlu1 %1927 }
 0xd9c   :  { %v1944_v46 = vmul.f32 %v1928_v23, %v5390_v16  ;;  %4291 = vmatmul.msk.f32.gmra.mxu0 %vm300_vm1, %v1603_v11  ;;  %v2048_v47 = vmul.f32 %v5869_v12, %v2037_v14 }
 0xd9d   :  { %v1971_v19 = vsub.f32 1.5, %v1970_v18 }
 0xd9e   :  { %v4737_v20 = vpop.eup %4736  ;;  %v1952_v54 = vadd.f32 1e-05, %v1944_v46  ;;  %v2059_v37 = vadd.f32 %v5877_v51, %v2048_v47 }
 0xd9f   :  { %v1972_v3 = vmul.f32 %v4735_v62, %v1971_v19  ;;  %v1978_v22 = vmul.f32 %v4737_v20, %v1951_v41  ;;  %vm1984_vm10 = vweird.f32 %v4737_v20 }
 0xda0   :  { %4738 = vrsqrt.f32 %v1952_v54  ;;  %vm1985_vm12 = vmor %vm1983_vm11, %vm1984_vm10  ;;  %vm1993_vm14 = vweird.f32 %v1952_v54 }
 0xda1   :  { %v1979_v0 = vmul.f32 %v4737_v20, %v1978_v22  ;;  %v1976_v50 = vsel %vm1975_vm7, %v4735_v62, %v1972_v3 }
 0xda2   :  { %v2038_v15 = vmul.f32 %v1976_v50, %v5838_v58 }
 0xda3   :  { %v1980_v9 = vmul.f32 0.5, %v1979_v0 }
 0xda4   :  { %4304 = vmatmul.msk.f32.vlgmr.msra.gmra.mxu0 %vm300_vm1, %v2059_v37  ;;  %v2049_v6 = vmul.f32 %v5869_v12, %v2038_v15 }
 0xda5   :  { %v1981_v7 = vsub.f32 1.5, %v1980_v9 }
 0xda6   :  { %v4739_v27 = vpop.eup %4738  ;;  %v2060_v34 = vadd.f32 %v5877_v51, %v2049_v6 }
 0xda7   :  { %v1982_v29 = vmul.f32 %v4737_v20, %v1981_v7  ;;  %v1988_v30 = vmul.f32 %v4739_v27, %v1952_v54  ;;  %vm1994_vm13 = vweird.f32 %v4739_v27 }
 0xda8   :  { %vm1995_vm15 = vmor %vm1993_vm14, %vm1994_vm13 }
 0xda9   :  { %v1989_v31 = vmul.f32 %v4739_v27, %v1988_v30  ;;  %v1986_v13 = vsel %vm1985_vm12, %v4737_v20, %v1982_v29 }
 0xdaa   :  { %v2039_v26 = vmul.f32 %v1986_v13, %v5845_v40 }
 0xdab   :  { %v1990_v43 = vmul.f32 0.5, %v1989_v31 }
 0xdac   :  { %4305 = vmatmul.msk.f32.gmra.mxu0 %vm300_vm1, %v2060_v34  ;;  %v2050_v44 = vmul.f32 %v5869_v12, %v2039_v26 }
 0xdad   :  { %v1991_v58 = vsub.f32 1.5, %v1990_v43 }
 0xdae   :  { %v2061_v48 = vadd.f32 %v5877_v51, %v2050_v44 }
 0xdaf   :  { %v1992_v56 = vmul.f32 %v4739_v27, %v1991_v58 }
 0xdb1   :  { %v1996_v45 = vsel %vm1995_vm15, %v4739_v27, %v1992_v56 }
 0xdb2   :  { %v2040_v39 = vmul.f32 %v1996_v45, %v5852_v61 }
 0xdb4   :  { %4306 = vmatmul.msk.f32.gmra.mxu0 %vm300_vm1, %v2061_v48  ;;  %v2051_v40 = vmul.f32 %v5869_v12, %v2040_v39 }
 0xdb6   :  { %v2062_v5 = vadd.f32 %v5877_v51, %v2051_v40 }
 0xdbc   :  { %4307 = vmatmul.msk.f32.gmra.mxu0 %vm300_vm1, %v2062_v5 }
 0xe11   :  { %v1656_v49 = vpop.f32.mrf.mxu0 }
 0xe12   :  { %v1657_v4 = vadd.f32 %v5749_v1, %v1656_v49 }
 0xe14   :  { %v1664_v52 = vmax.f32 %v1657_v4, 0.0 }
 0xe16   :  { %4294 = vmatmul.msk.f32.gmra.mxu3 %vm1669_vm8, %v1664_v52 }
 0xe19   :  { %v1659_v53 = vpop.f32.mrf.mxu0 }
 0xe1a   :  { %v1660_v55 = vadd.f32 %v5749_v1, %v1659_v53 }
 0xe1c   :  { %v1665_v59 = vmax.f32 %v1660_v55, 0.0 }
 0xe1e   :  { %4295 = vmatmul.msk.f32.gmra.mxu3 %vm1669_vm8, %v1665_v59 }
 0xe21   :  { %v2121_v61 = vpop.f32.mrf.mxu0 }
 0xe22   :  { %v5906_v57 = vadd.f32 %v5898_v38, %v2121_v61 }
 0xe29   :  { %v2124_v17 = vpop.f32.mrf.mxu0 }
 0xe2a   :  { %v5916_v42 = vadd.f32 %v5898_v38, %v2124_v17 }
 0xe2c   :  { %v5975_v26 = vpack.i.bf16 %v5906_v57, %v5916_v42 }
 0xe31   :  { %v2127_v60 = vpop.f32.mrf.mxu0 }
 0xe32   :  { %v5901_v62 = vadd.f32 %v5898_v38, %v2127_v60 }
 0xe34   :  { %2153 = vrot.lane.b32.xlu0 %v5901_v62, %s5135_s9 }
 0xe39   :  { %v2130_v41 = vpop.f32.mrf.mxu0 }
 0xe3a   :  { %v5909_v1 = vadd.f32 %v5898_v38, %v2130_v41 }
 0xe3c   :  { %2155 = vrot.lane.b32.xlu2 %v5909_v1, %s5135_s9  ;;  %2149 = vrot.lane.b32.xlu0 %v5906_v57, %s5135_s9  ;;  %v5969_v34 = vpack.i.bf16 %v5901_v62, %v5909_v1 }
 0xe44   :  { %2363 = vrot.lane.b32.xlu0 %v5901_v62, %s5134_s5  ;;  %2151 = vrot.lane.b32.xlu2 %v5916_v42, %s5135_s9 }
 0xe4c   :  { %2359 = vrot.lane.b32.xlu0 %v5906_v57, %s5134_s5  ;;  %2361 = vrot.lane.b32.xlu2 %v5916_v42, %s5134_s5 }
 0xe54   :  { %2353 = vrot.lane.b32.xlu0 %v5916_v42, %s5136_s13  ;;  %2351 = vrot.lane.b32.xlu2 %v5906_v57, %s5136_s13 }
 0xe5c   :  { %2357 = vrot.lane.b32.xlu0 %v5909_v1, %s5136_s13  ;;  %2365 = vrot.lane.b32.xlu2 %v5909_v1, %s5134_s5 }
 0xe64   :  { %2355 = vrot.lane.b32.xlu2 %v5901_v62, %s5136_s13 }
 0xe96   :  { %v2156_v2 = vpop.permute.xlu2 %2155 }
 0xe97   :  { %4312 = vmatpush.xpose.msk.msrb.mxu3 %vm256_vm0, %v2156_v2 }
 0xe99   :  { %v1705_v35 = vpop.f32.mrf.mxu3 }
 0xe9a   :  { %v1706_v8 = vadd.f32 %v5760_v36, %v1705_v35 }
 0xe9c   :  { %v1713_v10 = vadd.f32 %v1706_v8, %v5781_v21 }
 0xe9e   :  { %1794 = vxpose.xlu2.b32.start [1/2] (short) (narrow) %v1713_v10, 32  ;;  %v2152_v14 = vpop.permute.xlu2 %2151 }
 0xea1   :  { %v1708_v11 = vpop.f32.mrf.mxu3 }
 0xea2   :  { %v1709_v18 = vadd.f32 %v5760_v36, %v1708_v11 }
 0xea4   :  { %v1714_v23 = vadd.f32 %v1709_v18, %v5788_v24 }
 0xea6   :  { %v2154_v46 = vpop.permute.xlu0 %2153  ;;  %1795 = vxpose.xlu2.b32.end [2/2] (short) (narrow) %v1714_v23, 32  ;;  %v2362_v19 = vpop.permute.xlu2 %2361 }
 0xea7   :  { %4313 = vmatpush.xpose.msk.msrb.mxu3 %vm256_vm0, %v2154_v46 }
 0xeab   :  { %4314 = vmatpush.xpose.msk.msrb.mxu3 %vm256_vm0, %v2152_v14 }
 0xeae   :  { %v2150_v20 = vpop.permute.xlu0 %2149  ;;  %v2352_v47 = vpop.permute.xlu2 %2351 }
 0xeaf   :  { %4315 = vmatpush.xpose.msk.msrb.mxu3 %vm256_vm0, %v2150_v20 }
 0xeb2   :  { %4316 = vmatmul.msk.f32.vlgmr.msrb.gmra.mxu3 %vm256_vm0, %v5906_v57 }
 0xeb6   :  { %v2366_v21 = vpop.permute.xlu2 %2365  ;;  %v2364_v36 = vpop.permute.xlu0 %2363 }
 0xeb7   :  { %4328 = vmatpush.xpose.msk.msra.mxu3 %vm256_vm0, %v2366_v21 }
 0xeba   :  { %4317 = vmatmul.msk.f32.gmra.mxu3 %vm256_vm0, %v5916_v42 }
 0xebb   :  { %4329 = vmatpush.xpose.msk.msra.mxu3 %vm256_vm0, %v2364_v36 }
 0xebe   :  { %v2360_v24 = vpop.permute.xlu0 %2359  ;;  %v2356_v3 = vpop.permute.xlu2 %2355 }
 0xebf   :  { %4330 = vmatpush.xpose.msk.msra.mxu3 %vm256_vm0, %v2362_v19 }
 0xec2   :  { %4318 = vmatmul.msk.f32.gmra.mxu3 %vm256_vm0, %v5901_v62 }
 0xec3   :  { %4331 = vmatpush.xpose.msk.msra.mxu3 %vm256_vm0, %v2360_v24 }
 0xec6   :  { %v2354_v54 = vpop.permute.xlu0 %2353 }
 0xeca   :  { %4319 = vmatmul.msk.f32.gmra.mxu3 %vm256_vm0, %v5909_v1 }
 0xece   :  { %v2358_v22 = vpop.permute.xlu0 %2357 }
 0xed2   :  { %4332 = vmatmul.msk.f32.vlgmr.msra.gmra.mxu3 %vm256_vm0, %v2352_v47 }
 0xeda   :  { %4333 = vmatmul.msk.f32.gmra.mxu3 %vm256_vm0, %v2354_v54 }
 0xee2   :  { %4334 = vmatmul.msk.f32.gmra.mxu3 %vm256_vm0, %v2356_v3 }
 0xeea   :  { %4335 = vmatmul.msk.f32.gmra.mxu3 %vm256_vm0, %v2358_v22 }
 0xf35   :  { %v2190_v0 = vpop.f32.mrf.mxu3 }
 0xf36   :  { %v2202_v50 = vmul.f32 0.35355338, %v2190_v0 }
 0xf37   :  { %v1810_v58 = vpop.trf.xlu2 }
 0xf38   :  { %v2206_v37 = vsel %vm300_vm1, %v2202_v50, -inf  ;;  %4300 = vmatmul.msk.f32.vlgmr.msra.gmra.mxu2 %vm503_vm9, %v1810_v58 }
 0xf39   :  { %2207 = vmax.xlane.f32.xlu0 %v2206_v37 }
 0xf3d   :  { %v2193_v15 = vpop.f32.mrf.mxu3 }
 0xf3e   :  { %v2203_v9 = vmul.f32 0.35355338, %v2193_v15 }
 0xf3f   :  { %v1811_v45 = vpop.trf.xlu2 }
 0xf40   :  { %v2209_v7 = vsel %vm300_vm1, %v2203_v9, -inf  ;;  %4301 = vmatmul.msk.f32.gmra.mxu2 %vm503_vm9, %v1811_v45 }
 0xf41   :  { %2210 = vmax.xlane.f32.xlu0 %v2209_v7 }
 0xf45   :  { %v2196_v27 = vpop.f32.mrf.mxu3 }
 0xf46   :  { %v2204_v6 = vmul.f32 0.35355338, %v2196_v27 }
 0xf47   :  { %v1812_v5 = vpop.trf.xlu2 }
 0xf48   :  { %v2212_v29 = vsel %vm300_vm1, %v2204_v6, -inf  ;;  %4302 = vmatmul.msk.f32.gmra.mxu2 %vm503_vm9, %v1812_v5 }
 0xf49   :  { %2213 = vmax.xlane.f32.xlu1 %v2212_v29 }
 0xf4d   :  { %v2199_v30 = vpop.f32.mrf.mxu3 }
 0xf4e   :  { %v5963_v31 = vmul.f32 0.35355338, %v2199_v30 }
 0xf4f   :  { %v1813_v55 = vpop.trf.xlu2 }
 0xf50   :  { %v2215_v13 = vsel %vm300_vm1, %v5963_v31, -inf  ;;  %4303 = vmatmul.msk.f32.gmra.mxu2 %vm503_vm9, %v1813_v55 }
 0xf51   :  { %2216 = vmax.xlane.f32.xlu2 %v2215_v13 }
 0xf55   :  { %4553 = vrot.lane.b32.xlu0 %v5969_v34, %s5139_s29  ;;  %v2400_v43 = vpop.f32.mrf.mxu3 }
 0xf56   :  { %v2412_v56 = vmul.f32 0.35355338, %v2400_v43 }
 0xf58   :  { %v2416_v48 = vsel %vm300_vm1, %v2412_v56, -inf }
 0xf5d   :  { %v2403_v44 = vpop.f32.mrf.mxu3 }
 0xf5e   :  { %v2413_v4 = vmul.f32 0.35355338, %v2403_v44 }
 0xf60   :  { %v2419_v52 = vsel %vm300_vm1, %v2413_v4, -inf }
 0xf62   :  { %4558 = vrot.lane.b32.xlu1 %v5975_v26, %s5139_s29 }
 0xf65   :  { %v2406_v39 = vpop.f32.mrf.mxu3 }
 0xf66   :  { %v2414_v40 = vmul.f32 0.35355338, %v2406_v39 }
 0xf68   :  { %v2422_v49 = vsel %vm300_vm1, %v2414_v40, -inf }
 0xf6d   :  { %v2409_v53 = vpop.f32.mrf.mxu3 }
 0xf6e   :  { %v2415_v59 = vmul.f32 0.35355338, %v2409_v53 }
 0xf70   :  { %v2425_v61 = vsel %vm300_vm1, %v2415_v59, -inf }
 0xf7f   :  { %2417 = vmax.xlane.f32.xlu0 %v2416_v48 }
 0xf87   :  { %2423 = vmax.xlane.f32.xlu0 %v2422_v49 }
 0xf8c   :  { %2420 = vmax.xlane.f32.xlu1 %v2419_v52 }
 0xf94   :  { %2426 = vmax.xlane.f32.xlu1 %v2425_v61 }
 0xfac   :  { %v2208_v17 = vpop.xlane.xlu0 %2207 }
 0xfad   :  { %v2218_v60 = vsub.f32 %v2202_v50, %v2208_v17 }
 0xfaf   :  { %v2222_v41 = vmul.f32 1.442695, %v2218_v60 }
 0xfb1   :  { %4740 = vpow2.f32 %v2222_v41 }
 0xfb4   :  { %v2211_v2 = vpop.xlane.xlu0 %2210 }
 0xfb5   :  { %v2219_v35 = vsub.f32 %v2203_v9, %v2211_v2 }
 0xfb7   :  { %v5987_v8 = vpop.eup %4740  ;;  %v2224_v10 = vmul.f32 1.442695, %v2219_v35 }
 0xfb8   :  { %v2230_v14 = vsel %vm300_vm1, %v5987_v8, 0.0 }
 0xfb9   :  { %4742 = vpow2.f32 %v2224_v10  ;;  %2231 = vadd.xlane.f32.xlu1 %v2230_v14 }
 0xfbc   :  { %v2214_v11 = vpop.xlane.xlu1 %2213 }
 0xfbd   :  { %v2220_v18 = vsub.f32 %v2204_v6, %v2214_v11 }
 0xfbf   :  { %v5991_v23 = vpop.eup %4742  ;;  %v2226_v46 = vmul.f32 1.442695, %v2220_v18 }
 0xfc0   :  { %v2233_v19 = vsel %vm300_vm1, %v5991_v23, 0.0 }
 0xfc1   :  { %4744 = vpow2.f32 %v2226_v46  ;;  %2234 = vadd.xlane.f32.xlu0 %v2233_v19 }
 0xfc4   :  { %v2217_v0 = vpop.xlane.xlu2 %2216 }
 0xfc5   :  { %v2221_v50 = vsub.f32 %v5963_v31, %v2217_v0 }
 0xfc7   :  { %v5995_v20 = vpop.eup %4744  ;;  %v4554_v47 = vpop.permute.xlu0 %4553  ;;  %v2228_v37 = vmul.f32 1.442695, %v2221_v50 }
 0xfc8   :  { %v4555_v21 = vunpack.i.l.bf16 %v4554_v47  ;;  %v2236_v36 = vsel %vm300_vm1, %v5995_v20, 0.0  ;;  %v4556_v24 = vunpack.i.h.bf16 %v4554_v47 }
 0xfc9   :  { %2237 = vadd.xlane.f32.xlu1 %v2236_v36  ;;  %4746 = vpow2.f32 %v2228_v37 }
 0xfca   :  { %2286 = vmatpush.msrb.mxu1 %v4555_v21 }
 0xfcc   :  { %2287 = vmatpush.msrb.mxu1 %v4556_v24 }
 0xfcf   :  { %v6004_v6 = vpop.eup %4746 }
 0xfd0   :  { %v2239_v13 = vsel %vm300_vm1, %v6004_v6, 0.0 }
 0xfd4   :  { %v4559_v54 = vpop.permute.xlu1 %4558 }
 0xfd5   :  { %v4560_v3 = vunpack.i.l.bf16 %v4559_v54  ;;  %4568 = vrot.lane.b32.xlu0 %v5975_v26, %s5140_s6  ;;  %v4561_v22 = vunpack.i.h.bf16 %v4559_v54 }
 0xfd7   :  { %2288 = vmatpush.msrb.mxu1 %v4560_v3 }
 0xfd9   :  { %2289 = vmatpush.msrb.mxu1 %v4561_v22 }
 0xfe2   :  { %4563 = vrot.lane.b32.xlu1 %v5969_v34, %s5140_s6 }
 0xff2   :  { %v2418_v15 = vpop.xlane.xlu0 %2417 }
 0xff3   :  { %v2428_v9 = vsub.f32 %v2412_v56, %v2418_v15 }
 0xff5   :  { %v2432_v7 = vmul.f32 1.442695, %v2428_v9 }
 0xff7   :  { %4748 = vpow2.f32 %v2432_v7 }
 0xffa   :  { %v2424_v27 = vpop.xlane.xlu0 %2423 }
 0xffb   :  { %v2430_v29 = vsub.f32 %v2414_v40, %v2424_v27 }
 0xffd   :  { %v2436_v30 = vmul.f32 1.442695, %v2430_v29  ;;  %v6008_v31 = vpop.eup %4748 }
 0xffe   :  { %v2440_v56 = vsel %vm300_vm1, %v6008_v31, 0.0 }
 0xfff   :  { %v2421_v43 = vpop.xlane.xlu1 %2420  ;;  %2240 = vadd.xlane.f32.xlu0 %v2239_v13  ;;  %4750 = vpow2.f32 %v2436_v30 }
0x1000   :  { %v2429_v58 = vsub.f32 %v2413_v4, %v2421_v43  ;;  %v1855_v4 = vpop.f32.mrf.mxu2 }
0x1002   :  { %v2434_v44 = vmul.f32 1.442695, %v2429_v58 }
0x1004   :  { %4752 = vpow2.f32 %v2434_v44 }
0x1005   :  { %v6012_v48 = vpop.eup %4750 }
0x1006   :  { %v2446_v49 = vsel %vm300_vm1, %v6012_v48, 0.0 }
0x1007   :  { %v2427_v45 = vpop.xlane.xlu1 %2426  ;;  %2441 = vadd.xlane.f32.xlu0 %v2440_v56 }
0x1008   :  { %v2431_v39 = vsub.f32 %v2415_v59, %v2427_v45  ;;  %v6025_v59 = vadd.f32 %v5791_v25, %v1855_v4  ;;  %v1858_v61 = vpop.f32.mrf.mxu2 }
0x1009   :  { %v6030_v60 = vadd.f32 %v5791_v25, %v1858_v61 }
0x100a   :  { %v2438_v40 = vmul.f32 1.442695, %v2431_v39  ;;  %v6014_v5 = vpop.eup %4752  ;;  %v1881_v17 = vsel %vm300_vm1, %v6025_v59, 0.0 }
0x100b   :  { %v2443_v52 = vsel %vm300_vm1, %v6014_v5, 0.0  ;;  %v1884_v2 = vsel %vm300_vm1, %v6030_v60, 0.0 }
0x100c   :  { %4754 = vpow2.f32 %v2438_v40  ;;  %2447 = vadd.xlane.f32.xlu1 %v2446_v49  ;;  %v6061_v40 = vld [vmem:[#allocation10] sm:$0xff] }
0x100d   :  { %2330 = vmatpush.msrb.mxu2 %v6061_v40 }
0x100f   :  { %2444 = vadd.xlane.f32.xlu0 %v2443_v52 }
0x1010   :  { %v1861_v41 = vpop.f32.mrf.mxu2 }
0x1011   :  { %v6035_v35 = vadd.f32 %v5791_v25, %v1861_v41 }
0x1012   :  { %v6020_v53 = vpop.eup %4754 }
0x1013   :  { %v2449_v55 = vsel %vm300_vm1, %v6020_v53, 0.0  ;;  %v1887_v10 = vsel %vm300_vm1, %v6035_v35, 0.0 }
0x1014   :  { %2450 = vadd.xlane.f32.xlu2 %v2449_v55 }
0x1018   :  { %v1864_v14 = vpop.f32.mrf.mxu2 }
0x1019   :  { %v6040_v18 = vadd.f32 %v5791_v25, %v1864_v14 }
0x101b   :  { %v1890_v46 = vsel %vm300_vm1, %v6040_v18, 0.0 }
0x101c   :  { %1882 = vadd.xlane.f32.xlu2 %v1881_v17 }
0x1024   :  { %1885 = vadd.xlane.f32.xlu2 %v1884_v2 }
0x102c   :  { %v2232_v11 = vpop.xlane.xlu1 %2231  ;;  %1888 = vadd.xlane.f32.xlu2 %v1887_v10 }
0x102d   :  { %4756 = vrcp.f32 %v2232_v11 }
0x1033   :  { %v4757_v19 = vpop.eup %4756 }
0x1034   :  { %v2246_v47 = vmul.f32 %v4757_v19, %v5987_v8  ;;  %v2235_v21 = vpop.xlane.xlu0 %2234  ;;  %1891 = vadd.xlane.f32.xlu2 %v1890_v46 }
0x1035   :  { %4758 = vrcp.f32 %v2235_v21 }
0x1036   :  { %4320 = vmatmul.msk.f32.vlgmr.msrb.gmra.mxu1 %vm300_vm1, %v2246_v47 }
0x103b   :  { %v4759_v36 = vpop.eup %4758 }
0x103c   :  { %v2238_v24 = vpop.xlane.xlu1 %2237  ;;  %v2247_v54 = vmul.f32 %v4759_v36, %v5991_v23 }
0x103d   :  { %4760 = vrcp.f32 %v2238_v24 }
0x103e   :  { %4321 = vmatmul.msk.f32.gmra.mxu1 %vm300_vm1, %v2247_v54 }
0x1043   :  { %v4761_v25 = vpop.eup %4760 }
0x1044   :  { %v2248_v3 = vmul.f32 %v4761_v25, %v5995_v20 }
0x1046   :  { %4322 = vmatmul.msk.f32.gmra.mxu1 %vm300_vm1, %v2248_v3  ;;  %v6122_v3 = vld [vmem:[#allocation10 + $0x8] sm:$0xff] }
0x1047   :  { %v4569_v8 = vpop.permute.xlu0 %4568  ;;  %2540 = vmatpush.msra.mxu2 %v6122_v3 }
0x1048   :  { %v4570_v37 = vunpack.i.l.bf16 %v4569_v8  ;;  %v4571_v15 = vunpack.i.h.bf16 %v4569_v8 }
0x1054   :  { %v4564_v22 = vpop.permute.xlu1 %4563 }
0x1055   :  { %v4565_v0 = vunpack.i.l.bf16 %v4564_v22  ;;  %v4566_v50 = vunpack.i.h.bf16 %v4564_v22 }
0x1057   :  { %2496 = vmatpush.msra.mxu1 %v4565_v0 }
0x1059   :  { %2497 = vmatpush.msra.mxu1 %v4566_v50 }
0x105b   :  { %2498 = vmatpush.msra.mxu1 %v4570_v37 }
0x105d   :  { %2499 = vmatpush.msra.mxu1 %v4571_v15 }
0x1072   :  { %v2241_v9 = vpop.xlane.xlu0 %2240 }
0x1073   :  { %4762 = vrcp.f32 %v2241_v9 }
0x1079   :  { %v4763_v23 = vpop.eup %4762 }
0x107a   :  { %v2442_v7 = vpop.xlane.xlu0 %2441  ;;  %v2249_v27 = vmul.f32 %v4763_v23, %v6004_v6 }
0x107b   :  { %4764 = vrcp.f32 %v2442_v7 }
0x107c   :  { %4323 = vmatmul.msk.f32.gmra.mxu1 %vm300_vm1, %v2249_v27 }
0x107f   :  { %v2448_v13 = vpop.xlane.xlu1 %2447 }
0x1081   :  { %v4765_v20 = vpop.eup %4764 }
0x1082   :  { %v2456_v29 = vmul.f32 %v4765_v20, %v6008_v31  ;;  %v2445_v30 = vpop.xlane.xlu0 %2444 }
0x1083   :  { %4766 = vrcp.f32 %v2445_v30 }
0x1084   :  { %4336 = vmatmul.msk.f32.vlgmr.msra.gmra.mxu1 %vm300_vm1, %v2456_v29  ;;  %4768 = vrcp.f32 %v2448_v13 }
0x1087   :  { %v2451_v43 = vpop.xlane.xlu2 %2450 }
0x1088   :  { %4770 = vrcp.f32 %v2451_v43 }
0x1089   :  { %v4767_v58 = vpop.eup %4766 }
0x108a   :  { %v2457_v44 = vmul.f32 %v4767_v58, %v6014_v5  ;;  %v4769_v56 = vpop.eup %4768 }
0x108b   :  { %v2458_v31 = vmul.f32 %v4769_v56, %v6012_v48 }
0x108c   :  { %4337 = vmatmul.msk.f32.gmra.mxu1 %vm300_vm1, %v2457_v44 }
0x108e   :  { %v4771_v4 = vpop.eup %4770 }
0x108f   :  { %v1883_v6 = vpop.xlane.xlu2 %1882  ;;  %v2459_v48 = vmul.f32 %v4771_v4, %v6020_v53 }
0x1090   :  { %v1897_v45 = vmul.f32 %v1883_v6, %v5390_v16 }
0x1092   :  { %v6058_v39 = vsub.f32 %v6025_v59, %v1897_v45 }
0x1094   :  { %4338 = vmatmul.msk.f32.gmra.mxu1 %vm300_vm1, %v2458_v31  ;;  %v1913_v49 = vmul.f32 %v6058_v39, %v6058_v39 }
0x1096   :  { %v1929_v5 = vsel %vm300_vm1, %v1913_v49, 0.0 }
0x1097   :  { %1930 = vadd.xlane.f32.xlu0 %v1929_v5  ;;  %v1886_v52 = vpop.xlane.xlu2 %1885 }
0x1098   :  { %v1898_v55 = vmul.f32 %v1886_v52, %v5390_v16 }
0x109a   :  { %v6070_v61 = vsub.f32 %v6030_v60, %v1898_v55 }
0x109c   :  { %4339 = vmatmul.msk.f32.gmra.mxu1 %vm300_vm1, %v2459_v48  ;;  %v1914_v17 = vmul.f32 %v6070_v61, %v6070_v61 }
0x109e   :  { %v1932_v41 = vsel %vm300_vm1, %v1914_v17, 0.0 }
0x109f   :  { %1933 = vadd.xlane.f32.xlu1 %v1932_v41  ;;  %v1889_v2 = vpop.xlane.xlu2 %1888 }
0x10a0   :  { %v1899_v10 = vmul.f32 %v1889_v2, %v5390_v16 }
0x10a2   :  { %v6079_v14 = vsub.f32 %v6035_v35, %v1899_v10 }
0x10a4   :  { %v1915_v11 = vmul.f32 %v6079_v14, %v6079_v14 }
0x10a6   :  { %v1935_v46 = vsel %vm300_vm1, %v1915_v11, 0.0 }
0x10a7   :  { %1936 = vadd.xlane.f32.xlu2 %v1935_v46  ;;  %v1892_v53 = vpop.xlane.xlu2 %1891 }
0x10a8   :  { %v1900_v19 = vmul.f32 %v1892_v53, %v5390_v16 }
0x10aa   :  { %v6086_v47 = vsub.f32 %v6040_v18, %v1900_v19 }
0x10ac   :  { %v1916_v21 = vmul.f32 %v6086_v47, %v6086_v47 }
0x10ae   :  { %v1938_v36 = vsel %vm300_vm1, %v1916_v21, 0.0 }
0x10af   :  { %1939 = vadd.xlane.f32.xlu0 %v1938_v36 }
0x10b3   :  { %v2291_v24 = vpop.f32.mrf.mxu1 }
0x10b4   :  { %4324 = vmatmul.msk.f32.vlgmr.msrb.gmra.mxu2 %vm256_vm0, %v2291_v24 }
0x10b8   :  { %2779 = vrot.lane.b32.xlu1 %v5909_v1, %s5142_s23 }
0x10bb   :  { %v2294_v54 = vpop.f32.mrf.mxu1 }
0x10bc   :  { %4325 = vmatmul.msk.f32.gmra.mxu2 %vm256_vm0, %v2294_v54 }
0x10bf   :  { %2572 = vrot.lane.b32.xlu2 %v5909_v1, %s5137_s17 }
0x10c0   :  { %2775 = vrot.lane.b32.xlu1 %v5916_v42, %s5142_s23 }
0x10c3   :  { %v2297_v25 = vpop.f32.mrf.mxu1  ;;  %2777 = vrot.lane.b32.xlu0 %v5901_v62, %s5142_s23 }
0x10c4   :  { %4326 = vmatmul.msk.f32.gmra.mxu2 %vm256_vm0, %v2297_v25 }
0x10c7   :  { %2568 = vrot.lane.b32.xlu2 %v5916_v42, %s5137_s17 }
0x10c8   :  { %2765 = vrot.lane.b32.xlu1 %v5906_v57, %s5143_s18 }
0x10cb   :  { %2570 = vrot.lane.b32.xlu0 %v5901_v62, %s5137_s17 }
0x10cf   :  { %2566 = vrot.lane.b32.xlu2 %v5906_v57, %s5137_s17 }
0x10d0   :  { %2767 = vrot.lane.b32.xlu1 %v5916_v42, %s5143_s18 }
0x10d3   :  { %2773 = vrot.lane.b32.xlu0 %v5906_v57, %s5142_s23 }
0x10d7   :  { %2560 = vrot.lane.b32.xlu2 %v5916_v42, %s5138_s21 }
0x10d8   :  { %2562 = vrot.lane.b32.xlu1 %v5901_v62, %s5138_s21 }
0x10db   :  { %2558 = vrot.lane.b32.xlu0 %v5906_v57, %s5138_s21 }
0x10df   :  { %2771 = vrot.lane.b32.xlu2 %v5909_v1, %s5143_s18 }
0x10e3   :  { %2769 = vrot.lane.b32.xlu0 %v5901_v62, %s5143_s18 }
0x10eb   :  { %2564 = vrot.lane.b32.xlu0 %v5909_v1, %s5138_s21 }
0x10f9   :  { %v2300_v42 = vpop.f32.mrf.mxu1 }
0x10fa   :  { %4327 = vmatmul.msk.f32.gmra.mxu2 %vm256_vm0, %v2300_v42 }
0x1101   :  { %v2501_v22 = vpop.f32.mrf.mxu1 }
0x1102   :  { %4340 = vmatmul.msk.f32.vlgmr.msra.gmra.mxu2 %vm256_vm0, %v2501_v22 }
0x1109   :  { %v2504_v57 = vpop.f32.mrf.mxu1 }
0x110a   :  { %4341 = vmatmul.msk.f32.gmra.mxu2 %vm256_vm0, %v2504_v57  ;;  %v1931_v0 = vpop.xlane.xlu0 %1930 }
0x110b   :  { %v1945_v8 = vmul.f32 %v1931_v0, %v5390_v16 }
0x110d   :  { %v1953_v50 = vadd.f32 1e-05, %v1945_v8 }
0x110f   :  { %4772 = vrsqrt.f32 %v1953_v50  ;;  %vm2003_vm2 = vweird.f32 %v1953_v50 }
0x1111   :  { %v2507_v37 = vpop.f32.mrf.mxu1 }
0x1112   :  { %4342 = vmatmul.msk.f32.gmra.mxu2 %vm256_vm0, %v2507_v37  ;;  %v1934_v62 = vpop.xlane.xlu1 %1933 }
0x1113   :  { %v1946_v1 = vmul.f32 %v1934_v62, %v5390_v16 }
0x1115   :  { %v4773_v15 = vpop.eup %4772  ;;  %v1954_v9 = vadd.f32 1e-05, %v1946_v1 }
0x1116   :  { %v1998_v23 = vmul.f32 %v4773_v15, %v1953_v50  ;;  %vm2004_vm9 = vweird.f32 %v4773_v15 }
0x1117   :  { %4774 = vrsqrt.f32 %v1954_v9  ;;  %vm2005_vm3 = vmor %vm2003_vm2, %vm2004_vm9  ;;  %vm2013_vm5 = vweird.f32 %v1954_v9 }
0x1118   :  { %v1999_v7 = vmul.f32 %v4773_v15, %v1998_v23 }
0x1119   :  { %v2510_v27 = vpop.f32.mrf.mxu1 }
0x111a   :  { %v2000_v20 = vmul.f32 0.5, %v1999_v7  ;;  %4343 = vmatmul.msk.f32.gmra.mxu2 %vm256_vm0, %v2510_v27  ;;  %v1937_v29 = vpop.xlane.xlu2 %1936 }
0x111b   :  { %v1947_v30 = vmul.f32 %v1937_v29, %v5390_v16 }
0x111c   :  { %v2001_v13 = vsub.f32 1.5, %v2000_v20 }
0x111d   :  { %v4775_v43 = vpop.eup %4774  ;;  %v1955_v58 = vadd.f32 1e-05, %v1947_v30 }
0x111e   :  { %v2002_v44 = vmul.f32 %v4773_v15, %v2001_v13  ;;  %v2008_v56 = vmul.f32 %v4775_v43, %v1954_v9  ;;  %vm2014_vm4 = vweird.f32 %v4775_v43 }
0x111f   :  { %4776 = vrsqrt.f32 %v1955_v58  ;;  %vm2015_vm6 = vmor %vm2013_vm5, %vm2014_vm4  ;;  %vm2023_vm10 = vweird.f32 %v1955_v58 }
0x1120   :  { %v2006_v6 = vsel %vm2005_vm3, %v4773_v15, %v2002_v44  ;;  %v2009_v45 = vmul.f32 %v4775_v43, %v2008_v56 }
0x1121   :  { %v2041_v31 = vmul.f32 %v2006_v6, %v6058_v39 }
0x1122   :  { %v2010_v49 = vmul.f32 0.5, %v2009_v45  ;;  %v1940_v5 = vpop.xlane.xlu0 %1939  ;;  %v2573_v4 = vpop.permute.xlu2 %2572 }
0x1123   :  { %v1948_v52 = vmul.f32 %v1940_v5, %v5390_v16  ;;  %4344 = vmatpush.xpose.msk.msrb.mxu0 %vm256_vm0, %v2573_v4  ;;  %v2052_v55 = vmul.f32 %v5869_v12, %v2041_v31 }
0x1124   :  { %v2011_v48 = vsub.f32 1.5, %v2010_v49 }
0x1125   :  { %v4777_v17 = vpop.eup %4776  ;;  %v1956_v41 = vadd.f32 1e-05, %v1948_v52  ;;  %v2063_v2 = vadd.f32 %v5877_v51, %v2052_v55 }
0x1126   :  { %v2012_v10 = vmul.f32 %v4775_v43, %v2011_v48  ;;  %v2018_v11 = vmul.f32 %v4777_v17, %v1955_v58  ;;  %vm2024_vm7 = vweird.f32 %v4777_v17 }
0x1127   :  { %4778 = vrsqrt.f32 %v1956_v41  ;;  %4308 = vmatmul.msk.f32.gmra.mxu0 %vm300_vm1, %v2063_v2  ;;  %vm2025_vm11 = vmor %vm2023_vm10, %vm2024_vm7  ;;  %vm2033_vm13 = vweird.f32 %v1956_v41 }
0x1128   :  { %v2016_v39 = vsel %vm2015_vm6, %v4775_v43, %v2012_v10  ;;  %v2019_v46 = vmul.f32 %v4777_v17, %v2018_v11 }
0x1129   :  { %v2042_v53 = vmul.f32 %v2016_v39, %v6070_v61 }
0x112a   :  { %v2020_v19 = vmul.f32 0.5, %v2019_v46  ;;  %v2780_v21 = vpop.permute.xlu1 %2779 }
0x112b   :  { %4360 = vmatpush.xpose.msk.msrb.mxu2 %vm256_vm0, %v2780_v21  ;;  %v2053_v36 = vmul.f32 %v5869_v12, %v2042_v53 }
0x112c   :  { %v2021_v24 = vsub.f32 1.5, %v2020_v19 }
0x112d   :  { %v4779_v54 = vpop.eup %4778  ;;  %v2064_v25 = vadd.f32 %v5877_v51, %v2053_v36 }
0x112e   :  { %v2022_v42 = vmul.f32 %v4777_v17, %v2021_v24  ;;  %v2028_v22 = vmul.f32 %v4779_v54, %v1956_v41  ;;  %vm2034_vm12 = vweird.f32 %v4779_v54 }
0x112f   :  { %4309 = vmatmul.msk.f32.gmra.mxu0 %vm300_vm1, %v2064_v25  ;;  %vm2035_vm14 = vmor %vm2033_vm13, %vm2034_vm12 }
0x1130   :  { %v2026_v57 = vsel %vm2025_vm11, %v4777_v17, %v2022_v42  ;;  %v2029_v0 = vmul.f32 %v4779_v54, %v2028_v22 }
0x1131   :  { %v2043_v61 = vmul.f32 %v2026_v57, %v6079_v14  ;;  %v2569_v14 = vpop.permute.xlu2 %2568 }
0x1132   :  { %v2030_v8 = vmul.f32 0.5, %v2029_v0  ;;  %v2776_v7 = vpop.permute.xlu1 %2775 }
0x1133   :  { %v2054_v50 = vmul.f32 %v5869_v12, %v2043_v61 }
0x1134   :  { %v2031_v37 = vsub.f32 1.5, %v2030_v8 }
0x1135   :  { %v2778_v62 = vpop.permute.xlu0 %2777  ;;  %v2065_v1 = vadd.f32 %v5877_v51, %v2054_v50 }
0x1136   :  { %v2032_v15 = vmul.f32 %v4779_v54, %v2031_v37  ;;  %4361 = vmatpush.xpose.msk.msrb.mxu2 %vm256_vm0, %v2778_v62 }
0x1137   :  { %4310 = vmatmul.msk.f32.gmra.mxu0 %vm300_vm1, %v2065_v1  ;;  %v6170_v45 = vpop.f32.mrf.mxu2 }
0x1138   :  { %v2036_v9 = vsel %vm2035_vm14, %v4779_v54, %v2032_v15 }
0x1139   :  { %v2044_v23 = vmul.f32 %v2036_v9, %v6086_v47  ;;  %v2567_v30 = vpop.permute.xlu2 %2566 }
0x113a   :  { %4362 = vmatpush.xpose.msk.msrb.mxu2 %vm256_vm0, %v2776_v7  ;;  %v2766_v43 = vpop.permute.xlu1 %2765 }
0x113b   :  { %v2055_v27 = vmul.f32 %v5869_v12, %v2044_v23 }
0x113d   :  { %v2571_v20 = vpop.permute.xlu0 %2570  ;;  %v2066_v29 = vadd.f32 %v5877_v51, %v2055_v27 }
0x113e   :  { %4345 = vmatpush.xpose.msk.msrb.mxu0 %vm256_vm0, %v2571_v20 }
0x113f   :  { %4311 = vmatmul.msk.f32.gmra.mxu0 %vm300_vm1, %v2066_v29  ;;  %v6172_v31 = vpop.f32.mrf.mxu2 }
0x1141   :  { %v2561_v51 = vpop.permute.xlu2 %2560 }
0x1142   :  { %4346 = vmatpush.xpose.msk.msrb.mxu0 %vm256_vm0, %v2569_v14  ;;  %v2768_v12 = vpop.permute.xlu1 %2767 }
0x1145   :  { %v2774_v13 = vpop.permute.xlu0 %2773 }
0x1146   :  { %4347 = vmatpush.xpose.msk.msrb.mxu0 %vm256_vm0, %v2567_v30  ;;  %4363 = vmatpush.xpose.msk.msrb.mxu2 %vm256_vm0, %v2774_v13 }
0x1147   :  { %v6174_v49 = vpop.f32.mrf.mxu2 }
0x1149   :  { %4364 = vmatmul.msk.f32.vlgmr.msrb.gmra.mxu2 %vm256_vm0, %v2766_v43  ;;  %v2772_v56 = vpop.permute.xlu2 %2771 }
0x114a   :  { %v2563_v44 = vpop.permute.xlu1 %2562 }
0x114d   :  { %v2559_v47 = vpop.permute.xlu0 %2558 }
0x114e   :  { %4348 = vmatmul.msk.f32.vlgmr.msrb.gmra.mxu0 %vm256_vm0, %v2559_v47 }
0x1151   :  { %4365 = vmatmul.msk.f32.gmra.mxu2 %vm256_vm0, %v2768_v12 }
0x1155   :  { %v2770_v58 = vpop.permute.xlu0 %2769 }
0x1156   :  { %4349 = vmatmul.msk.f32.gmra.mxu0 %vm256_vm0, %v2561_v51 }
0x1159   :  { %4366 = vmatmul.msk.f32.gmra.mxu2 %vm256_vm0, %v2770_v58 }
0x115d   :  { %v2565_v6 = vpop.permute.xlu0 %2564 }
0x115e   :  { %4350 = vmatmul.msk.f32.gmra.mxu0 %vm256_vm0, %v2563_v44 }
0x1161   :  { %4367 = vmatmul.msk.f32.gmra.mxu2 %vm256_vm0, %v2772_v56 }
0x1166   :  { %4351 = vmatmul.msk.f32.gmra.mxu0 %vm256_vm0, %v2565_v6 }
0x117d   :  { %v6176_v5 = vpop.f32.mrf.mxu2 }
0x1185   :  { %v6180_v52 = vpop.f32.mrf.mxu2 }
0x118d   :  { %v6184_v48 = vpop.f32.mrf.mxu2 }
0x1195   :  { %v6188_v41 = vpop.f32.mrf.mxu2 }
0x119d   :  { %v6192_v10 = vpop.f32.mrf.mxu2 }
0x11a4   :  { %v6178_v4 = vpop.f32.mrf.mxu0 }
0x11ac   :  { %v6182_v55 = vpop.f32.mrf.mxu0 }
0x11b4   :  { %v6186_v17 = vpop.f32.mrf.mxu0 }
0x11bc   :  { %v6190_v2 = vpop.f32.mrf.mxu0 }
0x11cb   :  { %v2607_v11 = vpop.f32.mrf.mxu0 }
0x11cc   :  { %v2619_v39 = vmul.f32 0.35355338, %v2607_v11  ;;  %v2814_v46 = vpop.f32.mrf.mxu2 }
0x11cd   :  { %v2826_v57 = vmul.f32 0.35355338, %v2814_v46 }
0x11ce   :  { %v2623_v53 = vsel %vm300_vm1, %v2619_v39, -inf }
0x11cf   :  { %2624 = vmax.xlane.f32.xlu1 %v2623_v53  ;;  %v2830_v8 = vsel %vm300_vm1, %v2826_v57, -inf }
0x11d3   :  { %v2610_v19 = vpop.f32.mrf.mxu0 }
0x11d4   :  { %v2620_v21 = vmul.f32 0.35355338, %v2610_v19  ;;  %v2817_v36 = vpop.f32.mrf.mxu2 }
0x11d5   :  { %v2827_v62 = vmul.f32 0.35355338, %v2817_v36 }
0x11d6   :  { %v2626_v24 = vsel %vm300_vm1, %v2620_v21, -inf }
0x11d7   :  { %2627 = vmax.xlane.f32.xlu0 %v2626_v24  ;;  %v2833_v15 = vsel %vm300_vm1, %v2827_v62, -inf }
0x11db   :  { %v2613_v54 = vpop.f32.mrf.mxu0 }
0x11dc   :  { %v6196_v25 = vmul.f32 0.35355338, %v2613_v54  ;;  %v2820_v42 = vpop.f32.mrf.mxu2 }
0x11dd   :  { %v6215_v43 = vmul.f32 0.35355338, %v2820_v42 }
0x11de   :  { %v2629_v22 = vsel %vm300_vm1, %v6196_v25, -inf }
0x11df   :  { %2630 = vmax.xlane.f32.xlu2 %v2629_v22  ;;  %v2836_v51 = vsel %vm300_vm1, %v6215_v43, -inf }
0x11e3   :  { %v2616_v0 = vpop.f32.mrf.mxu0 }
0x11e4   :  { %v6200_v61 = vmul.f32 0.35355338, %v2616_v0  ;;  %v2823_v37 = vpop.f32.mrf.mxu2 }
0x11e5   :  { %v2829_v1 = vmul.f32 0.35355338, %v2823_v37 }
0x11e6   :  { %v2632_v50 = vsel %vm300_vm1, %v6200_v61, -inf }
0x11e7   :  { %2831 = vmax.xlane.f32.xlu2 %v2830_v8  ;;  %2633 = vmax.xlane.f32.xlu1 %v2632_v50  ;;  %v2839_v9 = vsel %vm300_vm1, %v2829_v1, -inf }
0x11ef   :  { %2834 = vmax.xlane.f32.xlu1 %v2833_v15  ;;  %2840 = vmax.xlane.f32.xlu2 %v2839_v9  ;;  %v6244_v9 = vadd.f32 %v5898_v38, %v6186_v17  ;;  %v6260_v17 = vadd.f32 %v5898_v38, %v6182_v55 }
0x1207   :  { %4573 = vrot.lane.b32.xlu2 %v5969_v34, %s5141_s22 }
0x1208   :  { %4583 = vrot.lane.b32.xlu1 %v5975_v26, %s5141_s22 }
0x1242   :  { %v2625_v23 = vpop.xlane.xlu1 %2624 }
0x1243   :  { %v2635_v7 = vsub.f32 %v2619_v39, %v2625_v23 }
0x1245   :  { %v2639_v14 = vmul.f32 1.442695, %v2635_v7 }
0x1247   :  { %4780 = vpow2.f32 %v2639_v14 }
0x124a   :  { %v2628_v27 = vpop.xlane.xlu0 %2627 }
0x124b   :  { %v2636_v20 = vsub.f32 %v2620_v21, %v2628_v27 }
0x124d   :  { %v6211_v29 = vpop.eup %4780  ;;  %v2641_v30 = vmul.f32 1.442695, %v2636_v20 }
0x124e   :  { %v2647_v13 = vsel %vm300_vm1, %v6211_v29, 0.0 }
0x124f   :  { %4782 = vpow2.f32 %v2641_v30  ;;  %2648 = vadd.xlane.f32.xlu0 %v2647_v13 }
0x1252   :  { %v2631_v47 = vpop.xlane.xlu2 %2630 }
0x1253   :  { %v2637_v15 = vsub.f32 %v6196_v25, %v2631_v47 }
0x1255   :  { %v6217_v12 = vpop.eup %4782  ;;  %v2643_v23 = vmul.f32 1.442695, %v2637_v15 }
0x1256   :  { %v2650_v58 = vsel %vm300_vm1, %v6217_v12, 0.0 }
0x1257   :  { %2837 = vmax.xlane.f32.xlu0 %v2836_v51  ;;  %2651 = vadd.xlane.f32.xlu2 %v2650_v58 }
0x125a   :  { %v6223_v44 = vpop.xlane.xlu1 %2633  ;;  %v2832_v56 = vpop.xlane.xlu2 %2831 }
0x125b   :  { %v2842_v6 = vsub.f32 %v2826_v57, %v2832_v56  ;;  %v2638_v30 = vsub.f32 %v6200_v61, %v6223_v44 }
0x125d   :  { %v2846_v11 = vmul.f32 1.442695, %v2842_v6  ;;  %v2645_v51 = vmul.f32 1.442695, %v2638_v30 }
0x125f   :  { %4784 = vpow2.f32 %v2846_v11 }
0x1262   :  { %v2835_v39 = vpop.xlane.xlu1 %2834  ;;  %v2841_v46 = vpop.xlane.xlu2 %2840 }
0x1263   :  { %v2843_v53 = vsub.f32 %v2827_v62, %v2835_v39  ;;  %v2845_v36 = vsub.f32 %v2829_v1, %v2841_v46 }
0x1265   :  { %v2848_v19 = vmul.f32 1.442695, %v2843_v53  ;;  %v6225_v21 = vpop.eup %4784  ;;  %v2852_v54 = vmul.f32 1.442695, %v2845_v36 }
0x1266   :  { %v2854_v24 = vsel %vm300_vm1, %v6225_v21, 0.0 }
0x1267   :  { %4786 = vpow2.f32 %v2848_v19  ;;  %2855 = vadd.xlane.f32.xlu1 %v2854_v24 }
0x1268   :  { %4788 = vpow2.f32 %v2852_v54 }
0x1269   :  { %4790 = vpow2.f32 %v2643_v23 }
0x126a   :  { %v4574_v42 = vpop.permute.xlu2 %4573 }
0x126b   :  { %v4575_v22 = vunpack.i.l.bf16 %v4574_v42  ;;  %4578 = vrot.lane.b32.xlu0 %v5969_v34, %s5144_s7  ;;  %v4576_v0 = vunpack.i.h.bf16 %v4574_v42 }
0x126d   :  { %v6231_v57 = vpop.eup %4786  ;;  %2703 = vmatpush.msrb.mxu3 %v4575_v22  ;;  %v6296_v22 = vld [vmem:[#allocation10 + $0x18] sm:$0xff] }
0x126e   :  { %v2857_v8 = vsel %vm300_vm1, %v6231_v57, 0.0  ;;  %v6237_v50 = vpop.eup %4788 }
0x126f   :  { %2704 = vmatpush.msrb.mxu3 %v4576_v0  ;;  %2858 = vadd.xlane.f32.xlu1 %v2857_v8  ;;  %v2863_v37 = vsel %vm300_vm1, %v6237_v50, 0.0  ;;  %v6252_v7 = vpop.eup %4790 }
0x1270   :  { %v2653_v25 = vsel %vm300_vm1, %v6252_v7, 0.0 }
0x1273   :  { %4588 = vrot.lane.b32.xlu0 %v5975_v26, %s5144_s7  ;;  %v6250_v26 = vadd.f32 %v5898_v38, %v6178_v4  ;;  %v6266_v4 = vadd.f32 %v5898_v38, %v6190_v2 }
0x1277   :  { %2864 = vadd.xlane.f32.xlu1 %v2863_v37 }
0x127a   :  { %v4584_v34 = vpop.permute.xlu1 %4583 }
0x127b   :  { %v4585_v62 = vunpack.i.l.bf16 %v4584_v34  ;;  %v4586_v1 = vunpack.i.h.bf16 %v4584_v34 }
0x127d   :  { %2705 = vmatpush.msrb.mxu3 %v4585_v62  ;;  %v6307_v62 = vld [vmem:[#allocation10 + $0x10] sm:$0xff] }
0x127e   :  { %2747 = vmatpush.msrb.mxu1 %v6307_v62 }
0x127f   :  { %2706 = vmatpush.msrb.mxu3 %v4586_v1 }
0x1281   :  { %2954 = vmatpush.msra.mxu3 %v6296_v22 }
0x1290   :  { %3187 = vrot.lane.b32.xlu1 %v6244_v9, %s5134_s5 }
0x1298   :  { %3183 = vrot.lane.b32.xlu1 %v6250_v26, %s5134_s5 }
0x129d   :  { %2654 = vadd.xlane.f32.xlu0 %v2653_v25 }
0x12a0   :  { %3177 = vrot.lane.b32.xlu1 %v6260_v17, %s5136_s13 }
0x12b1   :  { %3189 = vrot.lane.b32.xlu0 %v6266_v4, %s5134_s5 }
0x12b9   :  { %2980 = vrot.lane.b32.xlu0 %v6244_v9, %s5135_s9 }
0x12c1   :  { %3185 = vrot.lane.b32.xlu0 %v6260_v17, %s5134_s5 }
0x12c2   :  { %v2649_v14 = vpop.xlane.xlu0 %2648 }
0x12c3   :  { %4792 = vrcp.f32 %v2649_v14 }
0x12c9   :  { %v4793_v55 = vpop.eup %4792  ;;  %3175 = vrot.lane.b32.xlu0 %v6250_v26, %s5136_s13 }
0x12ca   :  { %v2663_v27 = vmul.f32 %v4793_v55, %v6211_v29  ;;  %v2838_v20 = vpop.xlane.xlu0 %2837  ;;  %v2652_v38 = vpop.xlane.xlu2 %2651 }
0x12cb   :  { %v2844_v2 = vsub.f32 %v6215_v43, %v2838_v20  ;;  %4794 = vrcp.f32 %v2652_v38 }
0x12cc   :  { %4352 = vmatmul.msk.f32.vlgmr.msrb.gmra.mxu3 %vm300_vm1, %v2663_v27 }
0x12cd   :  { %v2850_v13 = vmul.f32 1.442695, %v2844_v2 }
0x12cf   :  { %4796 = vpow2.f32 %v2850_v13 }
0x12d0   :  { %4798 = vpow2.f32 %v2645_v51 }
0x12d1   :  { %v4795_v47 = vpop.eup %4794  ;;  %3179 = vrot.lane.b32.xlu0 %v6244_v9, %s5136_s13 }
0x12d2   :  { %v2664_v58 = vmul.f32 %v4795_v47, %v6217_v12 }
0x12d4   :  { %4353 = vmatmul.msk.f32.gmra.mxu3 %vm300_vm1, %v2664_v58 }
0x12d5   :  { %v4797_v29 = vpop.eup %4796 }
0x12d6   :  { %v2860_v43 = vsel %vm300_vm1, %v4797_v29, 0.0  ;;  %v4799_v56 = vpop.eup %4798 }
0x12d7   :  { %2861 = vadd.xlane.f32.xlu2 %v2860_v43  ;;  %v2656_v44 = vsel %vm300_vm1, %v4799_v56, 0.0 }
0x12da   :  { %v2856_v6 = vpop.xlane.xlu1 %2855 }
0x12db   :  { %4800 = vrcp.f32 %v2856_v6 }
0x12dd   :  { %v4579_v11 = vpop.permute.xlu0 %4578 }
0x12de   :  { %v4580_v61 = vunpack.i.l.bf16 %v4579_v11  ;;  %v4581_v39 = vunpack.i.h.bf16 %v4579_v11 }
0x12df   :  { %2657 = vadd.xlane.f32.xlu2 %v2656_v44 }
0x12e0   :  { %2910 = vmatpush.msra.mxu0 %v4580_v61  ;;  %v6330_v61 = vld [vmem:[%s6823_s30] ss:$0 sm:$0xff] }
0x12e1   :  { %v4801_v53 = vpop.eup %4800  ;;  %v2347_v44 = vadd.f32 %v6330_v61, %v6170_v45 }
0x12e2   :  { %2911 = vmatpush.msra.mxu0 %v4581_v39  ;;  %v2859_v46 = vpop.xlane.xlu1 %2858  ;;  %v2870_v24 = vmul.f32 %v4801_v53, %v6225_v21 }
0x12e3   :  { %4802 = vrcp.f32 %v2859_v46  ;;  %v2554_v46 = vadd.f32 %v6180_v52, %v2347_v44 }
0x12e5   :  { %v4589_v12 = vpop.permute.xlu0 %4588 }
0x12e6   :  { %v4590_v19 = vunpack.i.l.bf16 %v4589_v12  ;;  %v4591_v36 = vunpack.i.h.bf16 %v4589_v12 }
0x12e8   :  { %2912 = vmatpush.msra.mxu0 %v4590_v19 }
0x12e9   :  { %v4803_v54 = vpop.eup %4802 }
0x12ea   :  { %2913 = vmatpush.msra.mxu0 %v4591_v36  ;;  %v2871_v42 = vmul.f32 %v4803_v54, %v6231_v57  ;;  %v2865_v0 = vpop.xlane.xlu1 %2864 }
0x12eb   :  { %4368 = vmatmul.msk.f32.vlgmr.msra.gmra.mxu0 %vm300_vm1, %v2870_v24 }
0x12ec   :  { %3157 = vmatpush.msrb.mxu0 %v6061_v40 }
0x12f3   :  { %4369 = vmatmul.msk.f32.gmra.mxu0 %vm300_vm1, %v2871_v42 }
0x12f7   :  { %2982 = vrot.lane.b32.xlu2 %v6266_v4, %s5135_s9 }
0x12ff   :  { %2978 = vrot.lane.b32.xlu2 %v6260_v17, %s5135_s9 }
0x1302   :  { %v3188_v37 = vpop.permute.xlu1 %3187 }
0x1307   :  { %2976 = vrot.lane.b32.xlu2 %v6250_v26, %s5135_s9 }
0x130a   :  { %v3184_v15 = vpop.permute.xlu1 %3183 }
0x130f   :  { %3181 = vrot.lane.b32.xlu2 %v6266_v4, %s5136_s13 }
0x1310   :  { %v2655_v40 = vpop.xlane.xlu0 %2654 }
0x1311   :  { %4804 = vrcp.f32 %v2655_v40 }
0x1312   :  { %v3178_v12 = vpop.permute.xlu1 %3177 }
0x1317   :  { %v4805_v21 = vpop.eup %4804 }
0x1318   :  { %v2665_v57 = vmul.f32 %v4805_v21, %v6252_v7  ;;  %v2350_v21 = vadd.f32 %v6330_v61, %v6176_v5 }
0x131a   :  { %4354 = vmatmul.msk.f32.gmra.mxu3 %vm300_vm1, %v2665_v57  ;;  %v2557_v57 = vadd.f32 %v6192_v10, %v2350_v21 }
0x1323   :  { %v3190_v8 = vpop.permute.xlu0 %3189 }
0x1324   :  { %4392 = vmatpush.xpose.msk.msrb.mxu3 %vm256_vm0, %v3190_v8 }
0x1328   :  { %4393 = vmatpush.xpose.msk.msrb.mxu3 %vm256_vm0, %v3188_v37 }
0x132b   :  { %v2981_v34 = vpop.permute.xlu0 %2980 }
0x1333   :  { %v3186_v1 = vpop.permute.xlu0 %3185 }
0x1334   :  { %4394 = vmatpush.xpose.msk.msrb.mxu3 %vm256_vm0, %v3186_v1 }
0x1338   :  { %4395 = vmatpush.xpose.msk.msrb.mxu3 %vm256_vm0, %v3184_v15 }
0x133b   :  { %v3176_v11 = vpop.permute.xlu0 %3175 }
0x1343   :  { %v3180_v24 = vpop.permute.xlu0 %3179 }
0x134a   :  { %v2862_v23 = vpop.xlane.xlu2 %2861 }
0x134b   :  { %4806 = vrcp.f32 %v2862_v23 }
0x134c   :  { %4808 = vrcp.f32 %v2865_v0 }
0x134f   :  { %v2708_v7 = vpop.f32.mrf.mxu3 }
0x1350   :  { %4356 = vmatmul.msk.f32.vlgmr.msrb.gmra.mxu1 %vm256_vm0, %v2708_v7 }
0x1351   :  { %v4807_v25 = vpop.eup %4806 }
0x1352   :  { %v2658_v14 = vpop.xlane.xlu2 %2657  ;;  %v2872_v55 = vmul.f32 %v4807_v25, %v4797_v29  ;;  %v4809_v27 = vpop.eup %4808 }
0x1353   :  { %4810 = vrcp.f32 %v2658_v14  ;;  %v2873_v13 = vmul.f32 %v4809_v27, %v6237_v50 }
0x1354   :  { %4370 = vmatmul.msk.f32.gmra.mxu0 %vm300_vm1, %v2872_v55 }
0x1357   :  { %v2711_v20 = vpop.f32.mrf.mxu3 }
0x1358   :  { %4357 = vmatmul.msk.f32.gmra.mxu1 %vm256_vm0, %v2711_v20 }
0x1359   :  { %v4811_v38 = vpop.eup %4810 }
0x135a   :  { %v2983_v2 = vpop.permute.xlu2 %2982  ;;  %v2666_v30 = vmul.f32 %v4811_v38, %v4799_v56 }
0x135b   :  { %4376 = vmatpush.xpose.msk.msra.mxu1 %vm256_vm0, %v2983_v2 }
0x135c   :  { %4355 = vmatmul.msk.f32.gmra.mxu3 %vm300_vm1, %v2666_v30  ;;  %4371 = vmatmul.msk.f32.gmra.mxu0 %vm300_vm1, %v2873_v13 }
0x135f   :  { %4377 = vmatpush.xpose.msk.msra.mxu1 %vm256_vm0, %v2981_v34 }
0x1362   :  { %v2979_v47 = vpop.permute.xlu2 %2978 }
0x1363   :  { %4378 = vmatpush.xpose.msk.msra.mxu1 %vm256_vm0, %v2979_v47 }
0x1368   :  { %v2915_v51 = vpop.f32.mrf.mxu0 }
0x1369   :  { %4372 = vmatmul.msk.f32.vlgmr.msra.gmra.mxu3 %vm256_vm0, %v2915_v51 }
0x136a   :  { %v2977_v58 = vpop.permute.xlu2 %2976 }
0x136b   :  { %4379 = vmatpush.xpose.msk.msra.mxu1 %vm256_vm0, %v2977_v58 }
0x1370   :  { %v2918_v29 = vpop.f32.mrf.mxu0 }
0x1371   :  { %4373 = vmatmul.msk.f32.gmra.mxu3 %vm256_vm0, %v2918_v29 }
0x1372   :  { %v3182_v45 = vpop.permute.xlu2 %3181 }
0x139d   :  { %v2714_v50 = vpop.f32.mrf.mxu3 }
0x139e   :  { %4358 = vmatmul.msk.f32.gmra.mxu1 %vm256_vm0, %v2714_v50 }
0x13cd   :  { %v2749_v39 = vpop.f32.mrf.mxu1 }
0x13ce   :  { %v2761_v53 = vadd.f32 %v2749_v39, %v2554_v46 }
0x13d1   :  { %v2921_v43 = vpop.f32.mrf.mxu0 }
0x13d2   :  { %4374 = vmatmul.msk.f32.gmra.mxu3 %vm256_vm0, %v2921_v43 }
0x13d5   :  { %v6348_v52 = vpop.f32.mrf.mxu1 }
0x13d9   :  { %v2924_v56 = vpop.f32.mrf.mxu0 }
0x13da   :  { %4375 = vmatmul.msk.f32.gmra.mxu3 %vm256_vm0, %v2924_v56 }
0x13df   :  { %v2717_v6 = vpop.f32.mrf.mxu3 }
0x13e0   :  { %4359 = vmatmul.msk.f32.gmra.mxu1 %vm256_vm0, %v2717_v6  ;;  %v6376_v6 = vpack.i.bf16 %v6244_v9, %v6266_v4 }
0x13e2   :  { %4396 = vmatmul.msk.f32.vlgmr.msrb.gmra.mxu3 %vm256_vm0, %v3176_v11  ;;  %v6382_v11 = vpack.i.bf16 %v6250_v26, %v6260_v17 }
0x13e8   :  { %4380 = vmatmul.msk.f32.vlgmr.msra.gmra.mxu1 %vm256_vm0, %v6250_v26 }
0x13ea   :  { %4397 = vmatmul.msk.f32.gmra.mxu3 %vm256_vm0, %v3178_v12 }
0x13ec   :  { %v2956_v19 = vpop.f32.mrf.mxu3 }
0x13ed   :  { %v6338_v36 = vadd.f32 %v2956_v19, %v2761_v53 }
0x13f0   :  { %4381 = vmatmul.msk.f32.gmra.mxu1 %vm256_vm0, %v6260_v17 }
0x13f2   :  { %4398 = vmatmul.msk.f32.gmra.mxu3 %vm256_vm0, %v3180_v24 }
0x13f4   :  { %v6350_v54 = vpop.f32.mrf.mxu3 }
0x13f8   :  { %4382 = vmatmul.msk.f32.gmra.mxu1 %vm256_vm0, %v6244_v9 }
0x13fa   :  { %4399 = vmatmul.msk.f32.gmra.mxu3 %vm256_vm0, %v3182_v45 }
0x1400   :  { %4383 = vmatmul.msk.f32.gmra.mxu1 %vm256_vm0, %v6266_v4 }
0x141b   :  { %v6352_v42 = vpop.f32.mrf.mxu1 }
0x1455   :  { %v6354_v40 = vpop.f32.mrf.mxu3 }
0x145d   :  { %v2758_v0 = vpop.f32.mrf.mxu1  ;;  %v2965_v8 = vpop.f32.mrf.mxu3 }
0x145e   :  { %v2764_v37 = vadd.f32 %v2758_v0, %v2557_v57 }
0x1460   :  { %v6359_v34 = vadd.f32 %v2965_v8, %v2764_v37 }
0x1465   :  { %v3017_v1 = vpop.f32.mrf.mxu1  ;;  %v3224_v15 = vpop.f32.mrf.mxu3 }
0x1466   :  { %v3029_v23 = vmul.f32 0.35355338, %v3017_v1  ;;  %v3236_v2 = vmul.f32 0.35355338, %v3224_v15 }
0x1468   :  { %v3033_v7 = vsel %vm300_vm1, %v3029_v23, -inf  ;;  %v3240_v47 = vsel %vm300_vm1, %v3236_v2, -inf }
0x1469   :  { %3034 = vmax.xlane.f32.xlu1 %v3033_v7 }
0x146d   :  { %v3020_v25 = vpop.f32.mrf.mxu1  ;;  %v3227_v14 = vpop.f32.mrf.mxu3 }
0x146e   :  { %v3030_v55 = vmul.f32 0.35355338, %v3020_v25  ;;  %v3237_v29 = vmul.f32 0.35355338, %v3227_v14 }
0x1470   :  { %v3036_v27 = vsel %vm300_vm1, %v3030_v55, -inf  ;;  %v3243_v56 = vsel %vm300_vm1, %v3237_v29, -inf }
0x1471   :  { %3037 = vmax.xlane.f32.xlu2 %v3036_v27 }
0x1475   :  { %v3023_v5 = vpop.f32.mrf.mxu1  ;;  %v3230_v10 = vpop.f32.mrf.mxu3 }
0x1476   :  { %v6363_v20 = vmul.f32 0.35355338, %v3023_v5  ;;  %v6390_v21 = vmul.f32 0.35355338, %v3230_v10 }
0x1478   :  { %v3039_v38 = vsel %vm300_vm1, %v6363_v20, -inf  ;;  %v3246_v8 = vsel %vm300_vm1, %v6390_v21, -inf }
0x1479   :  { %3040 = vmax.xlane.f32.xlu0 %v3039_v38 }
0x147d   :  { %v3026_v30 = vpop.f32.mrf.mxu1  ;;  %v3233_v58 = vpop.f32.mrf.mxu3 }
0x147e   :  { %v6367_v13 = vmul.f32 0.35355338, %v3026_v30  ;;  %v3239_v50 = vmul.f32 0.35355338, %v3233_v58 }
0x1480   :  { %v3042_v51 = vsel %vm300_vm1, %v6367_v13, -inf  ;;  %v3249_v43 = vsel %vm300_vm1, %v3239_v50, -inf }
0x1481   :  { %3241 = vmax.xlane.f32.xlu0 %v3240_v47  ;;  %3043 = vmax.xlane.f32.xlu1 %v3042_v51 }
0x1489   :  { %3250 = vmax.xlane.f32.xlu0 %v3249_v43  ;;  %3244 = vmax.xlane.f32.xlu1 %v3243_v56 }
0x149d   :  { %4593 = vrot.lane.b32.xlu0 %v6376_v6, %s5139_s29 }
0x14a2   :  { %4603 = vrot.lane.b32.xlu1 %v6382_v11, %s5139_s29 }
0x14dc   :  { %v3035_v44 = vpop.xlane.xlu1 %3034 }
0x14dd   :  { %v3045_v39 = vsub.f32 %v3029_v23, %v3035_v44 }
0x14df   :  { %v3049_v46 = vmul.f32 1.442695, %v3045_v39 }
0x14e1   :  { %4812 = vpow2.f32 %v3049_v46 }
0x14e4   :  { %v3038_v12 = vpop.xlane.xlu2 %3037 }
0x14e5   :  { %v3046_v53 = vsub.f32 %v3030_v55, %v3038_v12 }
0x14e7   :  { %v6386_v19 = vpop.eup %4812  ;;  %v3051_v24 = vmul.f32 1.442695, %v3046_v53 }
0x14e8   :  { %v3057_v45 = vsel %vm300_vm1, %v6386_v19, 0.0 }
0x14e9   :  { %4814 = vpow2.f32 %v3051_v24  ;;  %3058 = vadd.xlane.f32.xlu2 %v3057_v45 }
0x14ec   :  { %v3041_v57 = vpop.xlane.xlu0 %3040 }
0x14ed   :  { %v3047_v46 = vsub.f32 %v6363_v20, %v3041_v57 }
0x14ef   :  { %v6392_v0 = vpop.eup %4814  ;;  %v3053_v12 = vmul.f32 1.442695, %v3047_v46 }
0x14f0   :  { %v3060_v37 = vsel %vm300_vm1, %v6392_v0, 0.0 }
0x14f1   :  { %3247 = vmax.xlane.f32.xlu2 %v3246_v8  ;;  %3061 = vadd.xlane.f32.xlu0 %v3060_v37 }
0x14f4   :  { %v3242_v1 = vpop.xlane.xlu0 %3241  ;;  %v6398_v15 = vpop.xlane.xlu1 %3043 }
0x14f5   :  { %v3252_v23 = vsub.f32 %v3236_v2, %v3242_v1  ;;  %v3048_v1 = vsub.f32 %v6367_v13, %v6398_v15 }
0x14f7   :  { %v3256_v7 = vmul.f32 1.442695, %v3252_v23 }
0x14f9   :  { %4816 = vpow2.f32 %v3256_v7 }
0x14fc   :  { %v3245_v25 = vpop.xlane.xlu1 %3244  ;;  %v3251_v14 = vpop.xlane.xlu0 %3250 }
0x14fd   :  { %v3253_v55 = vsub.f32 %v3237_v29, %v3245_v25  ;;  %v3255_v10 = vsub.f32 %v3239_v50, %v3251_v14  ;;  %v3055_v25 = vmul.f32 1.442695, %v3048_v1 }
0x14ff   :  { %v6400_v27 = vpop.eup %4816  ;;  %v3258_v5 = vmul.f32 1.442695, %v3253_v55  ;;  %v3262_v30 = vmul.f32 1.442695, %v3255_v10 }
0x1500   :  { %v3264_v38 = vsel %vm300_vm1, %v6400_v27, 0.0 }
0x1501   :  { %3265 = vadd.xlane.f32.xlu1 %v3264_v38  ;;  %4818 = vpow2.f32 %v3258_v5 }
0x1502   :  { %4820 = vpow2.f32 %v3262_v30 }
0x1503   :  { %4822 = vpow2.f32 %v3053_v12 }
0x1507   :  { %v6404_v47 = vpop.eup %4818 }
0x1508   :  { %v3267_v2 = vsel %vm300_vm1, %v6404_v47, 0.0  ;;  %v6410_v51 = vpop.eup %4820 }
0x1509   :  { %4598 = vrot.lane.b32.xlu2 %v6376_v6, %s5140_s6  ;;  %3268 = vadd.xlane.f32.xlu1 %v3267_v2  ;;  %v3273_v50 = vsel %vm300_vm1, %v6410_v51, 0.0  ;;  %v6422_v53 = vpop.eup %4822 }
0x150a   :  { %v3063_v24 = vsel %vm300_vm1, %v6422_v53, 0.0 }
0x150f   :  { %v4594_v58 = vpop.permute.xlu0 %4593 }
0x1510   :  { %v4595_v29 = vunpack.i.l.bf16 %v4594_v58  ;;  %v4596_v43 = vunpack.i.h.bf16 %v4594_v58 }
0x1511   :  { %4608 = vrot.lane.b32.xlu2 %v6382_v11, %s5140_s6  ;;  %3274 = vadd.xlane.f32.xlu1 %v3273_v50 }
0x1512   :  { %3113 = vmatpush.msra.mxu2 %v4595_v29 }
0x1514   :  { %3114 = vmatpush.msra.mxu2 %v4596_v43  ;;  %v4604_v56 = vpop.permute.xlu1 %4603 }
0x1515   :  { %v4605_v44 = vunpack.i.l.bf16 %v4604_v56  ;;  %v4606_v39 = vunpack.i.h.bf16 %v4604_v56 }
0x1517   :  { %3115 = vmatpush.msra.mxu2 %v4605_v44 }
0x1519   :  { %3116 = vmatpush.msra.mxu2 %v4606_v39 }
0x151b   :  { %3364 = vmatpush.msrb.mxu2 %v6122_v3 }
0x152a   :  { %3601 = vrot.lane.b32.xlu1 %v6244_v9, %s5142_s23 }
0x1532   :  { %3392 = vrot.lane.b32.xlu1 %v6260_v17, %s5137_s17 }
0x153a   :  { %3064 = vadd.xlane.f32.xlu2 %v3063_v24  ;;  %3390 = vrot.lane.b32.xlu1 %v6250_v26, %s5137_s17 }
0x1542   :  { %3384 = vrot.lane.b32.xlu1 %v6260_v17, %s5138_s21 }
0x154a   :  { %3595 = vrot.lane.b32.xlu1 %v6266_v4, %s5143_s18 }
0x1552   :  { %3603 = vrot.lane.b32.xlu2 %v6266_v4, %s5142_s23  ;;  %4613 = vrot.lane.b32.xlu1 %v6376_v6, %s5141_s22 }
0x155a   :  { %3394 = vrot.lane.b32.xlu2 %v6244_v9, %s5137_s17 }
0x155c   :  { %v3059_v3 = vpop.xlane.xlu2 %3058 }
0x155d   :  { %4824 = vrcp.f32 %v3059_v3 }
0x1562   :  { %3597 = vrot.lane.b32.xlu2 %v6250_v26, %s5142_s23 }
0x1563   :  { %v4825_v20 = vpop.eup %4824 }
0x1564   :  { %v3073_v45 = vmul.f32 %v4825_v20, %v6386_v19  ;;  %v3248_v57 = vpop.xlane.xlu2 %3247  ;;  %v3062_v8 = vpop.xlane.xlu0 %3061 }
0x1565   :  { %v3254_v37 = vsub.f32 %v6390_v21, %v3248_v57  ;;  %4826 = vrcp.f32 %v3062_v8 }
0x1566   :  { %4384 = vmatmul.msk.f32.vlgmr.msra.gmra.mxu2 %vm300_vm1, %v3073_v45 }
0x1567   :  { %v3260_v23 = vmul.f32 1.442695, %v3254_v37 }
0x1569   :  { %4828 = vpow2.f32 %v3260_v23 }
0x156a   :  { %3382 = vrot.lane.b32.xlu2 %v6250_v26, %s5138_s21  ;;  %4830 = vpow2.f32 %v3055_v25 }
0x156b   :  { %v4827_v7 = vpop.eup %4826 }
0x156c   :  { %v4599_v14 = vpop.permute.xlu2 %4598  ;;  %v3074_v19 = vmul.f32 %v4827_v7, %v6392_v0 }
0x156d   :  { %v4600_v55 = vunpack.i.l.bf16 %v4599_v14  ;;  %v4601_v5 = vunpack.i.h.bf16 %v4599_v14 }
0x156e   :  { %4385 = vmatmul.msk.f32.gmra.mxu2 %vm300_vm1, %v3074_v19 }
0x156f   :  { %v4829_v21 = vpop.eup %4828  ;;  %3320 = vmatpush.msrb.mxu1 %v4600_v55 }
0x1570   :  { %v3270_v10 = vsel %vm300_vm1, %v4829_v21, 0.0  ;;  %v4831_v38 = vpop.eup %4830 }
0x1571   :  { %3321 = vmatpush.msrb.mxu1 %v4601_v5  ;;  %3271 = vadd.xlane.f32.xlu0 %v3270_v10  ;;  %v3066_v2 = vsel %vm300_vm1, %v4831_v38, 0.0 }
0x1572   :  { %3593 = vrot.lane.b32.xlu2 %v6244_v9, %s5143_s18 }
0x1574   :  { %v4609_v13 = vpop.permute.xlu2 %4608  ;;  %v3266_v15 = vpop.xlane.xlu1 %3265 }
0x1575   :  { %v4610_v30 = vunpack.i.l.bf16 %v4609_v13  ;;  %4832 = vrcp.f32 %v3266_v15  ;;  %v4611_v0 = vunpack.i.h.bf16 %v4609_v13 }
0x1577   :  { %3322 = vmatpush.msrb.mxu1 %v4610_v30 }
0x1579   :  { %3323 = vmatpush.msrb.mxu1 %v4611_v0  ;;  %3067 = vadd.xlane.f32.xlu0 %v3066_v2 }
0x157a   :  { %3388 = vrot.lane.b32.xlu2 %v6266_v4, %s5138_s21 }
0x157b   :  { %3571 = vmatpush.msra.mxu1 %v6307_v62  ;;  %v4833_v58 = vpop.eup %4832 }
0x157c   :  { %v3280_v29 = vmul.f32 %v4833_v58, %v6400_v27  ;;  %v3269_v50 = vpop.xlane.xlu1 %3268 }
0x157d   :  { %4834 = vrcp.f32 %v3269_v50 }
0x157e   :  { %4400 = vmatmul.msk.f32.vlgmr.msrb.gmra.mxu1 %vm300_vm1, %v3280_v29 }
0x1583   :  { %v4835_v43 = vpop.eup %4834 }
0x1584   :  { %v3281_v56 = vmul.f32 %v4835_v43, %v6404_v47  ;;  %v3275_v44 = vpop.xlane.xlu1 %3274 }
0x1586   :  { %4401 = vmatmul.msk.f32.gmra.mxu1 %vm300_vm1, %v3281_v56 }
0x158d   :  { %3396 = vrot.lane.b32.xlu0 %v6266_v4, %s5137_s17 }
0x1595   :  { %3599 = vrot.lane.b32.xlu0 %v6260_v17, %s5142_s23 }
0x159c   :  { %v3602_v62 = vpop.permute.xlu1 %3601 }
0x159d   :  { %3589 = vrot.lane.b32.xlu0 %v6250_v26, %s5143_s18 }
0x15a4   :  { %v3393_v27 = vpop.permute.xlu1 %3392 }
0x15a5   :  { %3591 = vrot.lane.b32.xlu0 %v6260_v17, %s5143_s18 }
0x15ac   :  { %v3391_v39 = vpop.permute.xlu1 %3390 }
0x15ad   :  { %v3065_v46 = vpop.xlane.xlu2 %3064  ;;  %3386 = vrot.lane.b32.xlu0 %v6244_v9, %s5138_s21 }
0x15ae   :  { %4836 = vrcp.f32 %v3065_v46 }
0x15b4   :  { %v4837_v47 = vpop.eup %4836  ;;  %v3385_v4 = vpop.permute.xlu1 %3384 }
0x15b5   :  { %v3604_v12 = vpop.permute.xlu2 %3603  ;;  %v3075_v24 = vmul.f32 %v4837_v47, %v6422_v53 }
0x15b6   :  { %4424 = vmatpush.xpose.msk.msra.mxu2 %vm256_vm0, %v3604_v12 }
0x15b7   :  { %4386 = vmatmul.msk.f32.gmra.mxu2 %vm300_vm1, %v3075_v24 }
0x15ba   :  { %4425 = vmatpush.xpose.msk.msra.mxu2 %vm256_vm0, %v3602_v62 }
0x15bc   :  { %v3596_v26 = vpop.permute.xlu1 %3595 }
0x15bd   :  { %v3395_v55 = vpop.permute.xlu2 %3394 }
0x15c4   :  { %v4614_v3 = vpop.permute.xlu1 %4613 }
0x15c5   :  { %v4615_v17 = vunpack.i.l.bf16 %v4614_v3  ;;  %v4616_v20 = vunpack.i.h.bf16 %v4614_v3 }
0x15c7   :  { %3527 = vmatpush.msra.mxu3 %v4615_v17 }
0x15c9   :  { %3528 = vmatpush.msra.mxu3 %v4616_v20 }
0x15e4   :  { %v3272_v45 = vpop.xlane.xlu0 %3271 }
0x15e5   :  { %4838 = vrcp.f32 %v3272_v45 }
0x15e6   :  { %4840 = vrcp.f32 %v3275_v44 }
0x15e9   :  { %v3118_v9 = vpop.f32.mrf.mxu2 }
0x15ea   :  { %4388 = vmatmul.msk.f32.vlgmr.msrb.gmra.mxu0 %vm256_vm0, %v3118_v9 }
0x15eb   :  { %v4839_v57 = vpop.eup %4838 }
0x15ec   :  { %v3068_v53 = vpop.xlane.xlu0 %3067  ;;  %v3282_v8 = vmul.f32 %v4839_v57, %v4829_v21  ;;  %v4841_v37 = vpop.eup %4840 }
0x15ed   :  { %4842 = vrcp.f32 %v3068_v53  ;;  %v3283_v25 = vmul.f32 %v4841_v37, %v6410_v51  ;;  %v3598_v51 = vpop.permute.xlu2 %3597 }
0x15ee   :  { %4402 = vmatmul.msk.f32.gmra.mxu1 %vm300_vm1, %v3282_v8 }
0x15f1   :  { %v3121_v1 = vpop.f32.mrf.mxu2 }
0x15f2   :  { %4389 = vmatmul.msk.f32.gmra.mxu0 %vm256_vm0, %v3121_v1 }
0x15f3   :  { %v4843_v23 = vpop.eup %4842 }
0x15f4   :  { %v3076_v7 = vmul.f32 %v4843_v23, %v4831_v38 }
0x15f5   :  { %v3383_v58 = vpop.permute.xlu2 %3382 }
0x15f6   :  { %4387 = vmatmul.msk.f32.gmra.mxu2 %vm300_vm1, %v3076_v7  ;;  %4403 = vmatmul.msk.f32.gmra.mxu1 %vm300_vm1, %v3283_v25 }
0x15fb   :  { %v3325_v14 = vpop.f32.mrf.mxu1 }
0x15fd   :  { %v3594_v56 = vpop.permute.xlu2 %3593 }
0x15fe   :  { %4404 = vmatmul.msk.f32.vlgmr.msrb.gmra.mxu2 %vm256_vm0, %v3325_v14 }
0x15ff   :  { %v3397_v19 = vpop.permute.xlu0 %3396 }
0x1600   :  { %4408 = vmatpush.xpose.msk.msra.mxu0 %vm256_vm0, %v3397_v19 }
0x1603   :  { %v3328_v21 = vpop.f32.mrf.mxu1 }
0x1604   :  { %4409 = vmatpush.xpose.msk.msra.mxu0 %vm256_vm0, %v3395_v55 }
0x1605   :  { %v3389_v62 = vpop.permute.xlu2 %3388 }
0x1606   :  { %4405 = vmatmul.msk.f32.gmra.mxu2 %vm256_vm0, %v3328_v21 }
0x1607   :  { %v3600_v5 = vpop.permute.xlu0 %3599 }
0x1608   :  { %4410 = vmatpush.xpose.msk.msra.mxu0 %vm256_vm0, %v3393_v27  ;;  %4426 = vmatpush.xpose.msk.msra.mxu2 %vm256_vm0, %v3600_v5 }
0x160c   :  { %4411 = vmatpush.xpose.msk.msra.mxu0 %vm256_vm0, %v3391_v39  ;;  %4427 = vmatpush.xpose.msk.msra.mxu2 %vm256_vm0, %v3598_v51 }
0x160f   :  { %v3590_v38 = vpop.permute.xlu0 %3589 }
0x1617   :  { %v3592_v43 = vpop.permute.xlu0 %3591 }
0x161f   :  { %v3387_v44 = vpop.permute.xlu0 %3386 }
0x163a   :  { %v3124_v10 = vpop.f32.mrf.mxu2 }
0x163b   :  { %4390 = vmatmul.msk.f32.gmra.mxu0 %vm256_vm0, %v3124_v10 }
0x1667   :  { %v3159_v0 = vpop.f32.mrf.mxu0 }
0x1668   :  { %v3171_v2 = vadd.f32 %v6330_v61, %v3159_v0 }
0x166b   :  { %v3331_v13 = vpop.f32.mrf.mxu1 }
0x166c   :  { %4406 = vmatmul.msk.f32.gmra.mxu2 %vm256_vm0, %v3331_v13 }
0x166f   :  { %v6503_v27 = vpop.f32.mrf.mxu0 }
0x1673   :  { %v3334_v15 = vpop.f32.mrf.mxu1 }
0x1674   :  { %4407 = vmatmul.msk.f32.gmra.mxu2 %vm256_vm0, %v3334_v15 }
0x1679   :  { %v3127_v30 = vpop.f32.mrf.mxu2 }
0x167a   :  { %4391 = vmatmul.msk.f32.gmra.mxu0 %vm256_vm0, %v3127_v30 }
0x167c   :  { %4428 = vmatmul.msk.f32.vlgmr.msra.gmra.mxu2 %vm256_vm0, %v3590_v38 }
0x1681   :  { %v3366_v29 = vpop.f32.mrf.mxu2 }
0x1682   :  { %v6494_v50 = vadd.f32 %v3366_v29, %v3171_v2  ;;  %4412 = vmatmul.msk.f32.vlgmr.msra.gmra.mxu0 %vm256_vm0, %v3383_v58 }
0x1684   :  { %4429 = vmatmul.msk.f32.gmra.mxu2 %vm256_vm0, %v3592_v43 }
0x1689   :  { %v6505_v39 = vpop.f32.mrf.mxu2 }
0x168a   :  { %4413 = vmatmul.msk.f32.gmra.mxu0 %vm256_vm0, %v3385_v4 }
0x168c   :  { %4430 = vmatmul.msk.f32.gmra.mxu2 %vm256_vm0, %v3594_v56 }
0x1692   :  { %4414 = vmatmul.msk.f32.gmra.mxu0 %vm256_vm0, %v3387_v44 }
0x1694   :  { %4431 = vmatmul.msk.f32.gmra.mxu2 %vm256_vm0, %v3596_v26 }
0x169a   :  { %4415 = vmatmul.msk.f32.gmra.mxu0 %vm256_vm0, %v3389_v62 }
0x16b8   :  { %v3165_v46 = vpop.f32.mrf.mxu0 }
0x16b9   :  { %v3173_v47 = vadd.f32 %v6330_v61, %v3165_v46 }
0x16ef   :  { %v3372_v12 = vpop.f32.mrf.mxu2 }
0x16f0   :  { %v6508_v4 = vadd.f32 %v3372_v12, %v3173_v47 }
0x16f7   :  { %v3168_v24 = vpop.f32.mrf.mxu0  ;;  %v3375_v3 = vpop.f32.mrf.mxu2 }
0x16f8   :  { %v3174_v17 = vadd.f32 %v6330_v61, %v3168_v24 }
0x16fa   :  { %v6511_v20 = vadd.f32 %v3375_v3, %v3174_v17 }
0x16ff   :  { %v3431_v26 = vpop.f32.mrf.mxu0  ;;  %v3638_v45 = vpop.f32.mrf.mxu2 }
0x1700   :  { %v3443_v9 = vmul.f32 0.35355338, %v3431_v26  ;;  %v3650_v19 = vmul.f32 0.35355338, %v3638_v45 }
0x1702   :  { %v3447_v57 = vsel %vm300_vm1, %v3443_v9, -inf  ;;  %v3654_v5 = vsel %vm300_vm1, %v3650_v19, -inf }
0x1703   :  { %3448 = vmax.xlane.f32.xlu0 %v3447_v57 }
0x1707   :  { %v3434_v53 = vpop.f32.mrf.mxu0  ;;  %v3641_v8 = vpop.f32.mrf.mxu2 }
0x1708   :  { %v3444_v37 = vmul.f32 0.35355338, %v3434_v53  ;;  %v3651_v13 = vmul.f32 0.35355338, %v3641_v8 }
0x170a   :  { %v3450_v1 = vsel %vm300_vm1, %v3444_v37, -inf  ;;  %v3657_v30 = vsel %vm300_vm1, %v3651_v13, -inf }
0x170b   :  { %3451 = vmax.xlane.f32.xlu2 %v3450_v1 }
0x170f   :  { %v3437_v23 = vpop.f32.mrf.mxu0  ;;  %v3644_v25 = vpop.f32.mrf.mxu2 }
0x1710   :  { %v3445_v7 = vmul.f32 0.35355338, %v3437_v23  ;;  %v6534_v56 = vmul.f32 0.35355338, %v3644_v25 }
0x1712   :  { %v3453_v14 = vsel %vm300_vm1, %v3445_v7, -inf  ;;  %v3660_v47 = vsel %vm300_vm1, %v6534_v56, -inf }
0x1713   :  { %3454 = vmax.xlane.f32.xlu1 %v3453_v14 }
0x1717   :  { %v3440_v55 = vpop.f32.mrf.mxu0  ;;  %v3647_v10 = vpop.f32.mrf.mxu2 }
0x1718   :  { %v6516_v21 = vmul.f32 0.35355338, %v3440_v55  ;;  %v6521_v15 = vmul.f32 0.35355338, %v3647_v10 }
0x171a   :  { %v3456_v51 = vsel %vm300_vm1, %v6516_v21, -inf  ;;  %v3663_v38 = vsel %vm300_vm1, %v6521_v15, -inf }
0x171b   :  { %3655 = vmax.xlane.f32.xlu1 %v3654_v5  ;;  %3457 = vmax.xlane.f32.xlu0 %v3456_v51 }
0x1723   :  { %3664 = vmax.xlane.f32.xlu1 %v3663_v38  ;;  %3658 = vmax.xlane.f32.xlu0 %v3657_v30 }
0x1737   :  { %4623 = vrot.lane.b32.xlu0 %v6382_v11, %s5141_s22 }
0x173c   :  { %4628 = vrot.lane.b32.xlu1 %v6382_v11, %s5144_s7  ;;  %v2348_v11 = vadd.f32 %v6330_v61, %v6172_v31 }
0x173e   :  { %v2555_v12 = vadd.f32 %v6184_v48, %v2348_v11 }
0x1740   :  { %v2762_v26 = vadd.f32 %v6348_v52, %v2555_v12 }
0x1742   :  { %v2969_v53 = vadd.f32 %v6350_v54, %v2762_v26 }
0x1744   :  { %v6548_v31 = vadd.f32 %v2969_v53, %v5801_v28 }
0x1746   :  { %v3809_v52 = vsel %vm300_vm1, %v6548_v31, 0.0 }
0x1776   :  { %v3449_v0 = vpop.xlane.xlu0 %3448 }
0x1777   :  { %v3459_v2 = vsub.f32 %v3443_v9, %v3449_v0 }
0x1779   :  { %v3463_v58 = vmul.f32 1.442695, %v3459_v2 }
0x177b   :  { %4844 = vpow2.f32 %v3463_v58 }
0x177e   :  { %v3452_v24 = vpop.xlane.xlu2 %3451 }
0x177f   :  { %v3460_v9 = vsub.f32 %v3444_v37, %v3452_v24 }
0x1781   :  { %v6530_v29 = vpop.eup %4844  ;;  %v3465_v1 = vmul.f32 1.442695, %v3460_v9 }
0x1782   :  { %v3471_v43 = vsel %vm300_vm1, %v6530_v29, 0.0 }
0x1783   :  { %3472 = vadd.xlane.f32.xlu2 %v3471_v43 }
0x1786   :  { %v3455_v44 = vpop.xlane.xlu1 %3454 }
0x1787   :  { %v3461_v62 = vsub.f32 %v3445_v7, %v3455_v44 }
0x1789   :  { %v3467_v46 = vmul.f32 1.442695, %v3461_v62 }
0x178b   :  { %4846 = vpow2.f32 %v3467_v46  ;;  %3661 = vmax.xlane.f32.xlu2 %v3660_v47 }
0x178e   :  { %v3656_v3 = vpop.xlane.xlu1 %3655  ;;  %v3458_v48 = vpop.xlane.xlu0 %3457 }
0x178f   :  { %v3666_v17 = vsub.f32 %v3650_v19, %v3656_v3  ;;  %v3462_v51 = vsub.f32 %v6516_v21, %v3458_v48 }
0x1791   :  { %v6542_v45 = vpop.eup %4846  ;;  %v3670_v57 = vmul.f32 1.442695, %v3666_v17  ;;  %v3469_v10 = vmul.f32 1.442695, %v3462_v51 }
0x1792   :  { %v3477_v8 = vsel %vm300_vm1, %v6542_v45, 0.0 }
0x1793   :  { %4848 = vpow2.f32 %v3670_v57  ;;  %3478 = vadd.xlane.f32.xlu1 %v3477_v8 }
0x1794   :  { %4850 = vpow2.f32 %v3465_v1 }
0x1796   :  { %v3659_v7 = vpop.xlane.xlu0 %3658  ;;  %v3665_v44 = vpop.xlane.xlu1 %3664 }
0x1797   :  { %v3667_v55 = vsub.f32 %v3651_v13, %v3659_v7  ;;  %v6580_v13 = vadd.f32 %v6359_v34, %v5811_v32  ;;  %v3669_v46 = vsub.f32 %v6521_v15, %v3665_v44 }
0x1799   :  { %v6550_v23 = vpop.eup %4848  ;;  %v3672_v5 = vmul.f32 1.442695, %v3667_v55  ;;  %v3815_v2 = vsel %vm300_vm1, %v6580_v13, 0.0  ;;  %v3676_v32 = vmul.f32 1.442695, %v3669_v46 }
0x179a   :  { %v3678_v37 = vsel %vm300_vm1, %v6550_v23, 0.0  ;;  %v6556_v54 = vpop.eup %4850 }
0x179b   :  { %3810 = vadd.xlane.f32.xlu1 %v3809_v52  ;;  %3679 = vadd.xlane.f32.xlu0 %v3678_v37  ;;  %v3474_v25 = vsel %vm300_vm1, %v6556_v54, 0.0  ;;  %4852 = vpow2.f32 %v3672_v5 }
0x179c   :  { %4854 = vpow2.f32 %v3469_v10 }
0x17a1   :  { %v6564_v38 = vpop.eup %4852 }
0x17a2   :  { %v6568_v30 = vpop.eup %4854 }
0x17a3   :  { %4618 = vrot.lane.b32.xlu2 %v6376_v6, %s5144_s7  ;;  %3475 = vadd.xlane.f32.xlu0 %v3474_v25  ;;  %v3681_v6 = vsel %vm300_vm1, %v6564_v38, 0.0  ;;  %v3480_v0 = vsel %vm300_vm1, %v6568_v30, 0.0 }
0x17a9   :  { %v4624_v28 = vpop.permute.xlu0 %4623 }
0x17aa   :  { %v4625_v14 = vunpack.i.l.bf16 %v4624_v28  ;;  %v4626_v19 = vunpack.i.h.bf16 %v4624_v28 }
0x17ac   :  { %3529 = vmatpush.msra.mxu3 %v4625_v14 }
0x17ae   :  { %3530 = vmatpush.msra.mxu3 %v4626_v19  ;;  %v4629_v12 = vpop.permute.xlu1 %4628 }
0x17af   :  { %v4631_v26 = vunpack.i.h.bf16 %v4629_v12 }
0x17b0   :  { %3778 = vmatpush.msrb.mxu3 %v6296_v22  ;;  %v6574_v22 = vadd.f32 %v6338_v36, %v5796_v33 }
0x17b2   :  { %v3806_v21 = vsel %vm300_vm1, %v6574_v22, 0.0 }
0x17cc   :  { %3682 = vadd.xlane.f32.xlu2 %v3681_v6 }
0x17d4   :  { %3481 = vadd.xlane.f32.xlu2 %v3480_v0 }
0x17dc   :  { %3807 = vadd.xlane.f32.xlu2 %v3806_v21 }
0x17e4   :  { %3816 = vadd.xlane.f32.xlu2 %v3815_v2 }
0x17f6   :  { %v3473_v58 = vpop.xlane.xlu2 %3472 }
0x17f7   :  { %4856 = vrcp.f32 %v3473_v58 }
0x17fd   :  { %v4857_v43 = vpop.eup %4856 }
0x17fe   :  { %v3487_v62 = vmul.f32 %v4857_v43, %v6530_v29  ;;  %v3662_v33 = vpop.xlane.xlu2 %3661  ;;  %v4630_v29 = vunpack.i.l.bf16 %v4629_v12 }
0x17ff   :  { %v3668_v36 = vsub.f32 %v6534_v56, %v3662_v33  ;;  %v2349_v56 = vadd.f32 %v6330_v61, %v6174_v49 }
0x1800   :  { %4416 = vmatmul.msk.f32.vlgmr.msra.gmra.mxu3 %vm300_vm1, %v3487_v62 }
0x1801   :  { %v3674_v47 = vmul.f32 1.442695, %v3668_v36  ;;  %v2556_v15 = vadd.f32 %v6188_v41, %v2349_v56  ;;  %v4007_v36 = vld [vmem:[#allocation12 + $0x18] sm:$0xff] }
0x1802   :  { %4057 = vmatpush.msrb.mxu1 %v4007_v36 }
0x1803   :  { %4858 = vpow2.f32 %v3674_v47  ;;  %v2763_v53 = vadd.f32 %v6352_v42, %v2556_v15  ;;  %v4006_v47 = vld [vmem:[#allocation12 + $0x10] sm:$0xff] }
0x1804   :  { %4860 = vpow2.f32 %v3676_v32  ;;  %4058 = vmatpush.msrb.mxu1 %v4006_v47  ;;  %v4005_v32 = vld [vmem:[#allocation12 + $0x8] sm:$0xff] }
0x1805   :  { %v2970_v8 = vadd.f32 %v6354_v40, %v2763_v53  ;;  %v6625_v53 = vld [vmem:[%s6824_s2] ss:$0 sm:$0xff] }
0x1806   :  { %v4619_v34 = vpop.permute.xlu2 %4618  ;;  %v3479_v41 = vpop.xlane.xlu1 %3478  ;;  %4059 = vmatpush.msrb.mxu1 %v4005_v32  ;;  %v6665_v32 = vld [vmem:[%s5283_s12] ss:$0 sm:$0xff] }
0x1807   :  { %v4620_v11 = vunpack.i.l.bf16 %v4619_v34  ;;  %v4621_v3 = vunpack.i.h.bf16 %v4619_v34  ;;  %v6596_v52 = vadd.f32 %v2970_v8, %v5806_v63  ;;  %v4004_v34 = vld [vmem:[#allocation12] sm:$0xff] }
0x1808   :  { %4060 = vmatpush.msrb.mxu1 %v4004_v34 }
0x1809   :  { %v4859_v24 = vpop.eup %4858  ;;  %3734 = vmatpush.msrb.mxu0 %v4620_v11  ;;  %v3812_v7 = vsel %vm300_vm1, %v6596_v52, 0.0 }
0x180a   :  { %v3684_v17 = vsel %vm300_vm1, %v4859_v24, 0.0  ;;  %v4861_v57 = vpop.eup %4860 }
0x180b   :  { %3735 = vmatpush.msrb.mxu0 %v4621_v3  ;;  %3685 = vadd.xlane.f32.xlu0 %v3684_v17  ;;  %v3687_v1 = vsel %vm300_vm1, %v4861_v57, 0.0 }
0x180d   :  { %3736 = vmatpush.msrb.mxu0 %v4630_v29 }
0x180e   :  { %v3680_v9 = vpop.xlane.xlu0 %3679 }
0x180f   :  { %4862 = vrcp.f32 %v3680_v9  ;;  %3737 = vmatpush.msrb.mxu0 %v4631_v26 }
0x1813   :  { %3688 = vadd.xlane.f32.xlu0 %v3687_v1  ;;  %v6628_v1 = vld [vmem:[%s6825_s10] ss:$0 sm:$0xff] }
0x1815   :  { %v4863_v48 = vpop.eup %4862 }
0x1816   :  { %v3694_v49 = vmul.f32 %v4863_v48, %v6550_v23  ;;  %v3476_v37 = vpop.xlane.xlu0 %3475 }
0x1817   :  { %4864 = vrcp.f32 %v3476_v37 }
0x1818   :  { %4432 = vmatmul.msk.f32.vlgmr.msrb.gmra.mxu0 %vm300_vm1, %v3694_v49  ;;  %4866 = vrcp.f32 %v3479_v41 }
0x181b   :  { %3813 = vadd.xlane.f32.xlu0 %v3812_v7 }
0x181d   :  { %v4865_v42 = vpop.eup %4864 }
0x181e   :  { %v3488_v40 = vmul.f32 %v4865_v42, %v6556_v54  ;;  %v4867_v25 = vpop.eup %4866 }
0x181f   :  { %v3489_v63 = vmul.f32 %v4867_v25, %v6542_v45 }
0x1820   :  { %4417 = vmatmul.msk.f32.gmra.mxu3 %vm300_vm1, %v3488_v40 }
0x1828   :  { %4418 = vmatmul.msk.f32.gmra.mxu3 %vm300_vm1, %v3489_v63 }
0x183f   :  { %v3683_v23 = vpop.xlane.xlu2 %3682 }
0x1840   :  { %4868 = vrcp.f32 %v3683_v23 }
0x1846   :  { %v4869_v28 = vpop.eup %4868 }
0x1847   :  { %v3482_v14 = vpop.xlane.xlu2 %3481  ;;  %v3695_v19 = vmul.f32 %v4869_v28, %v6564_v38 }
0x1848   :  { %4870 = vrcp.f32 %v3482_v14  ;;  %v4016_v14 = vld [vmem:[#allocation13 + $0x38] sm:$0xff] }
0x1849   :  { %4433 = vmatmul.msk.f32.gmra.mxu0 %vm300_vm1, %v3695_v19  ;;  %v4015_v19 = vld [vmem:[#allocation13 + $0x30] sm:$0xff]  ;;  %4129 = vmatpush.msrb.mxu2 %v4016_v14 }
0x184b   :  { %4130 = vmatpush.msrb.mxu2 %v4015_v19 }
0x184e   :  { %v4871_v55 = vpop.eup %4870 }
0x184f   :  { %v3808_v5 = vpop.xlane.xlu2 %3807  ;;  %v3490_v54 = vmul.f32 %v4871_v55, %v6568_v30  ;;  %v4014_v55 = vld [vmem:[#allocation13 + $0x28] sm:$0xff] }
0x1850   :  { %v3830_v51 = vmul.f32 %v3808_v5, %v5390_v16  ;;  %v4013_v5 = vld [vmem:[#allocation13 + $0x20] sm:$0xff]  ;;  %4131 = vmatpush.msrb.mxu2 %v4014_v55 }
0x1851   :  { %4419 = vmatmul.msk.f32.gmra.mxu3 %vm300_vm1, %v3490_v54  ;;  %v4012_v54 = vld [vmem:[#allocation13 + $0x18] sm:$0xff] }
0x1852   :  { %v3838_v45 = vsub.f32 %v6574_v22, %v3830_v51  ;;  %4132 = vmatpush.msrb.mxu2 %v4013_v5  ;;  %v3172_v51 = vadd.f32 %v6330_v61, %v6503_v27 }
0x1854   :  { %v3846_v10 = vmul.f32 %v3838_v45, %v3838_v45  ;;  %4133 = vmatpush.msrb.mxu2 %v4012_v54 }
0x1856   :  { %v3854_v6 = vsel %vm300_vm1, %v3846_v10, 0.0  ;;  %v3379_v10 = vadd.f32 %v6505_v39, %v3172_v51 }
0x1857   :  { %3855 = vadd.xlane.f32.xlu2 %v3854_v6  ;;  %v6619_v46 = vpop.xlane.xlu2 %3816  ;;  %v4009_v6 = vld [vmem:[#allocation13] sm:$0xff] }
0x1858   :  { %v3833_v39 = vmul.f32 %v6619_v46, %v5390_v16 }
0x187e   :  { %v3686_v0 = vpop.xlane.xlu0 %3685 }
0x187f   :  { %4872 = vrcp.f32 %v3686_v0  ;;  %v3811_v0 = vpop.xlane.xlu1 %3810 }
0x1883   :  { %v3532_v38 = vpop.f32.mrf.mxu3 }
0x1884   :  { %4420 = vmatmul.msk.f32.vlgmr.msra.gmra.mxu1 %vm256_vm0, %v3532_v38 }
0x1885   :  { %v4873_v21 = vpop.eup %4872 }
0x1886   :  { %v3689_v2 = vpop.xlane.xlu0 %3688  ;;  %v3696_v58 = vmul.f32 %v4873_v21, %v4859_v24 }
0x1887   :  { %4874 = vrcp.f32 %v3689_v2  ;;  %v3831_v2 = vmul.f32 %v3811_v0, %v5390_v16 }
0x1888   :  { %4434 = vmatmul.msk.f32.gmra.mxu0 %vm300_vm1, %v3696_v58 }
0x1889   :  { %v6649_v61 = vsub.f32 %v6548_v31, %v3831_v2 }
0x188d   :  { %v4875_v30 = vpop.eup %4874 }
0x188e   :  { %v3697_v43 = vmul.f32 %v4875_v30, %v4861_v57 }
0x1890   :  { %4435 = vmatmul.msk.f32.gmra.mxu0 %vm300_vm1, %v3697_v43  ;;  %v3847_v43 = vmul.f32 %v6649_v61, %v6649_v61 }
0x1895   :  { %v3739_v44 = vpop.f32.mrf.mxu0 }
0x1896   :  { %4436 = vmatmul.msk.f32.vlgmr.msrb.gmra.mxu3 %vm256_vm0, %v3739_v44 }
0x18a3   :  { %v3535_v62 = vpop.f32.mrf.mxu3 }
0x18a4   :  { %4421 = vmatmul.msk.f32.gmra.mxu1 %vm256_vm0, %v3535_v62  ;;  %v6658_v62 = vsub.f32 %v6580_v13, %v3833_v39 }
0x18ab   :  { %v3538_v33 = vpop.f32.mrf.mxu3 }
0x18ac   :  { %4422 = vmatmul.msk.f32.gmra.mxu1 %vm256_vm0, %v3538_v33  ;;  %v3849_v33 = vmul.f32 %v6658_v62, %v6658_v62 }
0x18ae   :  { %v3863_v47 = vsel %vm300_vm1, %v3849_v33, 0.0 }
0x18c6   :  { %v3742_v11 = vpop.f32.mrf.mxu0 }
0x18c7   :  { %4437 = vmatmul.msk.f32.gmra.mxu3 %vm256_vm0, %v3742_v11 }
0x18ca   :  { %v3856_v12 = vpop.xlane.xlu2 %3855 }
0x18cb   :  { %v3878_v24 = vmul.f32 %v3856_v12, %v5390_v16  ;;  %v3814_v12 = vpop.xlane.xlu0 %3813 }
0x18cd   :  { %v3886_v3 = vadd.f32 1e-05, %v3878_v24 }
0x18cf   :  { %4876 = vrsqrt.f32 %v3886_v3  ;;  %vm3900_vm9 = vweird.f32 %v3886_v3 }
0x18d4   :  { %v3541_v17 = vpop.f32.mrf.mxu3 }
0x18d5   :  { %v4877_v29 = vpop.eup %4876  ;;  %4423 = vmatmul.msk.f32.gmra.mxu1 %vm256_vm0, %v3541_v17  ;;  %v3832_v17 = vmul.f32 %v3814_v12, %v5390_v16 }
0x18d6   :  { %v3895_v56 = vmul.f32 %v4877_v29, %v3886_v3  ;;  %vm3901_vm15 = vweird.f32 %v4877_v29 }
0x18d7   :  { %vm3902_vm2 = vmor %vm3900_vm9, %vm3901_vm15 }
0x18d8   :  { %v3896_v26 = vmul.f32 %v4877_v29, %v3895_v56 }
0x18da   :  { %v3897_v15 = vmul.f32 0.5, %v3896_v26  ;;  %v6675_v26 = vsub.f32 %v6596_v52, %v3832_v17 }
0x18dc   :  { %v3898_v9 = vsub.f32 1.5, %v3897_v15 }
0x18de   :  { %v3899_v57 = vmul.f32 %v4877_v29, %v3898_v9 }
0x18e0   :  { %v3903_v8 = vsel %vm3902_vm2, %v4877_v29, %v3899_v57 }
0x18e1   :  { %v3974_v48 = vmul.f32 %v3903_v8, %v3838_v45  ;;  %v4010_v45 = vld [vmem:[#allocation13 + $0x8] sm:$0xff] }
0x18e3   :  { %v3985_v49 = vmul.f32 %v6625_v53, %v3974_v48 }
0x18e5   :  { %v3996_v37 = vadd.f32 %v6628_v1, %v3985_v49 }
0x18e7   :  { %4440 = vmatmul.msk.f32.vlgmr.msrb.gmra.mxu1 %vm300_vm1, %v3996_v37 }
0x1901   :  { %v3573_v42 = vpop.f32.mrf.mxu1 }
0x1902   :  { %v3585_v40 = vadd.f32 %v3573_v42, %v6494_v50  ;;  %v4011_v50 = vld [vmem:[#allocation13 + $0x10] sm:$0xff] }
0x1903   :  { %4134 = vmatpush.msrb.mxu2 %v4011_v50 }
0x1905   :  { %v3745_v41 = vpop.f32.mrf.mxu0  ;;  %4135 = vmatpush.msrb.mxu2 %v4010_v45 }
0x1906   :  { %4438 = vmatmul.msk.f32.gmra.mxu3 %vm256_vm0, %v3745_v41 }
0x1907   :  { %4136 = vmatpush.msrb.mxu2 %v4009_v6 }
0x190d   :  { %v3748_v7 = vpop.f32.mrf.mxu0 }
0x190e   :  { %4439 = vmatmul.msk.f32.gmra.mxu3 %vm256_vm0, %v3748_v7 }
0x1919   :  { %v3780_v25 = vpop.f32.mrf.mxu3 }
0x191a   :  { %v3792_v63 = vadd.f32 %v3780_v25, %v3585_v40 }
0x191c   :  { %v6637_v23 = vadd.f32 %v3792_v63, %v6025_v59 }
0x191e   :  { %v3818_v28 = vsel %vm300_vm1, %v6637_v23, 0.0 }
0x191f   :  { %3819 = vadd.xlane.f32.xlu1 %v3818_v28 }
0x1921   :  { %v3576_v59 = vpop.f32.mrf.mxu1 }
0x1922   :  { %v3586_v38 = vadd.f32 %v3576_v59, %v3379_v10 }
0x1929   :  { %v3579_v44 = vpop.f32.mrf.mxu1 }
0x192a   :  { %v3587_v24 = vadd.f32 %v3579_v44, %v6508_v4  ;;  %v3848_v4 = vmul.f32 %v6675_v26, %v6675_v26 }
0x192c   :  { %v3860_v41 = vsel %vm300_vm1, %v3848_v4, 0.0 }
0x194a   :  { %v3783_v21 = vpop.f32.mrf.mxu3 }
0x194b   :  { %v3793_v58 = vadd.f32 %v3783_v21, %v3586_v38  ;;  %v6708_v21 = vld [vmem:[%s5293_s27] ss:$0 sm:$0xff] }
0x194d   :  { %v6646_v30 = vadd.f32 %v3793_v58, %v6030_v60  ;;  %v3857_v60 = vsel %vm300_vm1, %v3847_v43, 0.0 }
0x194f   :  { %v3821_v27 = vsel %vm300_vm1, %v6646_v30, 0.0 }
0x1950   :  { %3822 = vadd.xlane.f32.xlu0 %v3821_v27 }
0x1952   :  { %v3582_v36 = vpop.f32.mrf.mxu1 }
0x1953   :  { %v3588_v9 = vadd.f32 %v3582_v36, %v6511_v20 }
0x1958   :  { %3858 = vadd.xlane.f32.xlu0 %v3857_v60 }
0x1960   :  { %3864 = vadd.xlane.f32.xlu0 %v3863_v47 }
0x1964   :  { %v4062_v46 = vpop.f32.mrf.mxu1 }
0x1965   :  { %v4063_v34 = vadd.f32 %v6665_v32, %v4062_v46 }
0x1967   :  { %v4086_v11 = vmax.f32 %v4063_v34, 0.0 }
0x1969   :  { %4448 = vmatmul.msk.f32.vlgmr.msrb.gmra.mxu2 %vm1669_vm8, %v4086_v11 }
0x1989   :  { %v3786_v3 = vpop.f32.mrf.mxu3 }
0x198a   :  { %v3794_v29 = vadd.f32 %v3786_v3, %v3587_v24 }
0x198c   :  { %v6672_v56 = vadd.f32 %v3794_v29, %v6035_v35 }
0x198e   :  { %v3824_v15 = vsel %vm300_vm1, %v6672_v56, 0.0 }
0x198f   :  { %3825 = vadd.xlane.f32.xlu1 %v3824_v15 }
0x1991   :  { %v3789_v57 = vpop.f32.mrf.mxu3 }
0x1992   :  { %v3795_v8 = vadd.f32 %v3789_v57, %v3588_v9  ;;  %v3820_v48 = vpop.xlane.xlu1 %3819 }
0x1993   :  { %v3834_v49 = vmul.f32 %v3820_v48, %v5390_v16 }
0x1994   :  { %v6684_v35 = vadd.f32 %v3795_v8, %v6040_v18 }
0x1995   :  { %v6687_v37 = vsub.f32 %v6637_v23, %v3834_v49 }
0x1996   :  { %v3827_v7 = vsel %vm300_vm1, %v6684_v35, 0.0 }
0x1997   :  { %3861 = vadd.xlane.f32.xlu1 %v3860_v41  ;;  %3828 = vadd.xlane.f32.xlu2 %v3827_v7  ;;  %v3850_v20 = vmul.f32 %v6687_v37, %v6687_v37 }
0x1999   :  { %v3866_v42 = vsel %vm300_vm1, %v3850_v20, 0.0 }
0x199f   :  { %3867 = vadd.xlane.f32.xlu2 %v3866_v42 }
0x19c3   :  { %v3823_v40 = vpop.xlane.xlu0 %3822 }
0x19c4   :  { %v3835_v18 = vmul.f32 %v3823_v40, %v5390_v16 }
0x19c6   :  { %v6697_v25 = vsub.f32 %v6646_v30, %v3835_v18 }
0x19c8   :  { %v3851_v63 = vmul.f32 %v6697_v25, %v6697_v25 }
0x19ca   :  { %v3869_v28 = vsel %vm300_vm1, %v3851_v63, 0.0 }
0x19cb   :  { %v3859_v14 = vpop.xlane.xlu0 %3858  ;;  %3870 = vadd.xlane.f32.xlu1 %v3869_v28 }
0x19cc   :  { %v3879_v19 = vmul.f32 %v3859_v14, %v5390_v16 }
0x19ce   :  { %v3887_v55 = vadd.f32 1e-05, %v3879_v19 }
0x19d0   :  { %4878 = vrsqrt.f32 %v3887_v55  ;;  %vm3910_vm3 = vweird.f32 %v3887_v55 }
0x19d3   :  { %v3865_v39 = vpop.xlane.xlu0 %3864 }
0x19d4   :  { %v3881_v43 = vmul.f32 %v3865_v39, %v5390_v16 }
0x19d6   :  { %v4879_v5 = vpop.eup %4878  ;;  %v3889_v44 = vadd.f32 1e-05, %v3881_v43 }
0x19d7   :  { %v3905_v54 = vmul.f32 %v4879_v5, %v3887_v55  ;;  %vm3911_vm0 = vweird.f32 %v4879_v5 }
0x19d8   :  { %vm3912_vm4 = vmor %vm3910_vm3, %vm3911_vm0  ;;  %4880 = vrsqrt.f32 %v3889_v44  ;;  %vm3930_vm11 = vweird.f32 %v3889_v44 }
0x19d9   :  { %v3906_v50 = vmul.f32 %v4879_v5, %v3905_v54 }
0x19db   :  { %v3907_v51 = vmul.f32 0.5, %v3906_v50 }
0x19dd   :  { %v3908_v59 = vsub.f32 1.5, %v3907_v51 }
0x19de   :  { %v4881_v34 = vpop.eup %4880 }
0x19df   :  { %v3909_v45 = vmul.f32 %v4879_v5, %v3908_v59  ;;  %v3925_v17 = vmul.f32 %v4881_v34, %v3889_v44  ;;  %vm3931_vm6 = vweird.f32 %v4881_v34 }
0x19e0   :  { %vm3932_vm12 = vmor %vm3930_vm11, %vm3931_vm6 }
0x19e1   :  { %v3913_v10 = vsel %vm3912_vm4, %v4879_v5, %v3909_v45  ;;  %v3926_v9 = vmul.f32 %v4881_v34, %v3925_v17 }
0x19e2   :  { %v3975_v6 = vmul.f32 %v3913_v10, %v6649_v61 }
0x19e3   :  { %v3927_v49 = vmul.f32 0.5, %v3926_v9 }
0x19e4   :  { %v3986_v0 = vmul.f32 %v6625_v53, %v3975_v6 }
0x19e5   :  { %v3928_v20 = vsub.f32 1.5, %v3927_v49 }
0x19e6   :  { %v3997_v38 = vadd.f32 %v6628_v1, %v3986_v0 }
0x19e7   :  { %v3929_v63 = vmul.f32 %v4881_v34, %v3928_v20 }
0x19e8   :  { %4441 = vmatmul.msk.f32.gmra.mxu1 %vm300_vm1, %v3997_v38 }
0x19e9   :  { %v3933_v54 = vsel %vm3932_vm12, %v4881_v34, %v3929_v63 }
0x19ea   :  { %v3977_v45 = vmul.f32 %v3933_v54, %v6658_v62 }
0x19ec   :  { %v4138_v2 = vpop.f32.mrf.mxu2  ;;  %v3988_v0 = vmul.f32 %v6625_v53, %v3977_v45 }
0x19ed   :  { %v4139_v58 = vadd.f32 %v6708_v21, %v4138_v2 }
0x19ee   :  { %v3999_v2 = vadd.f32 %v6628_v1, %v3988_v0 }
0x19ef   :  { %v4162_v27 = vadd.f32 %v4139_v58, %v6574_v22 }
0x19f1   :  { %4170 = vst.msk [vmem:[%s5298_s14] sm:$0xff] %vm300_vm1, %v4162_v27 }
0x1a02   :  { %v3826_v61 = vpop.xlane.xlu1 %3825 }
0x1a03   :  { %v3836_v60 = vmul.f32 %v3826_v61, %v5390_v16 }
0x1a05   :  { %v6717_v33 = vsub.f32 %v6672_v56, %v3836_v60 }
0x1a07   :  { %v3852_v36 = vmul.f32 %v6717_v33, %v6717_v33 }
0x1a09   :  { %v3872_v47 = vsel %vm300_vm1, %v3852_v36, 0.0 }
0x1a0a   :  { %v3862_v46 = vpop.xlane.xlu1 %3861  ;;  %3873 = vadd.xlane.f32.xlu0 %v3872_v47  ;;  %v3829_v22 = vpop.xlane.xlu2 %3828 }
0x1a0b   :  { %v3880_v11 = vmul.f32 %v3862_v46, %v5390_v16  ;;  %v3837_v12 = vmul.f32 %v3829_v22, %v5390_v16 }
0x1a0d   :  { %v3888_v24 = vadd.f32 1e-05, %v3880_v11  ;;  %v6725_v3 = vsub.f32 %v6684_v35, %v3837_v12 }
0x1a0f   :  { %4882 = vrsqrt.f32 %v3888_v24  ;;  %v3853_v29 = vmul.f32 %v6725_v3, %v6725_v3  ;;  %vm3920_vm7 = vweird.f32 %v3888_v24 }
0x1a11   :  { %v3875_v15 = vsel %vm300_vm1, %v3853_v29, 0.0 }
0x1a12   :  { %3876 = vadd.xlane.f32.xlu2 %v3875_v15  ;;  %v3868_v57 = vpop.xlane.xlu2 %3867 }
0x1a13   :  { %v3882_v8 = vmul.f32 %v3868_v57, %v5390_v16 }
0x1a15   :  { %v4883_v48 = vpop.eup %4882  ;;  %v3890_v4 = vadd.f32 1e-05, %v3882_v8 }
0x1a16   :  { %v3915_v41 = vmul.f32 %v4883_v48, %v3888_v24  ;;  %vm3921_vm5 = vweird.f32 %v4883_v48 }
0x1a17   :  { %4884 = vrsqrt.f32 %v3890_v4  ;;  %vm3922_vm10 = vmor %vm3920_vm7, %vm3921_vm5  ;;  %vm3940_vm14 = vweird.f32 %v3890_v4 }
0x1a18   :  { %v3916_v7 = vmul.f32 %v4883_v48, %v3915_v41 }
0x1a1a   :  { %v3917_v42 = vmul.f32 0.5, %v3916_v7 }
0x1a1c   :  { %v3918_v40 = vsub.f32 1.5, %v3917_v42 }
0x1a1d   :  { %v4885_v18 = vpop.eup %4884 }
0x1a1e   :  { %v3919_v28 = vmul.f32 %v4883_v48, %v3918_v40  ;;  %v3935_v14 = vmul.f32 %v4885_v18, %v3890_v4  ;;  %vm3941_vm13 = vweird.f32 %v4885_v18 }
0x1a1f   :  { %vm3942_vm15 = vmor %vm3940_vm14, %vm3941_vm13 }
0x1a20   :  { %v3923_v19 = vsel %vm3922_vm10, %v4883_v48, %v3919_v28  ;;  %v3936_v55 = vmul.f32 %v4885_v18, %v3935_v14 }
0x1a21   :  { %v3976_v5 = vmul.f32 %v3923_v19, %v6675_v26 }
0x1a22   :  { %v3937_v50 = vmul.f32 0.5, %v3936_v55 }
0x1a23   :  { %v3987_v51 = vmul.f32 %v6625_v53, %v3976_v5 }
0x1a24   :  { %v3938_v59 = vsub.f32 1.5, %v3937_v50 }
0x1a25   :  { %v3998_v10 = vadd.f32 %v6628_v1, %v3987_v51 }
0x1a26   :  { %v3939_v6 = vmul.f32 %v4885_v18, %v3938_v59 }
0x1a27   :  { %4442 = vmatmul.msk.f32.gmra.mxu1 %vm300_vm1, %v3998_v10 }
0x1a28   :  { %v3943_v38 = vsel %vm3942_vm15, %v4885_v18, %v3939_v6 }
0x1a29   :  { %v3978_v26 = vmul.f32 %v3943_v38, %v6687_v37 }
0x1a2b   :  { %v3989_v58 = vmul.f32 %v6625_v53, %v3978_v26 }
0x1a2d   :  { %v4000_v62 = vadd.f32 %v6628_v1, %v3989_v58 }
0x1a2f   :  { %4443 = vmatmul.msk.f32.gmra.mxu1 %vm300_vm1, %v3999_v2 }
0x1a37   :  { %4444 = vmatmul.msk.f32.gmra.mxu1 %vm300_vm1, %v4000_v62 }
0x1a3e   :  { %v3871_v27 = vpop.xlane.xlu1 %3870 }
0x1a3f   :  { %v3883_v39 = vmul.f32 %v3871_v27, %v5390_v16 }
0x1a41   :  { %v3891_v43 = vadd.f32 1e-05, %v3883_v39 }
0x1a43   :  { %4886 = vrsqrt.f32 %v3891_v43  ;;  %vm3950_vm2 = vweird.f32 %v3891_v43 }
0x1a49   :  { %v4887_v44 = vpop.eup %4886 }
0x1a4a   :  { %v3945_v61 = vmul.f32 %v4887_v44, %v3891_v43  ;;  %vm3951_vm9 = vweird.f32 %v4887_v44 }
0x1a4b   :  { %vm3952_vm0 = vmor %vm3950_vm2, %vm3951_vm9 }
0x1a4c   :  { %v3946_v60 = vmul.f32 %v4887_v44, %v3945_v61 }
0x1a4e   :  { %v3947_v36 = vmul.f32 0.5, %v3946_v60 }
0x1a50   :  { %v3948_v37 = vsub.f32 1.5, %v3947_v36 }
0x1a52   :  { %v3949_v47 = vmul.f32 %v4887_v44, %v3948_v37 }
0x1a54   :  { %v3953_v46 = vsel %vm3952_vm0, %v4887_v44, %v3949_v47 }
0x1a55   :  { %v3979_v22 = vmul.f32 %v3953_v46, %v6697_v25 }
0x1a57   :  { %v3990_v34 = vmul.f32 %v6625_v53, %v3979_v22 }
0x1a59   :  { %v4001_v11 = vadd.f32 %v6628_v1, %v3990_v34 }
0x1a5b   :  { %4445 = vmatmul.msk.f32.gmra.mxu1 %vm300_vm1, %v4001_v11 }
0x1a65   :  { %v4065_v12 = vpop.f32.mrf.mxu1 }
0x1a66   :  { %v4066_v24 = vadd.f32 %v6665_v32, %v4065_v12 }
0x1a68   :  { %v4087_v17 = vmax.f32 %v4066_v24, 0.0 }
0x1a6a   :  { %4449 = vmatmul.msk.f32.gmra.mxu2 %vm1669_vm8, %v4087_v17 }
0x1a7d   :  { %v3874_v29 = vpop.xlane.xlu0 %3873 }
0x1a7e   :  { %v3884_v15 = vmul.f32 %v3874_v29, %v5390_v16 }
0x1a80   :  { %v3892_v9 = vadd.f32 1e-05, %v3884_v15 }
0x1a82   :  { %4888 = vrsqrt.f32 %v3892_v9  ;;  %vm3960_vm4 = vweird.f32 %v3892_v9 }
0x1a85   :  { %v3877_v57 = vpop.xlane.xlu2 %3876 }
0x1a86   :  { %v3885_v25 = vmul.f32 %v3877_v57, %v5390_v16 }
0x1a88   :  { %v4889_v8 = vpop.eup %4888  ;;  %v3893_v48 = vadd.f32 1e-05, %v3885_v25 }
0x1a89   :  { %v3955_v4 = vmul.f32 %v4889_v8, %v3892_v9  ;;  %vm3961_vm3 = vweird.f32 %v4889_v8 }
0x1a8a   :  { %4890 = vrsqrt.f32 %v3893_v48  ;;  %vm3962_vm5 = vmor %vm3960_vm4, %vm3961_vm3  ;;  %vm3970_vm7 = vweird.f32 %v3893_v48 }
0x1a8b   :  { %v3956_v49 = vmul.f32 %v4889_v8, %v3955_v4 }
0x1a8d   :  { %v3957_v41 = vmul.f32 0.5, %v3956_v49 }
0x1a8f   :  { %v3958_v7 = vsub.f32 1.5, %v3957_v41 }
0x1a90   :  { %v4891_v20 = vpop.eup %4890 }
0x1a91   :  { %v3959_v42 = vmul.f32 %v4889_v8, %v3958_v7  ;;  %v3965_v40 = vmul.f32 %v4891_v20, %v3893_v48  ;;  %vm3971_vm6 = vweird.f32 %v4891_v20 }
0x1a92   :  { %vm3972_vm10 = vmor %vm3970_vm7, %vm3971_vm6 }
0x1a93   :  { %v3963_v18 = vsel %vm3962_vm5, %v4889_v8, %v3959_v42  ;;  %v3966_v63 = vmul.f32 %v4891_v20, %v3965_v40 }
0x1a94   :  { %v3980_v28 = vmul.f32 %v3963_v18, %v6717_v33 }
0x1a95   :  { %v3967_v14 = vmul.f32 0.5, %v3966_v63 }
0x1a96   :  { %v3991_v16 = vmul.f32 %v6625_v53, %v3980_v28 }
0x1a97   :  { %v3968_v19 = vsub.f32 1.5, %v3967_v14 }
0x1a98   :  { %v4002_v55 = vadd.f32 %v6628_v1, %v3991_v16 }
0x1a99   :  { %v3969_v5 = vmul.f32 %v4891_v20, %v3968_v19 }
0x1a9a   :  { %4446 = vmatmul.msk.f32.gmra.mxu1 %vm300_vm1, %v4002_v55 }
0x1a9b   :  { %v3973_v54 = vsel %vm3972_vm10, %v4891_v20, %v3969_v5 }
0x1a9c   :  { %v3981_v50 = vmul.f32 %v3973_v54, %v6725_v3 }
0x1a9e   :  { %v3992_v51 = vmul.f32 %v6625_v53, %v3981_v50 }
0x1aa0   :  { %v4003_v59 = vadd.f32 %v6628_v1, %v3992_v51 }
0x1aa2   :  { %4447 = vmatmul.msk.f32.gmra.mxu1 %vm300_vm1, %v4003_v59 }
0x1aa4   :  { %v4068_v33 = vpop.f32.mrf.mxu1 }
0x1aa5   :  { %v4069_v45 = vadd.f32 %v6665_v32, %v4068_v33 }
0x1aa7   :  { %v4088_v10 = vmax.f32 %v4069_v45, 0.0 }
0x1aa9   :  { %4450 = vmatmul.msk.f32.gmra.mxu2 %vm1669_vm8, %v4088_v10 }
0x1aac   :  { %v4071_v6 = vpop.f32.mrf.mxu1 }
0x1aad   :  { %v4072_v0 = vadd.f32 %v6665_v32, %v4071_v6 }
0x1aaf   :  { %v4089_v38 = vmax.f32 %v4072_v0, 0.0 }
0x1ab1   :  { %4451 = vmatmul.msk.f32.gmra.mxu2 %vm1669_vm8, %v4089_v38 }
0x1ab4   :  { %v4074_v3 = vpop.f32.mrf.mxu1 }
0x1ab5   :  { %v4075_v53 = vadd.f32 %v6665_v32, %v4074_v3 }
0x1ab7   :  { %v4090_v26 = vmax.f32 %v4075_v53, 0.0 }
0x1ab9   :  { %4452 = vmatmul.msk.f32.gmra.mxu2 %vm1669_vm8, %v4090_v26 }
0x1ad8   :  { %v4077_v1 = vpop.f32.mrf.mxu1 }
0x1ad9   :  { %v4078_v2 = vadd.f32 %v6665_v32, %v4077_v1 }
0x1adb   :  { %v4091_v58 = vmax.f32 %v4078_v2, 0.0 }
0x1add   :  { %4453 = vmatmul.msk.f32.gmra.mxu2 %vm1669_vm8, %v4091_v58 }
0x1aed   :  { %v4141_v62 = vpop.f32.mrf.mxu2 }
0x1aee   :  { %v4142_v27 = vadd.f32 %v6708_v21, %v4141_v62 }
0x1af0   :  { %v4163_v39 = vadd.f32 %v4142_v27, %v6548_v31 }
0x1af2   :  { %4171 = vst.msk [vmem:[%s5298_s14 + $0x8] sm:$0xff] %vm300_vm1, %v4163_v39 }
0x1b17   :  { %v4080_v43 = vpop.f32.mrf.mxu1 }
0x1b18   :  { %v4081_v44 = vadd.f32 %v6665_v32, %v4080_v43 }
0x1b1a   :  { %v4092_v61 = vmax.f32 %v4081_v44, 0.0 }
0x1b1c   :  { %4454 = vmatmul.msk.f32.gmra.mxu2 %vm1669_vm8, %v4092_v61 }
0x1b1f   :  { %v4083_v60 = vpop.f32.mrf.mxu1 }
0x1b20   :  { %v4084_v36 = vadd.f32 %v6665_v32, %v4083_v60 }
0x1b22   :  { %v4093_v37 = vmax.f32 %v4084_v36, 0.0 }
0x1b24   :  { %4455 = vmatmul.msk.f32.gmra.mxu2 %vm1669_vm8, %v4093_v37 }
0x1b2c   :  { %v4144_v47 = vpop.f32.mrf.mxu2 }
0x1b2d   :  { %v4145_v31 = vadd.f32 %v6708_v21, %v4144_v47 }
0x1b2f   :  { %v4164_v46 = vadd.f32 %v4145_v31, %v6596_v52 }
0x1b31   :  { %4172 = vst.msk [vmem:[%s5298_s14 + $0x10] sm:$0xff] %vm300_vm1, %v4164_v46 }
0x1b34   :  { %v4147_v22 = vpop.f32.mrf.mxu2 }
0x1b35   :  { %v4148_v34 = vadd.f32 %v6708_v21, %v4147_v22 }
0x1b37   :  { %v4165_v11 = vadd.f32 %v4148_v34, %v6580_v13 }
0x1b39   :  { %4173 = vst.msk [vmem:[%s5298_s14 + $0x18] sm:$0xff] %vm300_vm1, %v4165_v11 }
0x1b3c   :  { %v4150_v32 = vpop.f32.mrf.mxu2 }
0x1b3d   :  { %v4151_v12 = vadd.f32 %v6708_v21, %v4150_v32 }
0x1b3f   :  { %v4166_v24 = vadd.f32 %v4151_v12, %v6637_v23 }
0x1b41   :  { %4174 = vst.msk [vmem:[%s5298_s14 + $0x20] sm:$0xff] %vm300_vm1, %v4166_v24 }
0x1b60   :  { %v4153_v17 = vpop.f32.mrf.mxu2 }
0x1b61   :  { %v4154_v52 = vadd.f32 %v6708_v21, %v4153_v17 }
0x1b63   :  { %v4167_v29 = vadd.f32 %v4154_v52, %v6646_v30 }
0x1b65   :  { %4175 = vst.msk [vmem:[%s5298_s14 + $0x28] sm:$0xff] %vm300_vm1, %v4167_v29 }
0x1b9f   :  { %v4156_v15 = vpop.f32.mrf.mxu2 }
0x1ba0   :  { %v4157_v13 = vadd.f32 %v6708_v21, %v4156_v15 }
0x1ba2   :  { %v4168_v9 = vadd.f32 %v4157_v13, %v6672_v56 }
0x1ba4   :  { %4176 = vst.msk [vmem:[%s5298_s14 + $0x30] sm:$0xff] %vm300_vm1, %v4168_v9 }
0x1ba7   :  { %v4159_v57 = vpop.f32.mrf.mxu2 }
0x1ba8   :  { %v4160_v25 = vadd.f32 %v6708_v21, %v4159_v57 }
0x1baa   :  { %v4169_v23 = vadd.f32 %v4160_v25, %v6684_v35 }
0x1bac   :  { %4177 = vst.msk [vmem:[%s5298_s14 + $0x38] sm:$0xff] %vm300_vm1, %v4169_v23 }
0x1bad   :  { %4182 = vsyncpa [#allocation3], 1 }
0x1bae   :  { %4183 = vsyncpa [#allocation5], 1 }
0x1baf   :  { %4184 = vsyncpa [#allocation8], 1 }
0x1bb0   :  { %4185 = vsyncpa [#allocation11], 1 }
0x1bb1   :  { %4186 = vsyncpa [#allocation14], 1 }

// kernel: _lambda_.5
= control target key start
LH: loop header
LB: loop body
LE: loop exit
PB: predicated region body
PF: predicated region fallthrough
CT: control target
= control target key end

     0   :  { %vm53_vm0 = vcmask 1043456   ;;  %v250_v3 = vmov 0   ;;  %vm49_vm1 = vcmask 293888   ;;  %v251_v38 = vmov 256.0   ;;  %s365_s1 = inlined_call_operand.vmem [shape: f32[36,512], index: 1, kind: input, shape index: {}]   ;;  %s366_s0 = inlined_call_operand.vmem [shape: f32[8,36], index: 0, kind: input, shape index: {}]   ;;  %s367_s2 = inlined_call_operand.vmem [shape: f32[8,1], index: 2, kind: input, shape index: {}]   ;;  %s368_s3 = inlined_call_operand.vmem [shape: f32[8,1], index: 3, kind: input, shape index: {}]   ;;  %s369_s4 = inlined_call_operand.<no memory space> [shape: f32[1,1], index: 4, kind: input, shape index: {}]   ;;  %s370_s5 = inlined_call_operand.vmem [shape: f32[2,1], index: 5, kind: output, shape index: {}]  }
   0x1   :  { %v41_v0 = vld [vmem:[%s365_s1 + $0x90] sm:$0xf]  ;;  %v42_v1 = vld [vmem:[%s365_s1 + $0x98] sm:$0xf]  ;;  %246 = vset.pattern.permute.xlu0 %v250_v3  ;;  %v39_v7 = vld [vmem:[%s365_s1 + $0x80] sm:$0xf]  ;;  %248 = vrcp.f32 %v251_v38  ;;  %v10_v51 = vstv %s369_s4 }
   0x2   :  { %v37_v2 = vld [vmem:[%s365_s1 + $0x70] sm:$0xff]  ;;  %238 = vmatpush.msk.msra.mxu2 %vm53_vm0, %v41_v0  ;;  %240 = vmatpush.msk.msra.mxu3 %vm53_vm0, %v42_v1  ;;  %v38_v4 = vld [vmem:[%s365_s1 + $0x78] sm:$0xff]  ;;  %v40_v8 = vld [vmem:[%s365_s1 + $0x88] sm:$0xf]  ;;  %vm165_vm3 = vcmask 7168   ;;  %vm204_vm4 = vcmask 64512  }
   0x3   :  { %v33_v5 = vld [vmem:[%s365_s1 + $0x50] sm:$0xff]  ;;  %v34_v6 = vld [vmem:[%s365_s1 + $0x58] sm:$0xff]  ;;  %v35_v9 = vld [vmem:[%s365_s1 + $0x60] sm:$0xff]  ;;  %234 = vmatpush.msk.msra.mxu0 %vm53_vm0, %v39_v7  ;;  %236 = vmatpush.msk.msra.mxu1 %vm53_vm0, %v40_v8  ;;  %11 = vst [vmem:[#allocation2] sm:$0x1] %v10_v51  ;;  %vm228_vm5 = vcmask 1024  }
   0x4   :  { %118 = vmatpush.msra.mxu2 %v37_v2  ;;  %138 = vmatpush.msra.mxu3 %v38_v4  ;;  %v36_v10 = vld [vmem:[%s365_s1 + $0x68] sm:$0xff]  ;;  %v29_v11 = vld [vmem:[%s365_s1 + $0x30] sm:$0xff]  ;;  %v30_v12 = vld [vmem:[%s365_s1 + $0x38] sm:$0xff] }
   0x5   :  { %v31_v13 = vld [vmem:[%s365_s1 + $0x40] sm:$0xff]  ;;  %v32_v14 = vld [vmem:[%s365_s1 + $0x48] sm:$0xff]  ;;  %78 = vmatpush.msra.mxu0 %v35_v9  ;;  %98 = vmatpush.msra.mxu1 %v36_v10  ;;  %v25_v15 = vld [vmem:[%s365_s1 + $0x10] sm:$0xff] }
   0x6   :  { %119 = vmatpush.msra.mxu2 %v33_v5  ;;  %139 = vmatpush.msra.mxu3 %v34_v6  ;;  %v26_v16 = vld [vmem:[%s365_s1 + $0x18] sm:$0xff]  ;;  %v22_v17 = vld [vmem:[%s366_s0] sm:$0xff]  ;;  %v28_v19 = vld [vmem:[%s365_s1 + $0x28] sm:$0xff] }
   0x7   :  { %79 = vmatpush.msra.mxu0 %v31_v13  ;;  %99 = vmatpush.msra.mxu1 %v32_v14  ;;  %v27_v18 = vld [vmem:[%s365_s1 + $0x20] sm:$0xff]  ;;  %v24_v22 = vld [vmem:[%s365_s1 + $0x8] sm:$0xff]  ;;  %v249_v40 = vpop.eup %248 }
   0x8   :  { %120 = vmatpush.msra.mxu2 %v29_v11  ;;  %140 = vmatpush.msra.mxu3 %v30_v12  ;;  %v43_v20 = vld [vmem:[%s367_s2] sm:$0xff]  ;;  %v154_v41 = vmul.f32 256.0, %v249_v40  ;;  %vm158_vm2 = vweird.f32 %v249_v40 }
   0x9   :  { %v23_v21 = vld [vmem:[%s365_s1] sm:$0xff]  ;;  %80 = vmatpush.msra.mxu0 %v27_v18  ;;  %100 = vmatpush.msra.mxu1 %v28_v19 }
   0xa   :  { %121 = vmatpush.msra.mxu2 %v25_v15  ;;  %141 = vmatpush.msra.mxu3 %v26_v16  ;;  %v199_v39 = vld [vmem:[%s368_s3] sm:$0xff]  ;;  %v155_v42 = vsub.f32 1.0, %v154_v41 }
   0xb   :  { %239 = vmatmul.msk.f32.vlgmr.msra.gmra.mxu2 %vm49_vm1, %v22_v17  ;;  %241 = vmatmul.msk.f32.vlgmr.msra.gmra.mxu3 %vm49_vm1, %v22_v17  ;;  %v247_v53 = vld [vmem:[#allocation2] ss:$0 sm:$0xff] }
   0xc   :  { %46 = vperm.xlu0 %246, %v43_v20   ;;  %81 = vmatpush.msra.mxu0 %v23_v21  ;;  %v156_v43 = vmul.f32 %v249_v40, %v155_v42 }
   0xd   :  { %101 = vmatpush.msra.mxu1 %v24_v22  ;;  %235 = vmatmul.msk.f32.vlgmr.msra.gmra.mxu0 %vm49_vm1, %v22_v17 }
   0xe   :  { %237 = vmatmul.msk.f32.vlgmr.msra.gmra.mxu1 %vm49_vm1, %v22_v17  ;;  %223 = vmatpush.msrb.mxu0 %v199_v39  ;;  %v157_v44 = vadd.f32 %v249_v40, %v156_v43 }
  0x10   :  { %v159_v45 = vsel %vm158_vm2, %v249_v40, %v157_v44 }
  0x7e   :  { %v47_v23 = vpop.permute.xlu0 %46 }
  0x8a   :  { %v83_v24 = vpop.f32.mrf.mxu0 }
  0x8b   :  { %v103_v25 = vpop.f32.mrf.mxu1  ;;  %v84_v26 = vadd.f32 %v83_v24, %v47_v23 }
  0x8c   :  { %v104_v27 = vadd.f32 %v103_v25, %v47_v23 }
  0x8d   :  { %v146_v30 = vmax.f32 %v84_v26, 0.0 }
  0x8e   :  { %v123_v28 = vpop.f32.mrf.mxu2  ;;  %v143_v29 = vpop.f32.mrf.mxu3  ;;  %v147_v31 = vmax.f32 %v104_v27, 0.0 }
  0x8f   :  { %v124_v32 = vadd.f32 %v123_v28, %v47_v23  ;;  %v144_v33 = vadd.f32 %v143_v29, %v47_v23 }
  0x90   :  { %v150_v36 = vadd.f32 %v147_v31, %v146_v30 }
  0x91   :  { %v148_v34 = vmax.f32 %v124_v32, 0.0  ;;  %v149_v35 = vmax.f32 %v144_v33, 0.0 }
  0x92   :  { %151 = vadd.xlane.f32.xlu0 %v150_v36 }
  0x93   :  { %v161_v37 = vadd.f32 %v149_v35, %v148_v34 }
  0x95   :  { %162 = vadd.xlane.f32.xlu1 %v161_v37 }
 0x105   :  { %v152_v46 = vpop.xlane.xlu0 %151 }
 0x106   :  { %v160_v47 = vmul.f32 %v159_v45, %v152_v46 }
 0x108   :  { %v163_v48 = vpop.xlane.xlu1 %162 }
 0x109   :  { %v164_v49 = vmul.f32 %v163_v48, %v159_v45 }
 0x10b   :  { %v166_v50 = vsel %vm165_vm3, %v160_v47, %v164_v49 }
 0x10c   :  { %167 = vxpose.xlu1.b32.start.end [1/1] (short) (narrow) %v166_v50, 8 }
 0x1b0   :  { %v183_v52 = vpop.trf.xlu1 }
 0x1b1   :  { %242 = vmatmul.msk.f32.vlgmr.msrb.gmra.mxu0 %vm204_vm4, %v183_v52 }
 0x22e   :  { %v225_v54 = vpop.f32.mrf.mxu0 }
 0x22f   :  { %v226_v55 = vadd.f32 %v247_v53, %v225_v54 }
 0x231   :  { %229 = vst.msk [vmem:[%s370_s5] sm:$0x3] %vm228_vm5, %v226_v55 }

</bundles_post_ra>
